<compile_context>
chip_gen: v7x
topology: tpu7x:2x2x1
jax: 0.10.0
libtpu: 0.0.40
codegen_flags: <defaults>
</compile_context>

<pallas_src>
import math
import jax
import jax.numpy as jnp
from jax.experimental import pallas as pl

# ---- small config consistent with the module structure ----
VOCAB_SIZE = 256
N_EMBED = 128
N_HEAD = 4
HEAD_SIZE = N_EMBED // N_HEAD
BLOCK_SIZE = 16          # sequence length T
N_LAYER = 2
BATCH = 2
EPS = 1e-5
SCALE = N_EMBED ** (-0.5)   # torch Head uses C ** -0.5 with C = n_embed (NOT head_size)
BF16 = jnp.bfloat16


# ----------------- math helpers (usable both in-kernel and in reference) ------
def _layernorm(x, w, b=None):
    mu = jnp.mean(x, axis=-1, keepdims=True)
    var = jnp.mean((x - mu) ** 2, axis=-1, keepdims=True)
    y = (x - mu) * jax.lax.rsqrt(var + EPS) * w
    if b is not None:
        y = y + b
    return y


def _new_gelu(x):
    return 0.5 * x * (1.0 + jnp.tanh(math.sqrt(2.0 / math.pi)
                                     * (x + 0.044715 * x ** 3)))


# ----------------------------- fused Pallas kernel ----------------------------
def fused_forward_kernel(x_ref, ln1w_ref, wqkv_ref, wo_ref, bo_ref,
                         ln2w_ref, wfc_ref, wpr_ref,
                         lnfw_ref, lnfb_ref, wlm_ref, o_ref):
    B, T, C, H, HS = BATCH, BLOCK_SIZE, N_EMBED, N_HEAD, HEAD_SIZE
    x = x_ref[...]                                        # (B*T, C) f32, VMEM-resident

    for li in range(N_LAYER):                             # static unroll (N_LAYER=2)
        # ---- MultiHeadAttention on ln1(x) ----
        h = _layernorm(x, ln1w_ref[li])                   # LayerNorm(bias=False)
        qkv = jnp.dot(h.astype(BF16), wqkv_ref[li],
                      preferred_element_type=jnp.float32)  # (B*T, 3C), one MXU op
        q = qkv[:, 0 * C:1 * C].reshape(B, T, C)
        k = qkv[:, 1 * C:2 * C].reshape(B, T, C)
        v = qkv[:, 2 * C:3 * C].reshape(B, T, C)

        head_outs = []
        for hd in range(H):                               # static unroll over heads
            sl = slice(hd * HS, (hd + 1) * HS)
            s = jnp.einsum("bqd,bkd->bqk",
                           q[:, :, sl].astype(BF16), k[:, :, sl].astype(BF16),
                           preferred_element_type=jnp.float32) * SCALE
            m = jnp.max(s, axis=-1, keepdims=True)        # no causal mask (as in spec)
            e = jnp.exp(s - m)
            w = e * pl.reciprocal(jnp.sum(e, axis=-1, keepdims=True), approx=True)
            head_outs.append(
                jnp.einsum("bqk,bkd->bqd",
                           w.astype(BF16), v[:, :, sl].astype(BF16),
                           preferred_element_type=jnp.float32))
        att = jnp.concatenate(head_outs, axis=-1).reshape(B * T, C)
        att = jnp.dot(att.astype(BF16), wo_ref[li],
                      preferred_element_type=jnp.float32) + bo_ref[li]
        x = x + att                                       # dropout = identity (eval)

        # ---- MLP on ln2(x) ----
        h2 = _layernorm(x, ln2w_ref[li])
        f = _new_gelu(jnp.dot(h2.astype(BF16), wfc_ref[li],
                              preferred_element_type=jnp.float32))
        x = x + jnp.dot(f.astype(BF16), wpr_ref[li],
                        preferred_element_type=jnp.float32)

    # ---- final LayerNorm (with bias) + lm_head ----
    hf = _layernorm(x, lnfw_ref[...], lnfb_ref[...])
    o_ref[...] = jnp.dot(hf.astype(BF16), wlm_ref[...],
                         preferred_element_type=jnp.float32)


# ------------------------------ wrapper ---------------------------------------
@jax.jit
def transformer_forward(idx, params):
    """Equivalent of TransformerModel.forward(idx, targets=None) -> logits."""
    B, T = idx.shape
    # Embedding gathers are glue (plain JAX); the hot path is one fused Pallas call.
    tok = jnp.take(params["tok_emb"], idx, axis=0)        # (B, T, C)
    pos = params["pos_emb"][:T][None, :, :]               # (1, T, C)
    x = (tok + pos).reshape(B * T, N_EMBED)               # batch folded into M dim
    logits = pl.pallas_call(
        fused_forward_kernel,
        out_shape=jax.ShapeDtypeStruct((B * T, VOCAB_SIZE), jnp.float32),
        # no grid: single invocation, all inputs/outputs fully resident in VMEM
    )(x, params["ln1_w"], params["wqkv"], params["wo"], params["bo"],
      params["ln2_w"], params["wfc"], params["wpr"],
      params["lnf_w"], params["lnf_b"], params["wlm"])
    return logits.reshape(B, T, VOCAB_SIZE)


# ---------------------- deterministic parameter init --------------------------
def init_params(key):
    C, V, L = N_EMBED, VOCAB_SIZE, N_LAYER
    std = 0.02

    def nrm(k, shape):
        return std * jax.random.normal(k, shape, dtype=jnp.float32)

    keys = jax.random.split(key, 3 + L)
    params = {
        "tok_emb": nrm(keys[0], (V, C)),
        "pos_emb": nrm(keys[1], (BLOCK_SIZE, C)),
        "lnf_w": jnp.ones((1, C), jnp.float32),
        "lnf_b": jnp.zeros((1, C), jnp.float32),
        "wlm": nrm(keys[2], (C, V)).astype(BF16),
    }
    ln1, wqkv, wo, bo, ln2, wfc, wpr = ([] for _ in range(7))
    for li in range(L):
        lk = jax.random.split(keys[3 + li], 4)
        ln1.append(jnp.ones((1, C), jnp.float32))
        wqkv.append(nrm(lk[0], (C, 3 * C)))     # q | k | v concatenated on the out dim
        wo.append(nrm(lk[1], (C, C)))
        bo.append(jnp.full((1, C), 0.01, jnp.float32))
        ln2.append(jnp.ones((1, C), jnp.float32))
        wfc.append(nrm(lk[2], (C, 4 * C)))
        wpr.append(nrm(lk[3], (4 * C, C)))
    params.update(
        ln1_w=jnp.stack(ln1), wqkv=jnp.stack(wqkv).astype(BF16),
        wo=jnp.stack(wo).astype(BF16), bo=jnp.stack(bo),
        ln2_w=jnp.stack(ln2), wfc=jnp.stack(wfc).astype(BF16),
        wpr=jnp.stack(wpr).astype(BF16),
    )
    return params


# ------------------------- pure-JAX reference ----------------------------------
def reference_forward(idx, params):
    B, T = idx.shape
    C, H, HS = N_EMBED, N_HEAD, HEAD_SIZE
    x = (jnp.take(params["tok_emb"], idx, axis=0)
         + params["pos_emb"][:T][None, :, :]).reshape(B * T, C)
    for li in range(N_LAYER):
        h = _layernorm(x, params["ln1_w"][li])
        qkv = jnp.dot(h.astype(BF16), params["wqkv"][li],
                      preferred_element_type=jnp.float32)
        q = qkv[:, 0 * C:1 * C].reshape(B, T, C)
        k = qkv[:, 1 * C:2 * C].reshape(B, T, C)
        v = qkv[:, 2 * C:3 * C].reshape(B, T, C)
        outs = []
        for hd in range(H):
            sl = slice(hd * HS, (hd + 1) * HS)
            s = jnp.einsum("bqd,bkd->bqk",
                           q[:, :, sl].astype(BF16), k[:, :, sl].astype(BF16),
                           preferred_element_type=jnp.float32) * SCALE
            w = jax.nn.softmax(s, axis=-1)
            outs.append(jnp.einsum("bqk,bkd->bqd",
                                   w.astype(BF16), v[:, :, sl].astype(BF16),
                                   preferred_element_type=jnp.float32))
        att = jnp.concatenate(outs, axis=-1).reshape(B * T, C)
        att = jnp.dot(att.astype(BF16), params["wo"][li],
                      preferred_element_type=jnp.float32) + params["bo"][li]
        x = x + att
        h2 = _layernorm(x, params["ln2_w"][li])
        f = _new_gelu(jnp.dot(h2.astype(BF16), params["wfc"][li],
                              preferred_element_type=jnp.float32))
        x = x + jnp.dot(f.astype(BF16), params["wpr"][li],
                        preferred_element_type=jnp.float32)
    xf = _layernorm(x, params["lnf_w"], params["lnf_b"])
    logits = jnp.dot(xf.astype(BF16), params["wlm"],
                     preferred_element_type=jnp.float32)
    return logits.reshape(B, T, VOCAB_SIZE)


# ------------------------------------ main -------------------------------------
if __name__ == "__main__":
    key = jax.random.PRNGKey(0)
    pkey, ikey = jax.random.split(key)
    params = init_params(pkey)

    idx = jax.random.randint(ikey, (BATCH, BLOCK_SIZE), 0, VOCAB_SIZE, dtype=jnp.int32)

    logits = transformer_forward(idx, params)
    logits = jax.block_until_ready(logits)

    ref = reference_forward(idx, params)
    assert logits.shape == (BATCH, BLOCK_SIZE, VOCAB_SIZE)
    assert bool(jnp.all(jnp.isfinite(logits)))
    assert bool(jnp.allclose(logits, ref, atol=5e-3, rtol=5e-3))

    # TODO(synk): targets/cross-entropy path and generate() (multinomial sampling)
    # are not part of the kernel; forward(idx, targets=None) -> logits is covered.
    print("KERNEL_OK")
</pallas_src>

<mosaic_0001>
module attributes {stable_mosaic.version = 11 : i64} {
  func.func @fused_forward_kernel(%arg0: memref<32x128xf32, #tpu.memory_space<vmem>>, %arg1: memref<2x1x128xf32, #tpu.memory_space<vmem>>, %arg2: memref<2x128x384xbf16, #tpu.memory_space<vmem>>, %arg3: memref<2x128x128xbf16, #tpu.memory_space<vmem>>, %arg4: memref<2x1x128xf32, #tpu.memory_space<vmem>>, %arg5: memref<2x1x128xf32, #tpu.memory_space<vmem>>, %arg6: memref<2x128x512xbf16, #tpu.memory_space<vmem>>, %arg7: memref<2x512x128xbf16, #tpu.memory_space<vmem>>, %arg8: memref<1x128xf32, #tpu.memory_space<vmem>>, %arg9: memref<1x128xf32, #tpu.memory_space<vmem>>, %arg10: memref<128x256xbf16, #tpu.memory_space<vmem>>, %arg11: memref<32x256xf32, #tpu.memory_space<vmem>>) attributes {dimension_semantics = [], scalar_prefetch = 0 : i64, scratch_operands = 0 : i64, tpu.core_type = #tpu.core_type<tc>} {
    %c0 = arith.constant 0 : index
    %c0_0 = arith.constant 0 : index
    %0 = vector.load %arg0[%c0, %c0_0] : memref<32x128xf32, #tpu.memory_space<vmem>>, vector<32x128xf32>
    %c0_1 = arith.constant 0 : index
    %c0_2 = arith.constant 0 : index
    %c0_3 = arith.constant 0 : index
    %1 = vector.load %arg1[%c0_1, %c0_2, %c0_3] : memref<2x1x128xf32, #tpu.memory_space<vmem>>, vector<1x1x128xf32>
    %2 = vector.shape_cast %1 : vector<1x1x128xf32> to vector<1x128xf32>
    %cst = arith.constant dense<0.000000e+00> : vector<32xf32>
    %3 = vector.multi_reduction <add>, %0, %cst [1] : vector<32x128xf32> to vector<32xf32>
    %4 = vector.shape_cast %3 : vector<32xf32> to vector<32x1xf32>
    %cst_4 = arith.constant 1.280000e+02 : f32
    %5 = vector.broadcast %cst_4 : f32 to vector<32x1xf32>
    %6 = arith.divf %4, %5 : vector<32x1xf32>
    %7 = vector.broadcast %6 : vector<32x1xf32> to vector<32x128xf32>
    %8 = arith.subf %0, %7 : vector<32x128xf32>
    %9 = arith.mulf %8, %8 : vector<32x128xf32>
    %cst_5 = arith.constant dense<0.000000e+00> : vector<32xf32>
    %10 = vector.multi_reduction <add>, %9, %cst_5 [1] : vector<32x128xf32> to vector<32xf32>
    %11 = vector.shape_cast %10 : vector<32xf32> to vector<32x1xf32>
    %cst_6 = arith.constant 1.280000e+02 : f32
    %12 = vector.broadcast %cst_6 : f32 to vector<32x1xf32>
    %13 = arith.divf %11, %12 : vector<32x1xf32>
    %14 = vector.broadcast %6 : vector<32x1xf32> to vector<32x128xf32>
    %15 = arith.subf %0, %14 : vector<32x128xf32>
    %cst_7 = arith.constant 9.99999974E-6 : f32
    %16 = vector.broadcast %cst_7 : f32 to vector<32x1xf32>
    %17 = arith.addf %13, %16 : vector<32x1xf32>
    %18 = math.rsqrt %17 : vector<32x1xf32>
    %19 = vector.broadcast %18 : vector<32x1xf32> to vector<32x128xf32>
    %20 = arith.mulf %15, %19 : vector<32x128xf32>
    %21 = vector.broadcast %2 : vector<1x128xf32> to vector<32x128xf32>
    %22 = arith.mulf %20, %21 : vector<32x128xf32>
    %23 = arith.truncf %22 : vector<32x128xf32> to vector<32x128xbf16>
    %c0_8 = arith.constant 0 : index
    %c0_9 = arith.constant 0 : index
    %c0_10 = arith.constant 0 : index
    %24 = vector.load %arg2[%c0_8, %c0_9, %c0_10] : memref<2x128x384xbf16, #tpu.memory_space<vmem>>, vector<1x128x384xbf16>
    %25 = vector.shape_cast %24 : vector<1x128x384xbf16> to vector<128x384xbf16>
    %cst_11 = arith.constant dense<0.000000e+00> : vector<32x384xf32>
    %26 = tpu.matmul %23, %25, %cst_11 {dimension_numbers = #tpu.dot_dimension_numbers<[1], [0], [0], [1], [0, 0, 1, 1], [], []>} : vector<32x128xbf16>, vector<128x384xbf16>, vector<32x384xf32> -> vector<32x384xf32>
    %27 = vector.extract_strided_slice %26 {offsets = [0, 0], sizes = [32, 128], strides = [1, 1]} : vector<32x384xf32> to vector<32x128xf32>
    %28 = vector.shape_cast %27 : vector<32x128xf32> to vector<2x16x128xf32>
    %29 = vector.extract_strided_slice %26 {offsets = [0, 128], sizes = [32, 128], strides = [1, 1]} : vector<32x384xf32> to vector<32x128xf32>
    %30 = vector.shape_cast %29 : vector<32x128xf32> to vector<2x16x128xf32>
    %31 = vector.extract_strided_slice %26 {offsets = [0, 256], sizes = [32, 128], strides = [1, 1]} : vector<32x384xf32> to vector<32x128xf32>
    %32 = vector.shape_cast %31 : vector<32x128xf32> to vector<2x16x128xf32>
    %33 = vector.extract_strided_slice %28 {offsets = [0, 0, 0], sizes = [2, 16, 32], strides = [1, 1, 1]} : vector<2x16x128xf32> to vector<2x16x32xf32>
    %34 = arith.truncf %33 : vector<2x16x32xf32> to vector<2x16x32xbf16>
    %35 = vector.extract_strided_slice %30 {offsets = [0, 0, 0], sizes = [2, 16, 32], strides = [1, 1, 1]} : vector<2x16x128xf32> to vector<2x16x32xf32>
    %36 = arith.truncf %35 : vector<2x16x32xf32> to vector<2x16x32xbf16>
    "tpu.trace_start"() <{level = 10 : i32, message = "bqd,bkd->bqk"}> : () -> ()
    %cst_12 = arith.constant dense<0.000000e+00> : vector<2x16x16xf32>
    %37 = tpu.matmul %34, %36, %cst_12 {dimension_numbers = #tpu.dot_dimension_numbers<[2], [2], [1], [1], [0, 0, 0, 1, 1, 1], [0], [0]>} : vector<2x16x32xbf16>, vector<2x16x32xbf16>, vector<2x16x16xf32> -> vector<2x16x16xf32>
    "tpu.trace_stop"() : () -> ()
    %cst_13 = arith.constant 0.0883883461 : f32
    %38 = vector.broadcast %cst_13 : f32 to vector<2x16x16xf32>
    %39 = arith.mulf %37, %38 : vector<2x16x16xf32>
    %cst_14 = arith.constant dense<0xFF800000> : vector<2x16xf32>
    %40 = vector.multi_reduction <maximumf>, %39, %cst_14 [2] : vector<2x16x16xf32> to vector<2x16xf32>
    %41 = vector.shape_cast %40 : vector<2x16xf32> to vector<2x16x1xf32>
    %42 = vector.broadcast %41 : vector<2x16x1xf32> to vector<2x16x16xf32>
    %43 = arith.subf %39, %42 : vector<2x16x16xf32>
    %44 = math.exp %43 : vector<2x16x16xf32>
    %cst_15 = arith.constant dense<0.000000e+00> : vector<2x16xf32>
    %45 = vector.multi_reduction <add>, %44, %cst_15 [2] : vector<2x16x16xf32> to vector<2x16xf32>
    %46 = vector.shape_cast %45 : vector<2x16xf32> to vector<2x16x1xf32>
    %47 = tpu.reciprocal %46 {approx = true} : vector<2x16x1xf32> -> vector<2x16x1xf32>
    %48 = vector.broadcast %47 : vector<2x16x1xf32> to vector<2x16x16xf32>
    %49 = arith.mulf %44, %48 : vector<2x16x16xf32>
    %50 = arith.truncf %49 : vector<2x16x16xf32> to vector<2x16x16xbf16>
    %51 = vector.extract_strided_slice %32 {offsets = [0, 0, 0], sizes = [2, 16, 32], strides = [1, 1, 1]} : vector<2x16x128xf32> to vector<2x16x32xf32>
    %52 = arith.truncf %51 : vector<2x16x32xf32> to vector<2x16x32xbf16>
    "tpu.trace_start"() <{level = 10 : i32, message = "bqk,bkd->bqd"}> : () -> ()
    %cst_16 = arith.constant dense<0.000000e+00> : vector<2x16x32xf32>
    %53 = tpu.matmul %50, %52, %cst_16 {dimension_numbers = #tpu.dot_dimension_numbers<[2], [1], [1], [2], [0, 0, 0, 1, 1, 2], [0], [0]>} : vector<2x16x16xbf16>, vector<2x16x32xbf16>, vector<2x16x32xf32> -> vector<2x16x32xf32>
    "tpu.trace_stop"() : () -> ()
    %54 = vector.extract_strided_slice %28 {offsets = [0, 0, 32], sizes = [2, 16, 32], strides = [1, 1, 1]} : vector<2x16x128xf32> to vector<2x16x32xf32>
    %55 = arith.truncf %54 : vector<2x16x32xf32> to vector<2x16x32xbf16>
    %56 = vector.extract_strided_slice %30 {offsets = [0, 0, 32], sizes = [2, 16, 32], strides = [1, 1, 1]} : vector<2x16x128xf32> to vector<2x16x32xf32>
    %57 = arith.truncf %56 : vector<2x16x32xf32> to vector<2x16x32xbf16>
    "tpu.trace_start"() <{level = 10 : i32, message = "bqd,bkd->bqk"}> : () -> ()
    %cst_17 = arith.constant dense<0.000000e+00> : vector<2x16x16xf32>
    %58 = tpu.matmul %55, %57, %cst_17 {dimension_numbers = #tpu.dot_dimension_numbers<[2], [2], [1], [1], [0, 0, 0, 1, 1, 1], [0], [0]>} : vector<2x16x32xbf16>, vector<2x16x32xbf16>, vector<2x16x16xf32> -> vector<2x16x16xf32>
    "tpu.trace_stop"() : () -> ()
    %cst_18 = arith.constant 0.0883883461 : f32
    %59 = vector.broadcast %cst_18 : f32 to vector<2x16x16xf32>
    %60 = arith.mulf %58, %59 : vector<2x16x16xf32>
    %cst_19 = arith.constant dense<0xFF800000> : vector<2x16xf32>
    %61 = vector.multi_reduction <maximumf>, %60, %cst_19 [2] : vector<2x16x16xf32> to vector<2x16xf32>
    %62 = vector.shape_cast %61 : vector<2x16xf32> to vector<2x16x1xf32>
    %63 = vector.broadcast %62 : vector<2x16x1xf32> to vector<2x16x16xf32>
    %64 = arith.subf %60, %63 : vector<2x16x16xf32>
    %65 = math.exp %64 : vector<2x16x16xf32>
    %cst_20 = arith.constant dense<0.000000e+00> : vector<2x16xf32>
    %66 = vector.multi_reduction <add>, %65, %cst_20 [2] : vector<2x16x16xf32> to vector<2x16xf32>
    %67 = vector.shape_cast %66 : vector<2x16xf32> to vector<2x16x1xf32>
    %68 = tpu.reciprocal %67 {approx = true} : vector<2x16x1xf32> -> vector<2x16x1xf32>
    %69 = vector.broadcast %68 : vector<2x16x1xf32> to vector<2x16x16xf32>
    %70 = arith.mulf %65, %69 : vector<2x16x16xf32>
    %71 = arith.truncf %70 : vector<2x16x16xf32> to vector<2x16x16xbf16>
    %72 = vector.extract_strided_slice %32 {offsets = [0, 0, 32], sizes = [2, 16, 32], strides = [1, 1, 1]} : vector<2x16x128xf32> to vector<2x16x32xf32>
    %73 = arith.truncf %72 : vector<2x16x32xf32> to vector<2x16x32xbf16>
    "tpu.trace_start"() <{level = 10 : i32, message = "bqk,bkd->bqd"}> : () -> ()
    %cst_21 = arith.constant dense<0.000000e+00> : vector<2x16x32xf32>
    %74 = tpu.matmul %71, %73, %cst_21 {dimension_numbers = #tpu.dot_dimension_numbers<[2], [1], [1], [2], [0, 0, 0, 1, 1, 2], [0], [0]>} : vector<2x16x16xbf16>, vector<2x16x32xbf16>, vector<2x16x32xf32> -> vector<2x16x32xf32>
    "tpu.trace_stop"() : () -> ()
    %75 = vector.extract_strided_slice %28 {offsets = [0, 0, 64], sizes = [2, 16, 32], strides = [1, 1, 1]} : vector<2x16x128xf32> to vector<2x16x32xf32>
    %76 = arith.truncf %75 : vector<2x16x32xf32> to vector<2x16x32xbf16>
    %77 = vector.extract_strided_slice %30 {offsets = [0, 0, 64], sizes = [2, 16, 32], strides = [1, 1, 1]} : vector<2x16x128xf32> to vector<2x16x32xf32>
    %78 = arith.truncf %77 : vector<2x16x32xf32> to vector<2x16x32xbf16>
    "tpu.trace_start"() <{level = 10 : i32, message = "bqd,bkd->bqk"}> : () -> ()
    %cst_22 = arith.constant dense<0.000000e+00> : vector<2x16x16xf32>
    %79 = tpu.matmul %76, %78, %cst_22 {dimension_numbers = #tpu.dot_dimension_numbers<[2], [2], [1], [1], [0, 0, 0, 1, 1, 1], [0], [0]>} : vector<2x16x32xbf16>, vector<2x16x32xbf16>, vector<2x16x16xf32> -> vector<2x16x16xf32>
    "tpu.trace_stop"() : () -> ()
    %cst_23 = arith.constant 0.0883883461 : f32
    %80 = vector.broadcast %cst_23 : f32 to vector<2x16x16xf32>
    %81 = arith.mulf %79, %80 : vector<2x16x16xf32>
    %cst_24 = arith.constant dense<0xFF800000> : vector<2x16xf32>
    %82 = vector.multi_reduction <maximumf>, %81, %cst_24 [2] : vector<2x16x16xf32> to vector<2x16xf32>
    %83 = vector.shape_cast %82 : vector<2x16xf32> to vector<2x16x1xf32>
    %84 = vector.broadcast %83 : vector<2x16x1xf32> to vector<2x16x16xf32>
    %85 = arith.subf %81, %84 : vector<2x16x16xf32>
    %86 = math.exp %85 : vector<2x16x16xf32>
    %cst_25 = arith.constant dense<0.000000e+00> : vector<2x16xf32>
    %87 = vector.multi_reduction <add>, %86, %cst_25 [2] : vector<2x16x16xf32> to vector<2x16xf32>
    %88 = vector.shape_cast %87 : vector<2x16xf32> to vector<2x16x1xf32>
    %89 = tpu.reciprocal %88 {approx = true} : vector<2x16x1xf32> -> vector<2x16x1xf32>
    %90 = vector.broadcast %89 : vector<2x16x1xf32> to vector<2x16x16xf32>
    %91 = arith.mulf %86, %90 : vector<2x16x16xf32>
    %92 = arith.truncf %91 : vector<2x16x16xf32> to vector<2x16x16xbf16>
    %93 = vector.extract_strided_slice %32 {offsets = [0, 0, 64], sizes = [2, 16, 32], strides = [1, 1, 1]} : vector<2x16x128xf32> to vector<2x16x32xf32>
    %94 = arith.truncf %93 : vector<2x16x32xf32> to vector<2x16x32xbf16>
    "tpu.trace_start"() <{level = 10 : i32, message = "bqk,bkd->bqd"}> : () -> ()
    %cst_26 = arith.constant dense<0.000000e+00> : vector<2x16x32xf32>
    %95 = tpu.matmul %92, %94, %cst_26 {dimension_numbers = #tpu.dot_dimension_numbers<[2], [1], [1], [2], [0, 0, 0, 1, 1, 2], [0], [0]>} : vector<2x16x16xbf16>, vector<2x16x32xbf16>, vector<2x16x32xf32> -> vector<2x16x32xf32>
    "tpu.trace_stop"() : () -> ()
    %96 = vector.extract_strided_slice %28 {offsets = [0, 0, 96], sizes = [2, 16, 32], strides = [1, 1, 1]} : vector<2x16x128xf32> to vector<2x16x32xf32>
    %97 = arith.truncf %96 : vector<2x16x32xf32> to vector<2x16x32xbf16>
    %98 = vector.extract_strided_slice %30 {offsets = [0, 0, 96], sizes = [2, 16, 32], strides = [1, 1, 1]} : vector<2x16x128xf32> to vector<2x16x32xf32>
    %99 = arith.truncf %98 : vector<2x16x32xf32> to vector<2x16x32xbf16>
    "tpu.trace_start"() <{level = 10 : i32, message = "bqd,bkd->bqk"}> : () -> ()
    %cst_27 = arith.constant dense<0.000000e+00> : vector<2x16x16xf32>
    %100 = tpu.matmul %97, %99, %cst_27 {dimension_numbers = #tpu.dot_dimension_numbers<[2], [2], [1], [1], [0, 0, 0, 1, 1, 1], [0], [0]>} : vector<2x16x32xbf16>, vector<2x16x32xbf16>, vector<2x16x16xf32> -> vector<2x16x16xf32>
    "tpu.trace_stop"() : () -> ()
    %cst_28 = arith.constant 0.0883883461 : f32
    %101 = vector.broadcast %cst_28 : f32 to vector<2x16x16xf32>
    %102 = arith.mulf %100, %101 : vector<2x16x16xf32>
    %cst_29 = arith.constant dense<0xFF800000> : vector<2x16xf32>
    %103 = vector.multi_reduction <maximumf>, %102, %cst_29 [2] : vector<2x16x16xf32> to vector<2x16xf32>
    %104 = vector.shape_cast %103 : vector<2x16xf32> to vector<2x16x1xf32>
    %105 = vector.broadcast %104 : vector<2x16x1xf32> to vector<2x16x16xf32>
    %106 = arith.subf %102, %105 : vector<2x16x16xf32>
    %107 = math.exp %106 : vector<2x16x16xf32>
    %cst_30 = arith.constant dense<0.000000e+00> : vector<2x16xf32>
    %108 = vector.multi_reduction <add>, %107, %cst_30 [2] : vector<2x16x16xf32> to vector<2x16xf32>
    %109 = vector.shape_cast %108 : vector<2x16xf32> to vector<2x16x1xf32>
    %110 = tpu.reciprocal %109 {approx = true} : vector<2x16x1xf32> -> vector<2x16x1xf32>
    %111 = vector.broadcast %110 : vector<2x16x1xf32> to vector<2x16x16xf32>
    %112 = arith.mulf %107, %111 : vector<2x16x16xf32>
    %113 = arith.truncf %112 : vector<2x16x16xf32> to vector<2x16x16xbf16>
    %114 = vector.extract_strided_slice %32 {offsets = [0, 0, 96], sizes = [2, 16, 32], strides = [1, 1, 1]} : vector<2x16x128xf32> to vector<2x16x32xf32>
    %115 = arith.truncf %114 : vector<2x16x32xf32> to vector<2x16x32xbf16>
    "tpu.trace_start"() <{level = 10 : i32, message = "bqk,bkd->bqd"}> : () -> ()
    %cst_31 = arith.constant dense<0.000000e+00> : vector<2x16x32xf32>
    %116 = tpu.matmul %113, %115, %cst_31 {dimension_numbers = #tpu.dot_dimension_numbers<[2], [1], [1], [2], [0, 0, 0, 1, 1, 2], [0], [0]>} : vector<2x16x16xbf16>, vector<2x16x32xbf16>, vector<2x16x32xf32> -> vector<2x16x32xf32>
    "tpu.trace_stop"() : () -> ()
    %117 = tpu.concatenate %53, %74, %95, %116 in 2 : vector<2x16x32xf32>, vector<2x16x32xf32>, vector<2x16x32xf32>, vector<2x16x32xf32> -> vector<2x16x128xf32>
    %118 = vector.shape_cast %117 : vector<2x16x128xf32> to vector<32x128xf32>
    %119 = arith.truncf %118 : vector<32x128xf32> to vector<32x128xbf16>
    %c0_32 = arith.constant 0 : index
    %c0_33 = arith.constant 0 : index
    %c0_34 = arith.constant 0 : index
    %120 = vector.load %arg3[%c0_32, %c0_33, %c0_34] : memref<2x128x128xbf16, #tpu.memory_space<vmem>>, vector<1x128x128xbf16>
    %121 = vector.shape_cast %120 : vector<1x128x128xbf16> to vector<128x128xbf16>
    %cst_35 = arith.constant dense<0.000000e+00> : vector<32x128xf32>
    %122 = tpu.matmul %119, %121, %cst_35 {dimension_numbers = #tpu.dot_dimension_numbers<[1], [0], [0], [1], [0, 0, 1, 1], [], []>} : vector<32x128xbf16>, vector<128x128xbf16>, vector<32x128xf32> -> vector<32x128xf32>
    %c0_36 = arith.constant 0 : index
    %c0_37 = arith.constant 0 : index
    %c0_38 = arith.constant 0 : index
    %123 = vector.load %arg4[%c0_36, %c0_37, %c0_38] : memref<2x1x128xf32, #tpu.memory_space<vmem>>, vector<1x1x128xf32>
    %124 = vector.shape_cast %123 : vector<1x1x128xf32> to vector<1x128xf32>
    %125 = vector.broadcast %124 : vector<1x128xf32> to vector<32x128xf32>
    %126 = arith.addf %122, %125 : vector<32x128xf32>
    %127 = arith.addf %0, %126 : vector<32x128xf32>
    %c0_39 = arith.constant 0 : index
    %c0_40 = arith.constant 0 : index
    %c0_41 = arith.constant 0 : index
    %128 = vector.load %arg5[%c0_39, %c0_40, %c0_41] : memref<2x1x128xf32, #tpu.memory_space<vmem>>, vector<1x1x128xf32>
    %129 = vector.shape_cast %128 : vector<1x1x128xf32> to vector<1x128xf32>
    %cst_42 = arith.constant dense<0.000000e+00> : vector<32xf32>
    %130 = vector.multi_reduction <add>, %127, %cst_42 [1] : vector<32x128xf32> to vector<32xf32>
    %131 = vector.shape_cast %130 : vector<32xf32> to vector<32x1xf32>
    %cst_43 = arith.constant 1.280000e+02 : f32
    %132 = vector.broadcast %cst_43 : f32 to vector<32x1xf32>
    %133 = arith.divf %131, %132 : vector<32x1xf32>
    %134 = vector.broadcast %133 : vector<32x1xf32> to vector<32x128xf32>
    %135 = arith.subf %127, %134 : vector<32x128xf32>
    %136 = arith.mulf %135, %135 : vector<32x128xf32>
    %cst_44 = arith.constant dense<0.000000e+00> : vector<32xf32>
    %137 = vector.multi_reduction <add>, %136, %cst_44 [1] : vector<32x128xf32> to vector<32xf32>
    %138 = vector.shape_cast %137 : vector<32xf32> to vector<32x1xf32>
    %cst_45 = arith.constant 1.280000e+02 : f32
    %139 = vector.broadcast %cst_45 : f32 to vector<32x1xf32>
    %140 = arith.divf %138, %139 : vector<32x1xf32>
    %141 = vector.broadcast %133 : vector<32x1xf32> to vector<32x128xf32>
    %142 = arith.subf %127, %141 : vector<32x128xf32>
    %cst_46 = arith.constant 9.99999974E-6 : f32
    %143 = vector.broadcast %cst_46 : f32 to vector<32x1xf32>
    %144 = arith.addf %140, %143 : vector<32x1xf32>
    %145 = math.rsqrt %144 : vector<32x1xf32>
    %146 = vector.broadcast %145 : vector<32x1xf32> to vector<32x128xf32>
    %147 = arith.mulf %142, %146 : vector<32x128xf32>
    %148 = vector.broadcast %129 : vector<1x128xf32> to vector<32x128xf32>
    %149 = arith.mulf %147, %148 : vector<32x128xf32>
    %150 = arith.truncf %149 : vector<32x128xf32> to vector<32x128xbf16>
    %c0_47 = arith.constant 0 : index
    %c0_48 = arith.constant 0 : index
    %c0_49 = arith.constant 0 : index
    %151 = vector.load %arg6[%c0_47, %c0_48, %c0_49] : memref<2x128x512xbf16, #tpu.memory_space<vmem>>, vector<1x128x512xbf16>
    %152 = vector.shape_cast %151 : vector<1x128x512xbf16> to vector<128x512xbf16>
    %cst_50 = arith.constant dense<0.000000e+00> : vector<32x512xf32>
    %153 = tpu.matmul %150, %152, %cst_50 {dimension_numbers = #tpu.dot_dimension_numbers<[1], [0], [0], [1], [0, 0, 1, 1], [], []>} : vector<32x128xbf16>, vector<128x512xbf16>, vector<32x512xf32> -> vector<32x512xf32>
    %cst_51 = arith.constant 5.000000e-01 : f32
    %154 = vector.broadcast %cst_51 : f32 to vector<32x512xf32>
    %155 = arith.mulf %154, %153 : vector<32x512xf32>
    %156 = arith.mulf %153, %153 : vector<32x512xf32>
    %157 = arith.mulf %153, %156 : vector<32x512xf32>
    %cst_52 = arith.constant 4.471500e-02 : f32
    %158 = vector.broadcast %cst_52 : f32 to vector<32x512xf32>
    %159 = arith.mulf %158, %157 : vector<32x512xf32>
    %160 = arith.addf %153, %159 : vector<32x512xf32>
    %cst_53 = arith.constant 0.797884583 : f32
    %161 = vector.broadcast %cst_53 : f32 to vector<32x512xf32>
    %162 = arith.mulf %161, %160 : vector<32x512xf32>
    %163 = math.tanh %162 : vector<32x512xf32>
    %cst_54 = arith.constant 1.000000e+00 : f32
    %164 = vector.broadcast %cst_54 : f32 to vector<32x512xf32>
    %165 = arith.addf %164, %163 : vector<32x512xf32>
    %166 = arith.mulf %155, %165 : vector<32x512xf32>
    %167 = arith.truncf %166 : vector<32x512xf32> to vector<32x512xbf16>
    %c0_55 = arith.constant 0 : index
    %c0_56 = arith.constant 0 : index
    %c0_57 = arith.constant 0 : index
    %168 = vector.load %arg7[%c0_55, %c0_56, %c0_57] : memref<2x512x128xbf16, #tpu.memory_space<vmem>>, vector<1x512x128xbf16>
    %169 = vector.shape_cast %168 : vector<1x512x128xbf16> to vector<512x128xbf16>
    %cst_58 = arith.constant dense<0.000000e+00> : vector<32x128xf32>
    %170 = tpu.matmul %167, %169, %cst_58 {dimension_numbers = #tpu.dot_dimension_numbers<[1], [0], [0], [1], [0, 0, 1, 1], [], []>} : vector<32x512xbf16>, vector<512x128xbf16>, vector<32x128xf32> -> vector<32x128xf32>
    %171 = arith.addf %127, %170 : vector<32x128xf32>
    %c1 = arith.constant 1 : index
    %c0_59 = arith.constant 0 : index
    %c0_60 = arith.constant 0 : index
    %172 = vector.load %arg1[%c1, %c0_59, %c0_60] : memref<2x1x128xf32, #tpu.memory_space<vmem>>, vector<1x1x128xf32>
    %173 = vector.shape_cast %172 : vector<1x1x128xf32> to vector<1x128xf32>
    %cst_61 = arith.constant dense<0.000000e+00> : vector<32xf32>
    %174 = vector.multi_reduction <add>, %171, %cst_61 [1] : vector<32x128xf32> to vector<32xf32>
    %175 = vector.shape_cast %174 : vector<32xf32> to vector<32x1xf32>
    %cst_62 = arith.constant 1.280000e+02 : f32
    %176 = vector.broadcast %cst_62 : f32 to vector<32x1xf32>
    %177 = arith.divf %175, %176 : vector<32x1xf32>
    %178 = vector.broadcast %177 : vector<32x1xf32> to vector<32x128xf32>
    %179 = arith.subf %171, %178 : vector<32x128xf32>
    %180 = arith.mulf %179, %179 : vector<32x128xf32>
    %cst_63 = arith.constant dense<0.000000e+00> : vector<32xf32>
    %181 = vector.multi_reduction <add>, %180, %cst_63 [1] : vector<32x128xf32> to vector<32xf32>
    %182 = vector.shape_cast %181 : vector<32xf32> to vector<32x1xf32>
    %cst_64 = arith.constant 1.280000e+02 : f32
    %183 = vector.broadcast %cst_64 : f32 to vector<32x1xf32>
    %184 = arith.divf %182, %183 : vector<32x1xf32>
    %185 = vector.broadcast %177 : vector<32x1xf32> to vector<32x128xf32>
    %186 = arith.subf %171, %185 : vector<32x128xf32>
    %cst_65 = arith.constant 9.99999974E-6 : f32
    %187 = vector.broadcast %cst_65 : f32 to vector<32x1xf32>
    %188 = arith.addf %184, %187 : vector<32x1xf32>
    %189 = math.rsqrt %188 : vector<32x1xf32>
    %190 = vector.broadcast %189 : vector<32x1xf32> to vector<32x128xf32>
    %191 = arith.mulf %186, %190 : vector<32x128xf32>
    %192 = vector.broadcast %173 : vector<1x128xf32> to vector<32x128xf32>
    %193 = arith.mulf %191, %192 : vector<32x128xf32>
    %194 = arith.truncf %193 : vector<32x128xf32> to vector<32x128xbf16>
    %c1_66 = arith.constant 1 : index
    %c0_67 = arith.constant 0 : index
    %c0_68 = arith.constant 0 : index
    %195 = vector.load %arg2[%c1_66, %c0_67, %c0_68] : memref<2x128x384xbf16, #tpu.memory_space<vmem>>, vector<1x128x384xbf16>
    %196 = vector.shape_cast %195 : vector<1x128x384xbf16> to vector<128x384xbf16>
    %cst_69 = arith.constant dense<0.000000e+00> : vector<32x384xf32>
    %197 = tpu.matmul %194, %196, %cst_69 {dimension_numbers = #tpu.dot_dimension_numbers<[1], [0], [0], [1], [0, 0, 1, 1], [], []>} : vector<32x128xbf16>, vector<128x384xbf16>, vector<32x384xf32> -> vector<32x384xf32>
    %198 = vector.extract_strided_slice %197 {offsets = [0, 0], sizes = [32, 128], strides = [1, 1]} : vector<32x384xf32> to vector<32x128xf32>
    %199 = vector.shape_cast %198 : vector<32x128xf32> to vector<2x16x128xf32>
    %200 = vector.extract_strided_slice %197 {offsets = [0, 128], sizes = [32, 128], strides = [1, 1]} : vector<32x384xf32> to vector<32x128xf32>
    %201 = vector.shape_cast %200 : vector<32x128xf32> to vector<2x16x128xf32>
    %202 = vector.extract_strided_slice %197 {offsets = [0, 256], sizes = [32, 128], strides = [1, 1]} : vector<32x384xf32> to vector<32x128xf32>
    %203 = vector.shape_cast %202 : vector<32x128xf32> to vector<2x16x128xf32>
    %204 = vector.extract_strided_slice %199 {offsets = [0, 0, 0], sizes = [2, 16, 32], strides = [1, 1, 1]} : vector<2x16x128xf32> to vector<2x16x32xf32>
    %205 = arith.truncf %204 : vector<2x16x32xf32> to vector<2x16x32xbf16>
    %206 = vector.extract_strided_slice %201 {offsets = [0, 0, 0], sizes = [2, 16, 32], strides = [1, 1, 1]} : vector<2x16x128xf32> to vector<2x16x32xf32>
    %207 = arith.truncf %206 : vector<2x16x32xf32> to vector<2x16x32xbf16>
    "tpu.trace_start"() <{level = 10 : i32, message = "bqd,bkd->bqk"}> : () -> ()
    %cst_70 = arith.constant dense<0.000000e+00> : vector<2x16x16xf32>
    %208 = tpu.matmul %205, %207, %cst_70 {dimension_numbers = #tpu.dot_dimension_numbers<[2], [2], [1], [1], [0, 0, 0, 1, 1, 1], [0], [0]>} : vector<2x16x32xbf16>, vector<2x16x32xbf16>, vector<2x16x16xf32> -> vector<2x16x16xf32>
    "tpu.trace_stop"() : () -> ()
    %cst_71 = arith.constant 0.0883883461 : f32
    %209 = vector.broadcast %cst_71 : f32 to vector<2x16x16xf32>
    %210 = arith.mulf %208, %209 : vector<2x16x16xf32>
    %cst_72 = arith.constant dense<0xFF800000> : vector<2x16xf32>
    %211 = vector.multi_reduction <maximumf>, %210, %cst_72 [2] : vector<2x16x16xf32> to vector<2x16xf32>
    %212 = vector.shape_cast %211 : vector<2x16xf32> to vector<2x16x1xf32>
    %213 = vector.broadcast %212 : vector<2x16x1xf32> to vector<2x16x16xf32>
    %214 = arith.subf %210, %213 : vector<2x16x16xf32>
    %215 = math.exp %214 : vector<2x16x16xf32>
    %cst_73 = arith.constant dense<0.000000e+00> : vector<2x16xf32>
    %216 = vector.multi_reduction <add>, %215, %cst_73 [2] : vector<2x16x16xf32> to vector<2x16xf32>
    %217 = vector.shape_cast %216 : vector<2x16xf32> to vector<2x16x1xf32>
    %218 = tpu.reciprocal %217 {approx = true} : vector<2x16x1xf32> -> vector<2x16x1xf32>
    %219 = vector.broadcast %218 : vector<2x16x1xf32> to vector<2x16x16xf32>
    %220 = arith.mulf %215, %219 : vector<2x16x16xf32>
    %221 = arith.truncf %220 : vector<2x16x16xf32> to vector<2x16x16xbf16>
    %222 = vector.extract_strided_slice %203 {offsets = [0, 0, 0], sizes = [2, 16, 32], strides = [1, 1, 1]} : vector<2x16x128xf32> to vector<2x16x32xf32>
    %223 = arith.truncf %222 : vector<2x16x32xf32> to vector<2x16x32xbf16>
    "tpu.trace_start"() <{level = 10 : i32, message = "bqk,bkd->bqd"}> : () -> ()
    %cst_74 = arith.constant dense<0.000000e+00> : vector<2x16x32xf32>
    %224 = tpu.matmul %221, %223, %cst_74 {dimension_numbers = #tpu.dot_dimension_numbers<[2], [1], [1], [2], [0, 0, 0, 1, 1, 2], [0], [0]>} : vector<2x16x16xbf16>, vector<2x16x32xbf16>, vector<2x16x32xf32> -> vector<2x16x32xf32>
    "tpu.trace_stop"() : () -> ()
    %225 = vector.extract_strided_slice %199 {offsets = [0, 0, 32], sizes = [2, 16, 32], strides = [1, 1, 1]} : vector<2x16x128xf32> to vector<2x16x32xf32>
    %226 = arith.truncf %225 : vector<2x16x32xf32> to vector<2x16x32xbf16>
    %227 = vector.extract_strided_slice %201 {offsets = [0, 0, 32], sizes = [2, 16, 32], strides = [1, 1, 1]} : vector<2x16x128xf32> to vector<2x16x32xf32>
    %228 = arith.truncf %227 : vector<2x16x32xf32> to vector<2x16x32xbf16>
    "tpu.trace_start"() <{level = 10 : i32, message = "bqd,bkd->bqk"}> : () -> ()
    %cst_75 = arith.constant dense<0.000000e+00> : vector<2x16x16xf32>
    %229 = tpu.matmul %226, %228, %cst_75 {dimension_numbers = #tpu.dot_dimension_numbers<[2], [2], [1], [1], [0, 0, 0, 1, 1, 1], [0], [0]>} : vector<2x16x32xbf16>, vector<2x16x32xbf16>, vector<2x16x16xf32> -> vector<2x16x16xf32>
    "tpu.trace_stop"() : () -> ()
    %cst_76 = arith.constant 0.0883883461 : f32
    %230 = vector.broadcast %cst_76 : f32 to vector<2x16x16xf32>
    %231 = arith.mulf %229, %230 : vector<2x16x16xf32>
    %cst_77 = arith.constant dense<0xFF800000> : vector<2x16xf32>
    %232 = vector.multi_reduction <maximumf>, %231, %cst_77 [2] : vector<2x16x16xf32> to vector<2x16xf32>
    %233 = vector.shape_cast %232 : vector<2x16xf32> to vector<2x16x1xf32>
    %234 = vector.broadcast %233 : vector<2x16x1xf32> to vector<2x16x16xf32>
    %235 = arith.subf %231, %234 : vector<2x16x16xf32>
    %236 = math.exp %235 : vector<2x16x16xf32>
    %cst_78 = arith.constant dense<0.000000e+00> : vector<2x16xf32>
    %237 = vector.multi_reduction <add>, %236, %cst_78 [2] : vector<2x16x16xf32> to vector<2x16xf32>
    %238 = vector.shape_cast %237 : vector<2x16xf32> to vector<2x16x1xf32>
    %239 = tpu.reciprocal %238 {approx = true} : vector<2x16x1xf32> -> vector<2x16x1xf32>
    %240 = vector.broadcast %239 : vector<2x16x1xf32> to vector<2x16x16xf32>
    %241 = arith.mulf %236, %240 : vector<2x16x16xf32>
    %242 = arith.truncf %241 : vector<2x16x16xf32> to vector<2x16x16xbf16>
    %243 = vector.extract_strided_slice %203 {offsets = [0, 0, 32], sizes = [2, 16, 32], strides = [1, 1, 1]} : vector<2x16x128xf32> to vector<2x16x32xf32>
    %244 = arith.truncf %243 : vector<2x16x32xf32> to vector<2x16x32xbf16>
    "tpu.trace_start"() <{level = 10 : i32, message = "bqk,bkd->bqd"}> : () -> ()
    %cst_79 = arith.constant dense<0.000000e+00> : vector<2x16x32xf32>
    %245 = tpu.matmul %242, %244, %cst_79 {dimension_numbers = #tpu.dot_dimension_numbers<[2], [1], [1], [2], [0, 0, 0, 1, 1, 2], [0], [0]>} : vector<2x16x16xbf16>, vector<2x16x32xbf16>, vector<2x16x32xf32> -> vector<2x16x32xf32>
    "tpu.trace_stop"() : () -> ()
    %246 = vector.extract_strided_slice %199 {offsets = [0, 0, 64], sizes = [2, 16, 32], strides = [1, 1, 1]} : vector<2x16x128xf32> to vector<2x16x32xf32>
    %247 = arith.truncf %246 : vector<2x16x32xf32> to vector<2x16x32xbf16>
    %248 = vector.extract_strided_slice %201 {offsets = [0, 0, 64], sizes = [2, 16, 32], strides = [1, 1, 1]} : vector<2x16x128xf32> to vector<2x16x32xf32>
    %249 = arith.truncf %248 : vector<2x16x32xf32> to vector<2x16x32xbf16>
    "tpu.trace_start"() <{level = 10 : i32, message = "bqd,bkd->bqk"}> : () -> ()
    %cst_80 = arith.constant dense<0.000000e+00> : vector<2x16x16xf32>
    %250 = tpu.matmul %247, %249, %cst_80 {dimension_numbers = #tpu.dot_dimension_numbers<[2], [2], [1], [1], [0, 0, 0, 1, 1, 1], [0], [0]>} : vector<2x16x32xbf16>, vector<2x16x32xbf16>, vector<2x16x16xf32> -> vector<2x16x16xf32>
    "tpu.trace_stop"() : () -> ()
    %cst_81 = arith.constant 0.0883883461 : f32
    %251 = vector.broadcast %cst_81 : f32 to vector<2x16x16xf32>
    %252 = arith.mulf %250, %251 : vector<2x16x16xf32>
    %cst_82 = arith.constant dense<0xFF800000> : vector<2x16xf32>
    %253 = vector.multi_reduction <maximumf>, %252, %cst_82 [2] : vector<2x16x16xf32> to vector<2x16xf32>
    %254 = vector.shape_cast %253 : vector<2x16xf32> to vector<2x16x1xf32>
    %255 = vector.broadcast %254 : vector<2x16x1xf32> to vector<2x16x16xf32>
    %256 = arith.subf %252, %255 : vector<2x16x16xf32>
    %257 = math.exp %256 : vector<2x16x16xf32>
    %cst_83 = arith.constant dense<0.000000e+00> : vector<2x16xf32>
    %258 = vector.multi_reduction <add>, %257, %cst_83 [2] : vector<2x16x16xf32> to vector<2x16xf32>
    %259 = vector.shape_cast %258 : vector<2x16xf32> to vector<2x16x1xf32>
    %260 = tpu.reciprocal %259 {approx = true} : vector<2x16x1xf32> -> vector<2x16x1xf32>
    %261 = vector.broadcast %260 : vector<2x16x1xf32> to vector<2x16x16xf32>
    %262 = arith.mulf %257, %261 : vector<2x16x16xf32>
    %263 = arith.truncf %262 : vector<2x16x16xf32> to vector<2x16x16xbf16>
    %264 = vector.extract_strided_slice %203 {offsets = [0, 0, 64], sizes = [2, 16, 32], strides = [1, 1, 1]} : vector<2x16x128xf32> to vector<2x16x32xf32>
    %265 = arith.truncf %264 : vector<2x16x32xf32> to vector<2x16x32xbf16>
    "tpu.trace_start"() <{level = 10 : i32, message = "bqk,bkd->bqd"}> : () -> ()
    %cst_84 = arith.constant dense<0.000000e+00> : vector<2x16x32xf32>
    %266 = tpu.matmul %263, %265, %cst_84 {dimension_numbers = #tpu.dot_dimension_numbers<[2], [1], [1], [2], [0, 0, 0, 1, 1, 2], [0], [0]>} : vector<2x16x16xbf16>, vector<2x16x32xbf16>, vector<2x16x32xf32> -> vector<2x16x32xf32>
    "tpu.trace_stop"() : () -> ()
    %267 = vector.extract_strided_slice %199 {offsets = [0, 0, 96], sizes = [2, 16, 32], strides = [1, 1, 1]} : vector<2x16x128xf32> to vector<2x16x32xf32>
    %268 = arith.truncf %267 : vector<2x16x32xf32> to vector<2x16x32xbf16>
    %269 = vector.extract_strided_slice %201 {offsets = [0, 0, 96], sizes = [2, 16, 32], strides = [1, 1, 1]} : vector<2x16x128xf32> to vector<2x16x32xf32>
    %270 = arith.truncf %269 : vector<2x16x32xf32> to vector<2x16x32xbf16>
    "tpu.trace_start"() <{level = 10 : i32, message = "bqd,bkd->bqk"}> : () -> ()
    %cst_85 = arith.constant dense<0.000000e+00> : vector<2x16x16xf32>
    %271 = tpu.matmul %268, %270, %cst_85 {dimension_numbers = #tpu.dot_dimension_numbers<[2], [2], [1], [1], [0, 0, 0, 1, 1, 1], [0], [0]>} : vector<2x16x32xbf16>, vector<2x16x32xbf16>, vector<2x16x16xf32> -> vector<2x16x16xf32>
    "tpu.trace_stop"() : () -> ()
    %cst_86 = arith.constant 0.0883883461 : f32
    %272 = vector.broadcast %cst_86 : f32 to vector<2x16x16xf32>
    %273 = arith.mulf %271, %272 : vector<2x16x16xf32>
    %cst_87 = arith.constant dense<0xFF800000> : vector<2x16xf32>
    %274 = vector.multi_reduction <maximumf>, %273, %cst_87 [2] : vector<2x16x16xf32> to vector<2x16xf32>
    %275 = vector.shape_cast %274 : vector<2x16xf32> to vector<2x16x1xf32>
    %276 = vector.broadcast %275 : vector<2x16x1xf32> to vector<2x16x16xf32>
    %277 = arith.subf %273, %276 : vector<2x16x16xf32>
    %278 = math.exp %277 : vector<2x16x16xf32>
    %cst_88 = arith.constant dense<0.000000e+00> : vector<2x16xf32>
    %279 = vector.multi_reduction <add>, %278, %cst_88 [2] : vector<2x16x16xf32> to vector<2x16xf32>
    %280 = vector.shape_cast %279 : vector<2x16xf32> to vector<2x16x1xf32>
    %281 = tpu.reciprocal %280 {approx = true} : vector<2x16x1xf32> -> vector<2x16x1xf32>
    %282 = vector.broadcast %281 : vector<2x16x1xf32> to vector<2x16x16xf32>
    %283 = arith.mulf %278, %282 : vector<2x16x16xf32>
    %284 = arith.truncf %283 : vector<2x16x16xf32> to vector<2x16x16xbf16>
    %285 = vector.extract_strided_slice %203 {offsets = [0, 0, 96], sizes = [2, 16, 32], strides = [1, 1, 1]} : vector<2x16x128xf32> to vector<2x16x32xf32>
    %286 = arith.truncf %285 : vector<2x16x32xf32> to vector<2x16x32xbf16>
    "tpu.trace_start"() <{level = 10 : i32, message = "bqk,bkd->bqd"}> : () -> ()
    %cst_89 = arith.constant dense<0.000000e+00> : vector<2x16x32xf32>
    %287 = tpu.matmul %284, %286, %cst_89 {dimension_numbers = #tpu.dot_dimension_numbers<[2], [1], [1], [2], [0, 0, 0, 1, 1, 2], [0], [0]>} : vector<2x16x16xbf16>, vector<2x16x32xbf16>, vector<2x16x32xf32> -> vector<2x16x32xf32>
    "tpu.trace_stop"() : () -> ()
    %288 = tpu.concatenate %224, %245, %266, %287 in 2 : vector<2x16x32xf32>, vector<2x16x32xf32>, vector<2x16x32xf32>, vector<2x16x32xf32> -> vector<2x16x128xf32>
    %289 = vector.shape_cast %288 : vector<2x16x128xf32> to vector<32x128xf32>
    %290 = arith.truncf %289 : vector<32x128xf32> to vector<32x128xbf16>
    %c1_90 = arith.constant 1 : index
    %c0_91 = arith.constant 0 : index
    %c0_92 = arith.constant 0 : index
    %291 = vector.load %arg3[%c1_90, %c0_91, %c0_92] : memref<2x128x128xbf16, #tpu.memory_space<vmem>>, vector<1x128x128xbf16>
    %292 = vector.shape_cast %291 : vector<1x128x128xbf16> to vector<128x128xbf16>
    %cst_93 = arith.constant dense<0.000000e+00> : vector<32x128xf32>
    %293 = tpu.matmul %290, %292, %cst_93 {dimension_numbers = #tpu.dot_dimension_numbers<[1], [0], [0], [1], [0, 0, 1, 1], [], []>} : vector<32x128xbf16>, vector<128x128xbf16>, vector<32x128xf32> -> vector<32x128xf32>
    %c1_94 = arith.constant 1 : index
    %c0_95 = arith.constant 0 : index
    %c0_96 = arith.constant 0 : index
    %294 = vector.load %arg4[%c1_94, %c0_95, %c0_96] : memref<2x1x128xf32, #tpu.memory_space<vmem>>, vector<1x1x128xf32>
    %295 = vector.shape_cast %294 : vector<1x1x128xf32> to vector<1x128xf32>
    %296 = vector.broadcast %295 : vector<1x128xf32> to vector<32x128xf32>
    %297 = arith.addf %293, %296 : vector<32x128xf32>
    %298 = arith.addf %171, %297 : vector<32x128xf32>
    %c1_97 = arith.constant 1 : index
    %c0_98 = arith.constant 0 : index
    %c0_99 = arith.constant 0 : index
    %299 = vector.load %arg5[%c1_97, %c0_98, %c0_99] : memref<2x1x128xf32, #tpu.memory_space<vmem>>, vector<1x1x128xf32>
    %300 = vector.shape_cast %299 : vector<1x1x128xf32> to vector<1x128xf32>
    %cst_100 = arith.constant dense<0.000000e+00> : vector<32xf32>
    %301 = vector.multi_reduction <add>, %298, %cst_100 [1] : vector<32x128xf32> to vector<32xf32>
    %302 = vector.shape_cast %301 : vector<32xf32> to vector<32x1xf32>
    %cst_101 = arith.constant 1.280000e+02 : f32
    %303 = vector.broadcast %cst_101 : f32 to vector<32x1xf32>
    %304 = arith.divf %302, %303 : vector<32x1xf32>
    %305 = vector.broadcast %304 : vector<32x1xf32> to vector<32x128xf32>
    %306 = arith.subf %298, %305 : vector<32x128xf32>
    %307 = arith.mulf %306, %306 : vector<32x128xf32>
    %cst_102 = arith.constant dense<0.000000e+00> : vector<32xf32>
    %308 = vector.multi_reduction <add>, %307, %cst_102 [1] : vector<32x128xf32> to vector<32xf32>
    %309 = vector.shape_cast %308 : vector<32xf32> to vector<32x1xf32>
    %cst_103 = arith.constant 1.280000e+02 : f32
    %310 = vector.broadcast %cst_103 : f32 to vector<32x1xf32>
    %311 = arith.divf %309, %310 : vector<32x1xf32>
    %312 = vector.broadcast %304 : vector<32x1xf32> to vector<32x128xf32>
    %313 = arith.subf %298, %312 : vector<32x128xf32>
    %cst_104 = arith.constant 9.99999974E-6 : f32
    %314 = vector.broadcast %cst_104 : f32 to vector<32x1xf32>
    %315 = arith.addf %311, %314 : vector<32x1xf32>
    %316 = math.rsqrt %315 : vector<32x1xf32>
    %317 = vector.broadcast %316 : vector<32x1xf32> to vector<32x128xf32>
    %318 = arith.mulf %313, %317 : vector<32x128xf32>
    %319 = vector.broadcast %300 : vector<1x128xf32> to vector<32x128xf32>
    %320 = arith.mulf %318, %319 : vector<32x128xf32>
    %321 = arith.truncf %320 : vector<32x128xf32> to vector<32x128xbf16>
    %c1_105 = arith.constant 1 : index
    %c0_106 = arith.constant 0 : index
    %c0_107 = arith.constant 0 : index
    %322 = vector.load %arg6[%c1_105, %c0_106, %c0_107] : memref<2x128x512xbf16, #tpu.memory_space<vmem>>, vector<1x128x512xbf16>
    %323 = vector.shape_cast %322 : vector<1x128x512xbf16> to vector<128x512xbf16>
    %cst_108 = arith.constant dense<0.000000e+00> : vector<32x512xf32>
    %324 = tpu.matmul %321, %323, %cst_108 {dimension_numbers = #tpu.dot_dimension_numbers<[1], [0], [0], [1], [0, 0, 1, 1], [], []>} : vector<32x128xbf16>, vector<128x512xbf16>, vector<32x512xf32> -> vector<32x512xf32>
    %cst_109 = arith.constant 5.000000e-01 : f32
    %325 = vector.broadcast %cst_109 : f32 to vector<32x512xf32>
    %326 = arith.mulf %325, %324 : vector<32x512xf32>
    %327 = arith.mulf %324, %324 : vector<32x512xf32>
    %328 = arith.mulf %324, %327 : vector<32x512xf32>
    %cst_110 = arith.constant 4.471500e-02 : f32
    %329 = vector.broadcast %cst_110 : f32 to vector<32x512xf32>
    %330 = arith.mulf %329, %328 : vector<32x512xf32>
    %331 = arith.addf %324, %330 : vector<32x512xf32>
    %cst_111 = arith.constant 0.797884583 : f32
    %332 = vector.broadcast %cst_111 : f32 to vector<32x512xf32>
    %333 = arith.mulf %332, %331 : vector<32x512xf32>
    %334 = math.tanh %333 : vector<32x512xf32>
    %cst_112 = arith.constant 1.000000e+00 : f32
    %335 = vector.broadcast %cst_112 : f32 to vector<32x512xf32>
    %336 = arith.addf %335, %334 : vector<32x512xf32>
    %337 = arith.mulf %326, %336 : vector<32x512xf32>
    %338 = arith.truncf %337 : vector<32x512xf32> to vector<32x512xbf16>
    %c1_113 = arith.constant 1 : index
    %c0_114 = arith.constant 0 : index
    %c0_115 = arith.constant 0 : index
    %339 = vector.load %arg7[%c1_113, %c0_114, %c0_115] : memref<2x512x128xbf16, #tpu.memory_space<vmem>>, vector<1x512x128xbf16>
    %340 = vector.shape_cast %339 : vector<1x512x128xbf16> to vector<512x128xbf16>
    %cst_116 = arith.constant dense<0.000000e+00> : vector<32x128xf32>
    %341 = tpu.matmul %338, %340, %cst_116 {dimension_numbers = #tpu.dot_dimension_numbers<[1], [0], [0], [1], [0, 0, 1, 1], [], []>} : vector<32x512xbf16>, vector<512x128xbf16>, vector<32x128xf32> -> vector<32x128xf32>
    %342 = arith.addf %298, %341 : vector<32x128xf32>
    %c0_117 = arith.constant 0 : index
    %c0_118 = arith.constant 0 : index
    %343 = vector.load %arg8[%c0_117, %c0_118] : memref<1x128xf32, #tpu.memory_space<vmem>>, vector<1x128xf32>
    %c0_119 = arith.constant 0 : index
    %c0_120 = arith.constant 0 : index
    %344 = vector.load %arg9[%c0_119, %c0_120] : memref<1x128xf32, #tpu.memory_space<vmem>>, vector<1x128xf32>
    %cst_121 = arith.constant dense<0.000000e+00> : vector<32xf32>
    %345 = vector.multi_reduction <add>, %342, %cst_121 [1] : vector<32x128xf32> to vector<32xf32>
    %346 = vector.shape_cast %345 : vector<32xf32> to vector<32x1xf32>
    %cst_122 = arith.constant 1.280000e+02 : f32
    %347 = vector.broadcast %cst_122 : f32 to vector<32x1xf32>
    %348 = arith.divf %346, %347 : vector<32x1xf32>
    %349 = vector.broadcast %348 : vector<32x1xf32> to vector<32x128xf32>
    %350 = arith.subf %342, %349 : vector<32x128xf32>
    %351 = arith.mulf %350, %350 : vector<32x128xf32>
    %cst_123 = arith.constant dense<0.000000e+00> : vector<32xf32>
    %352 = vector.multi_reduction <add>, %351, %cst_123 [1] : vector<32x128xf32> to vector<32xf32>
    %353 = vector.shape_cast %352 : vector<32xf32> to vector<32x1xf32>
    %cst_124 = arith.constant 1.280000e+02 : f32
    %354 = vector.broadcast %cst_124 : f32 to vector<32x1xf32>
    %355 = arith.divf %353, %354 : vector<32x1xf32>
    %356 = vector.broadcast %348 : vector<32x1xf32> to vector<32x128xf32>
    %357 = arith.subf %342, %356 : vector<32x128xf32>
    %cst_125 = arith.constant 9.99999974E-6 : f32
    %358 = vector.broadcast %cst_125 : f32 to vector<32x1xf32>
    %359 = arith.addf %355, %358 : vector<32x1xf32>
    %360 = math.rsqrt %359 : vector<32x1xf32>
    %361 = vector.broadcast %360 : vector<32x1xf32> to vector<32x128xf32>
    %362 = arith.mulf %357, %361 : vector<32x128xf32>
    %363 = vector.broadcast %343 : vector<1x128xf32> to vector<32x128xf32>
    %364 = arith.mulf %362, %363 : vector<32x128xf32>
    %365 = vector.broadcast %344 : vector<1x128xf32> to vector<32x128xf32>
    %366 = arith.addf %364, %365 : vector<32x128xf32>
    %367 = arith.truncf %366 : vector<32x128xf32> to vector<32x128xbf16>
    %c0_126 = arith.constant 0 : index
    %c0_127 = arith.constant 0 : index
    %368 = vector.load %arg10[%c0_126, %c0_127] : memref<128x256xbf16, #tpu.memory_space<vmem>>, vector<128x256xbf16>
    %cst_128 = arith.constant dense<0.000000e+00> : vector<32x256xf32>
    %369 = tpu.matmul %367, %368, %cst_128 {dimension_numbers = #tpu.dot_dimension_numbers<[1], [0], [0], [1], [0, 0, 1, 1], [], []>} : vector<32x128xbf16>, vector<128x256xbf16>, vector<32x256xf32> -> vector<32x256xf32>
    %c0_129 = arith.constant 0 : index
    %c0_130 = arith.constant 0 : index
    %370 = vector.load %arg11[%c0_129, %c0_130] : memref<32x256xf32, #tpu.memory_space<vmem>>, vector<32x256xf32>
    tpu.vector_store %arg11[%c0_129, %c0_130], %369 {strides = array<i32>} : memref<32x256xf32, #tpu.memory_space<vmem>>, vector<32x256xf32>,
    return
  }
}

</mosaic_0001>

<bundles_post_ra>
// kernel: transformer_forward.1
= control target key start
LH: loop header
LB: loop body
LE: loop exit
PB: predicated region body
PF: predicated region fallthrough
CT: control target
= control target key end

     0   :  { %16 = vsyncpa [#allocation3], 0  ;;  %s7643_s0 = inlined_call_operand.vmem [shape: f32[32,128], index: 0, kind: input, shape index: {}]   ;;  %s7644_s1 = inlined_call_operand.vmem [shape: f32[2,1,128], index: 1, kind: input, shape index: {}]   ;;  %s7645_s2 = inlined_call_operand.vmem [shape: bf16[2,128,384], index: 2, kind: input, shape index: {}]   ;;  %s7646_s3 = inlined_call_operand.hbm [shape: bf16[2,128,128], index: 3, kind: input, shape index: {}]   ;;  %s7647_s4 = inlined_call_operand.vmem [shape: f32[2,1,128], index: 4, kind: input, shape index: {}]   ;;  %s7648_s5 = inlined_call_operand.vmem [shape: f32[2,1,128], index: 5, kind: input, shape index: {}]   ;;  %s7649_s6 = inlined_call_operand.hbm [shape: bf16[2,128,512], index: 6, kind: input, shape index: {}]   ;;  %s7650_s7 = inlined_call_operand.hbm [shape: bf16[2,512,128], index: 7, kind: input, shape index: {}]   ;;  %s7651_s8 = inlined_call_operand.vmem [shape: f32[1,128], index: 8, kind: input, shape index: {}]   ;;  %s7652_s9 = inlined_call_operand.vmem [shape: f32[1,128], index: 9, kind: input, shape index: {}]   ;;  %s7653_s10 = inlined_call_operand.hbm [shape: bf16[128,256], index: 10, kind: input, shape index: {}]   ;;  %s7654_s11 = inlined_call_operand.hbm [shape: f32[32,256], index: 11, kind: output, shape index: {}]  }
   0x1   :  { %17 = vsyncpa [#allocation6], 0 }
   0x2   :  { %18 = vsyncpa [#allocation9], 0 }
   0x3   :  { %19 = vsyncpa [#allocation4], 0  ;;  %s6524_s17 = smov [#allocation5]   ;;  %s6406_s21 = scalar_lea.hbm %s7649_s6, 8192 }
   0x4   :  { %s47_s18 = sshll.u32 %s6524_s17, 4  ;;  %p6407_p0 = scmp.ne.s32.totalorder %s7649_s6, %s6406_s21  ;;  %s48_s18 = int_to_ptr.vmem [resolvable:$true] %s47_s18 }
   0x5   :  { %p6410_p1 = scmp.lt.u32.totalorder %s6406_s21, %s7649_s6 }
   0x7   :  { %p6412_p2 = pnand %p6410_p1, %p6407_p0 }
   0x9   :  { %6415 = shalt.err (!%p6412_p2)
}
   0xa   :  { %s6416_s26 = scalar_lea.vmem %s48_s18, 8192  ;;  %p6421_p4 = scmp.lt.s32.totalorder %s48_s18, %s48_s18 }
   0xb   :  { %p6417_p3 = scmp.ne.s32.totalorder %s48_s18, %s6416_s26  ;;  %p6422_p5 = scmp.lt.s32.totalorder %s6416_s26, %s6416_s26 }
   0xd   :  { %p6423_p6 = por %p6422_p5, %p6421_p4 }
   0xf   :  { %p6424_p7 = pnand %p6423_p6, %p6417_p3 }
  0x11   :  { %6427 = shalt.err (!%p6424_p7)
}
  0x12   :  { %s6525_s27 = smov 256   ;;  %s6526_s28 = smov 16  }
  0x13   :  { %53 = dma.hbm_to_vmem [thread:$0]  %s7649_s6, 8192, %s48_s18, [#allocation6], %s6525_s27, %s6525_s27, %s6526_s28  }
  0x14   :  { %s6527_s12 = smov [#allocation2]   ;;  %s6428_s16 = scalar_lea.hbm %s7646_s3, 2048 }
  0x15   :  { %s31_s13 = sshll.u32 %s6527_s12, 4  ;;  %p6429_p8 = scmp.ne.s32.totalorder %s7646_s3, %s6428_s16  ;;  %s32_s13 = int_to_ptr.vmem [resolvable:$true] %s31_s13 }
  0x16   :  { %p6432_p9 = scmp.lt.u32.totalorder %s6428_s16, %s7646_s3 }
  0x18   :  { %p6434_p10 = pnand %p6432_p9, %p6429_p8 }
  0x1a   :  { %6437 = shalt.err (!%p6434_p10)
}
  0x1b   :  { %s6438_s22 = scalar_lea.vmem %s32_s13, 2048  ;;  %p6443_p12 = scmp.lt.s32.totalorder %s32_s13, %s32_s13 }
  0x1c   :  { %p6439_p11 = scmp.ne.s32.totalorder %s32_s13, %s6438_s22  ;;  %p6444_p13 = scmp.lt.s32.totalorder %s6438_s22, %s6438_s22 }
  0x1e   :  { %p6445_p0 = por %p6444_p13, %p6443_p12 }
  0x20   :  { %p6446_p1 = pnand %p6445_p0, %p6439_p11 }
  0x22   :  { %6449 = shalt.err (!%p6446_p1)
}
  0x23   :  { %s6528_s6 = smov 64   ;;  %s6529_s18 = smov 4  }
  0x24   :  { %37 = dma.hbm_to_vmem [thread:$0]  %s7646_s3, 2048, %s32_s13, [#allocation3], %s6528_s6, %s6528_s6, %s6529_s18  }
  0x25   :  { %s6530_s25 = smov [#allocation7]   ;;  %s6531_s29 = smov [#allocation8]  }
  0x26   :  { %s59_s26 = sshll.u32 %s6530_s25, 4  ;;  %s75_s30 = sshll.u32 %s6531_s29, 4  ;;  %s60_s26 = int_to_ptr.vmem [resolvable:$true] %s59_s26  ;;  %s6629_s30 = int_to_ptr.vmem [resolvable:$true] %s75_s30 }
  0x27   :  { %s6450_s15 = scalar_lea.hbm %s7650_s7, 8192 }
  0x28   :  { %p6451_p2 = scmp.ne.s32.totalorder %s7650_s7, %s6450_s15  ;;  %p6454_p3 = scmp.lt.u32.totalorder %s6450_s15, %s7650_s7 }
  0x2a   :  { %p6456_p4 = pnand %p6454_p3, %p6451_p2 }
  0x2c   :  { %6459 = shalt.err (!%p6456_p4)
}
  0x2d   :  { %s6460_s3 = scalar_lea.vmem %s60_s26, 8192  ;;  %p6465_p6 = scmp.lt.s32.totalorder %s60_s26, %s60_s26 }
  0x2e   :  { %p6461_p5 = scmp.ne.s32.totalorder %s60_s26, %s6460_s3  ;;  %p6466_p7 = scmp.lt.s32.totalorder %s6460_s3, %s6460_s3 }
  0x30   :  { %p6467_p8 = por %p6466_p7, %p6465_p6 }
  0x32   :  { %p6468_p9 = pnand %p6467_p8, %p6461_p5 }
  0x34   :  { %6471 = shalt.err (!%p6468_p9)
}
  0x35   :  { %65 = dma.hbm_to_vmem [thread:$0]  %s7650_s7, 8192, %s60_s26, [#allocation6], %s6528_s6, %s6528_s6, %s6529_s18  }
  0x36   :  { %s6472_s24 = scalar_lea.hbm %s7653_s10, 2048 }
  0x37   :  { %p6473_p10 = scmp.ne.s32.totalorder %s7653_s10, %s6472_s24  ;;  %p6476_p11 = scmp.lt.u32.totalorder %s6472_s24, %s7653_s10 }
  0x39   :  { %p6478_p12 = pnand %p6476_p11, %p6473_p10 }
  0x3b   :  { %6481 = shalt.err (!%p6478_p12)
}
  0x3c   :  { %s6482_s15 = scalar_lea.vmem %s6629_s30, 2048  ;;  %p6487_p0 = scmp.lt.s32.totalorder %s6629_s30, %s6629_s30 }
  0x3d   :  { %p6483_p13 = scmp.ne.s32.totalorder %s6629_s30, %s6482_s15  ;;  %p6488_p1 = scmp.lt.s32.totalorder %s6482_s15, %s6482_s15 }
  0x3f   :  { %p6489_p2 = por %p6488_p1, %p6487_p0 }
  0x41   :  { %p6490_p3 = pnand %p6489_p2, %p6483_p13 }
  0x43   :  { %6493 = shalt.err (!%p6490_p3)
}
  0x44   :  { %s6532_s7 = smov 128   ;;  %s6533_s18 = smov 8  }
  0x45   :  { %81 = dma.hbm_to_vmem [thread:$0]  %s7653_s10, 2048, %s6629_s30, [#allocation9], %s6532_s7, %s6532_s7, %s6533_s18  }
  0x46   :  { %6516 = dma.done.wait [#allocation3], 2048  }
  0x47   :  { %6517 = vsyncadd [#allocation3], 4294965248 }
  0x48   :  { %6518 = dma.done.wait [#allocation6], 16384  }
  0x49   :  { %6519 = vsyncadd [#allocation6], 4294950912 }
  0x4a   :  { %6520 = dma.done.wait [#allocation9], 2048  }
  0x4b   :  { %6521 = vsyncadd [#allocation9], 4294965248  ;;  %v95_v0 = vld [vmem:[%s7643_s0] sm:$0xff]  ;;  %v97_v1 = vld [vmem:[%s7643_s0 + $0x10] sm:$0xff]  ;;  %v6534_v42 = vmov 0   ;;  %vm6536_vm0 = vmmov 0  }
  0x4c   :  { %v96_v2 = vld [vmem:[%s7643_s0 + $0x8] sm:$0xff]  ;;  %100 = vadd.xlane.f32.xlu0 %v95_v0  ;;  %104 = vadd.xlane.f32.xlu1 %v97_v1  ;;  %v98_v3 = vld [vmem:[%s7643_s0 + $0x18] sm:$0xff]  ;;  %v5906_v4 = vld [vmem:[%s7645_s2 + $0x4] ss:$12 sps:$4 sm:$0xff]   ;;  %vm423_vm1 = vcmask 261120   ;;  %vm522_vm2 = vcmask 130048  }
  0x4d   :  { %v5908_v5 = vld [vmem:[%s7645_s2] ss:$12 sps:$4 sm:$0xff]   ;;  %v5909_v6 = vld [vmem:[%s7645_s2 + $0x1c] ss:$12 sps:$4 sm:$0xff]   ;;  %v5912_v8 = vld [vmem:[%s7645_s2 + $0x18] ss:$12 sps:$4 sm:$0xff]   ;;  %317 = vmatprep.subr.bf16.mxu0 %v5906_v4  ;;  %349 = vmatprep.mubr.bf16.mxu0 %v6534_v42 }
  0x4e   :  { %v5911_v7 = vld [vmem:[%s7645_s2 + $0x8] ss:$12 sps:$4 sm:$0xff]   ;;  %318 = vmatpush1.bf16.msra.mxu0 %v5908_v5  ;;  %v5915_v26 = vld [vmem:[%s7645_s2 + $0x20] ss:$12 sps:$4 sm:$0xff]   ;;  %v5916_v27 = vld [vmem:[%s7645_s2 + $0x30] ss:$12 sps:$4 sm:$0xff]  }
  0x4f   :  { %5558 = vmatprep.subr.bf16.mxu1 %v5911_v7  ;;  %319 = vmatprep.subr.bf16.mxu0 %v5909_v6  ;;  %v5913_v25 = vld [vmem:[%s7645_s2 + $0x34] ss:$12 sps:$4 sm:$0xff]   ;;  %v5917_v28 = vld [vmem:[%s7645_s2 + $0x4c] ss:$12 sps:$4 sm:$0xff]   ;;  %v5921_v31 = vld [vmem:[%s7645_s2 + $0x64] ss:$12 sps:$4 sm:$0xff]  }
  0x50   :  { %102 = vadd.xlane.f32.xlu0 %v96_v2  ;;  %106 = vadd.xlane.f32.xlu1 %v98_v3  ;;  %v5919_v29 = vld [vmem:[%s7645_s2 + $0x38] ss:$12 sps:$4 sm:$0xff]   ;;  %v5920_v30 = vld [vmem:[%s7645_s2 + $0x48] ss:$12 sps:$4 sm:$0xff]   ;;  %v5923_v32 = vld [vmem:[%s7645_s2 + $0x50] ss:$12 sps:$4 sm:$0xff]  }
  0x51   :  { %5559 = vmatpush3.bf16.msra.mxu1 %v5911_v7  ;;  %v5924_v33 = vld [vmem:[%s7645_s2 + $0x60] ss:$12 sps:$4 sm:$0xff]   ;;  %v5925_v34 = vld [vmem:[%s7645_s2 + $0x7c] ss:$12 sps:$4 sm:$0xff]   ;;  %v5928_v36 = vld [vmem:[%s7645_s2 + $0x78] ss:$12 sps:$4 sm:$0xff]  }
  0x52   :  { %320 = vmatpush1.bf16.msra.mxu0 %v5912_v8  ;;  %5560 = vmatprep.subr.bf16.mxu1 %v5915_v26  ;;  %v5927_v35 = vld [vmem:[%s7645_s2 + $0x68] ss:$12 sps:$4 sm:$0xff]   ;;  %v5931_v38 = vld [vmem:[%s7645_s2 + $0x80] ss:$12 sps:$4 sm:$0xff]   ;;  %v5932_v39 = vld [vmem:[%s7645_s2 + $0x90] ss:$12 sps:$4 sm:$0xff]  }
  0x53   :  { %321 = vmatprep.subr.bf16.mxu0 %v5913_v25  ;;  %v5929_v37 = vld [vmem:[%s7645_s2 + $0x94] ss:$12 sps:$4 sm:$0xff]   ;;  %v5933_v40 = vld [vmem:[%s7645_s2 + $0xac] ss:$12 sps:$4 sm:$0xff]   ;;  %v5937_v44 = vld [vmem:[%s7645_s2 + $0xb0] ss:$12 sps:$4 sm:$0xff]  }
  0x54   :  { %v5935_v41 = vld [vmem:[%s7645_s2 + $0x98] ss:$12 sps:$4 sm:$0xff]   ;;  %v5936_v43 = vld [vmem:[%s7645_s2 + $0xa8] ss:$12 sps:$4 sm:$0xff]   ;;  %v5059_v60 = vld [vmem:[%s7644_s1] ss:$0 sm:$0xff] }
  0x55   :  { %5561 = vmatpush3.bf16.msra.mxu1 %v5915_v26  ;;  %v6535_v8 = vmov 0.0   ;;  %s6537_s26 = smov 96   ;;  %s6538_s16 = smov 32   ;;  %vm1455_vm3 = vcmask 523264   ;;  %vm1460_vm4 = vcmask 785408  }
  0x56   :  { %322 = vmatpush1.bf16.msra.mxu0 %v5916_v27  ;;  %5562 = vmatprep.subr.bf16.mxu1 %v5919_v29 }
  0x57   :  { %323 = vmatprep.subr.bf16.mxu0 %v5917_v28 }
  0x59   :  { %5563 = vmatpush3.bf16.msra.mxu1 %v5919_v29 }
  0x5a   :  { %324 = vmatpush1.bf16.msra.mxu0 %v5920_v30  ;;  %5564 = vmatprep.subr.bf16.mxu1 %v5923_v32 }
  0x5b   :  { %325 = vmatprep.subr.bf16.mxu0 %v5921_v31 }
  0x5d   :  { %5565 = vmatpush3.bf16.msra.mxu1 %v5923_v32 }
  0x5e   :  { %326 = vmatpush1.bf16.msra.mxu0 %v5924_v33  ;;  %5566 = vmatprep.subr.bf16.mxu1 %v5927_v35 }
  0x5f   :  { %327 = vmatprep.subr.bf16.mxu0 %v5925_v34 }
  0x61   :  { %5567 = vmatpush3.bf16.msra.mxu1 %v5927_v35 }
  0x62   :  { %328 = vmatpush1.bf16.msra.mxu0 %v5928_v36  ;;  %5568 = vmatprep.subr.bf16.mxu1 %v5931_v38 }
  0x63   :  { %329 = vmatprep.subr.bf16.mxu0 %v5929_v37 }
  0x65   :  { %5569 = vmatpush3.bf16.msra.mxu1 %v5931_v38 }
  0x66   :  { %330 = vmatpush1.bf16.msra.mxu0 %v5932_v39  ;;  %5570 = vmatprep.subr.bf16.mxu1 %v5935_v41 }
  0x67   :  { %331 = vmatprep.subr.bf16.mxu0 %v5933_v40 }
  0x69   :  { %5571 = vmatpush3.bf16.msra.mxu1 %v5935_v41 }
  0x6a   :  { %332 = vmatpush1.bf16.msra.mxu0 %v5936_v43  ;;  %5572 = vmatprep.subr.bf16.mxu1 %v5937_v44 }
  0x6b   :  { %5584 = vmatprep.subr.bf16.mxu0 %v6535_v8 }
  0x6d   :  { %5573 = vmatpush3.bf16.msra.mxu1 %v5937_v44 }
  0x6e   :  { %5578 = vmatprep.subr.bf16.mxu1 %v6535_v8 }
  0xd9   :  { %v101_v9 = vpop.xlane.xlu0 %100  ;;  %v105_v10 = vpop.xlane.xlu1 %104 }
  0xda   :  { %v109_v11 = vmul.f32 0.0078125, %v101_v9  ;;  %v111_v12 = vmul.f32 0.0078125, %v105_v10 }
  0xdc   :  { %v6689_v13 = vsub.f32 %v95_v0, %v109_v11  ;;  %v6691_v14 = vsub.f32 %v97_v1, %v111_v12 }
  0xdd   :  { %v103_v15 = vpop.xlane.xlu0 %102  ;;  %v107_v16 = vpop.xlane.xlu1 %106 }
  0xde   :  { %v110_v17 = vmul.f32 0.0078125, %v103_v15  ;;  %v117_v18 = vmul.f32 %v6689_v13, %v6689_v13  ;;  %v112_v19 = vmul.f32 0.0078125, %v107_v16  ;;  %v119_v20 = vmul.f32 %v6691_v14, %v6691_v14 }
  0xe0   :  { %121 = vadd.xlane.f32.xlu0 %v117_v18  ;;  %v6697_v21 = vsub.f32 %v96_v2, %v110_v17  ;;  %v6699_v22 = vsub.f32 %v98_v3, %v112_v19 }
  0xe2   :  { %v118_v23 = vmul.f32 %v6697_v21, %v6697_v21  ;;  %v120_v24 = vmul.f32 %v6699_v22, %v6699_v22 }
  0xe4   :  { %125 = vadd.xlane.f32.xlu0 %v119_v20  ;;  %123 = vadd.xlane.f32.xlu1 %v118_v23 }
  0xe8   :  { %127 = vadd.xlane.f32.xlu1 %v120_v24 }
 0x16d   :  { %v122_v45 = vpop.xlane.xlu0 %121 }
 0x16e   :  { %v129_v46 = vmul.f32 0.0078125, %v122_v45 }
 0x170   :  { %v133_v47 = vadd.f32 1e-05, %v129_v46 }
 0x171   :  { %v124_v48 = vpop.xlane.xlu1 %123  ;;  %v126_v49 = vpop.xlane.xlu0 %125 }
 0x172   :  { %6170 = vrsqrt.f32 %v133_v47  ;;  %v130_v50 = vmul.f32 0.0078125, %v124_v48  ;;  %v131_v51 = vmul.f32 0.0078125, %v126_v49 }
 0x174   :  { %v134_v52 = vadd.f32 1e-05, %v130_v50  ;;  %v135_v53 = vadd.f32 1e-05, %v131_v51 }
 0x175   :  { %v128_v54 = vpop.xlane.xlu1 %127 }
 0x176   :  { %6172 = vrsqrt.f32 %v134_v52  ;;  %v132_v55 = vmul.f32 0.0078125, %v128_v54 }
 0x177   :  { %6174 = vrsqrt.f32 %v135_v53 }
 0x178   :  { %v136_v56 = vadd.f32 1e-05, %v132_v55 }
 0x17a   :  { %6176 = vrsqrt.f32 %v136_v56 }
 0x17c   :  { %v6171_v57 = vpop.eup %6170 }
 0x17d   :  { %v141_v58 = vmul.f32 %v6171_v57, %v6689_v13 }
 0x17f   :  { %v151_v63 = vmul.f32 %v5059_v60, %v141_v58 }
 0x180   :  { %v6173_v59 = vpop.eup %6172 }
 0x181   :  { %v6175_v61 = vpop.eup %6174  ;;  %v142_v62 = vmul.f32 %v6173_v59, %v6697_v21 }
 0x182   :  { %v143_v1 = vmul.f32 %v6175_v61, %v6691_v14 }
 0x183   :  { %v152_v0 = vmul.f32 %v5059_v60, %v142_v62 }
 0x184   :  { %v6177_v2 = vpop.eup %6176  ;;  %v153_v5 = vmul.f32 %v5059_v60, %v143_v1 }
 0x185   :  { %v155_v3 = vpack.c.bf16 %v152_v0, %v151_v63  ;;  %v144_v4 = vmul.f32 %v6177_v2, %v6699_v22 }
 0x187   :  { %350 = vmatmul.mubr.bf16.vlgmr.msra.gmra.mrb[0].mxu0 %v155_v3  ;;  %5574 = vmatprep.mubr.bf16.mxu1 %v155_v3  ;;  %v154_v6 = vmul.f32 %v5059_v60, %v144_v4 }
 0x188   :  { %359 = vmatprep.mubr.bf16.mxu0 %v6534_v42 }
 0x189   :  { %v156_v7 = vpack.c.bf16 %v154_v6, %v153_v5 }
 0x18b   :  { %5575 = vmatmul.mubr.bf16.vlgmr.msra.gmra.mrb[0].mxu1 %v156_v7 }
 0x18c   :  { %5580 = vmatprep.mubr.msk.bf16.mxu1 %vm6536_vm0, %v6535_v8 }
 0x18f   :  { %360 = vmatmul.mubr.bf16.gmra.mrb[4].mxu0 %v156_v7 }
 0x190   :  { %5586 = vmatprep.mubr.msk.bf16.mxu0 %vm6536_vm0, %v6535_v8 }
 0x25a   :  { %v351_v9 = vpop.f32.mrb[0].mxu0 }
 0x25b   :  { %v353_v10 = vpop.f32.mrb[1].mxu0 }
 0x25c   :  { %v355_v11 = vpop.f32.mrb[2].mxu0 }
 0x25d   :  { %v6777_v12 = vpack.c.bf16 %v355_v11, %v351_v9  ;;  %v357_v13 = vpop.f32.mrb[3].mxu0 }
 0x25e   :  { %v6779_v14 = vpack.c.bf16 %v357_v13, %v353_v10  ;;  %v5576_v15 = vpop.f32.mrb[0].mxu1 }
 0x25f   :  { %v404_v16 = vpop.f32.mrb[1].mxu1 }
 0x260   :  { %v5577_v17 = vpop.f32.mrb[2].mxu1  ;;  %v428_v18 = vsel %vm423_vm1, %v6779_v14, 0 }
 0x261   :  { %v6783_v19 = vpack.c.bf16 %v5577_v17, %v5576_v15  ;;  %v407_v20 = vpop.f32.mrb[3].mxu1  ;;  %5579 = vmatpush3.bf16.xpose.msra.mxu1 %v428_v18 }
 0x262   :  { %v6785_v21 = vpack.c.bf16 %v407_v20, %v404_v16  ;;  %v361_v22 = vpop.f32.mrb[4].mxu0  ;;  %5590 = vmatprep.subr.bf16.mxu1 %v6535_v8 }
 0x263   :  { %v363_v23 = vpop.f32.mrb[5].mxu0 }
 0x264   :  { %v365_v24 = vpop.f32.mrb[6].mxu0 }
 0x265   :  { %v6788_v25 = vpack.c.bf16 %v365_v24, %v361_v22  ;;  %v367_v26 = vpop.f32.mrb[7].mxu0 }
 0x266   :  { %v6790_v27 = vpack.c.bf16 %v367_v26, %v363_v23 }
 0x268   :  { %5581 = vmatmul.mubr.msk.bf16.vlgmr.msra.gmra.mrb[4].mxu1 %vm423_vm1, %v6777_v12  ;;  %v475_v28 = vsel %vm423_vm1, %v6790_v27, 0 }
 0x269   :  { %5585 = vmatpush3.bf16.xpose.msra.mxu0 %v475_v28  ;;  %5591 = vmatpush3.bf16.msra.mxu1 %v6785_v21 }
 0x26a   :  { %5596 = vmatprep.subr.bf16.mxu0 %v6535_v8  ;;  %5592 = vmatprep.mubr.msk.bf16.mxu1 %vm6536_vm0, %v6535_v8 }
 0x26b   :  { %5602 = vmatprep.subr.bf16.mxu1 %v6535_v8 }
 0x270   :  { %5587 = vmatmul.mubr.msk.bf16.vlgmr.msra.gmra.mrb[8].mxu0 %vm423_vm1, %v6788_v25 }
 0x271   :  { %5597 = vmatpush3.bf16.msra.mxu0 %v6783_v19  ;;  %5598 = vmatprep.mubr.msk.bf16.mxu0 %vm6536_vm0, %v6535_v8 }
 0x272   :  { %5608 = vmatprep.subr.bf16.mxu0 %v6535_v8 }
 0x33b   :  { %v464_v29 = vpop.f32.mrb[4].mxu1 }
 0x33c   :  { %v518_v30 = vmul.f32 0.088388346, %v464_v29  ;;  %v5582_v31 = vpop.f32.mrb[5].mxu1 }
 0x33d   :  { %v467_v32 = vpop.f32.mrb[6].mxu1 }
 0x33e   :  { %v519_v33 = vmul.f32 0.088388346, %v467_v32  ;;  %v5583_v34 = vpop.f32.mrb[7].mxu1  ;;  %v523_v35 = vsel %vm522_vm2, %v518_v30, -inf }
 0x33f   :  { %524 = vmax.xlane.f32.xlu0 %v523_v35 }
 0x340   :  { %v526_v36 = vsel %vm522_vm2, %v519_v33, -inf }
 0x341   :  { %527 = vmax.xlane.f32.xlu1 %v526_v36 }
 0x343   :  { %v511_v37 = vpop.f32.mrb[8].mxu0 }
 0x344   :  { %v520_v38 = vmul.f32 0.088388346, %v511_v37  ;;  %v5588_v39 = vpop.f32.mrb[9].mxu0 }
 0x345   :  { %v514_v40 = vpop.f32.mrb[10].mxu0 }
 0x346   :  { %v521_v41 = vmul.f32 0.088388346, %v514_v40  ;;  %v5589_v43 = vpop.f32.mrb[11].mxu0  ;;  %v529_v44 = vsel %vm522_vm2, %v520_v38, -inf }
 0x347   :  { %530 = vmax.xlane.f32.xlu0 %v529_v44 }
 0x348   :  { %v532_v45 = vsel %vm522_vm2, %v521_v41, -inf }
 0x349   :  { %533 = vmax.xlane.f32.xlu1 %v532_v45 }
 0x3cc   :  { %v525_v46 = vpop.xlane.xlu0 %524 }
 0x3cd   :  { %v535_v47 = vsub.f32 %v518_v30, %v525_v46 }
 0x3ce   :  { %v528_v48 = vpop.xlane.xlu1 %527 }
 0x3cf   :  { %v539_v49 = vmul.f32 1.442695, %v535_v47  ;;  %v536_v50 = vsub.f32 %v519_v33, %v528_v48 }
 0x3d1   :  { %6178 = vpow2.f32 %v539_v49  ;;  %v541_v51 = vmul.f32 1.442695, %v536_v50 }
 0x3d3   :  { %6180 = vpow2.f32 %v541_v51 }
 0x3d4   :  { %v531_v52 = vpop.xlane.xlu0 %530 }
 0x3d5   :  { %v537_v53 = vsub.f32 %v520_v38, %v531_v52 }
 0x3d6   :  { %v534_v61 = vpop.xlane.xlu1 %533 }
 0x3d7   :  { %v543_v54 = vmul.f32 1.442695, %v537_v53  ;;  %v538_v62 = vsub.f32 %v521_v41, %v534_v61 }
 0x3d9   :  { %6182 = vpow2.f32 %v543_v54  ;;  %v545_v63 = vmul.f32 1.442695, %v538_v62 }
 0x3db   :  { %v6179_v55 = vpop.eup %6178  ;;  %6184 = vpow2.f32 %v545_v63 }
 0x3dc   :  { %v547_v56 = vsel %vm522_vm2, %v6179_v55, 0.0 }
 0x3dd   :  { %v6181_v57 = vpop.eup %6180  ;;  %548 = vadd.xlane.f32.xlu0 %v547_v56 }
 0x3de   :  { %v550_v58 = vsel %vm522_vm2, %v6181_v57, 0.0 }
 0x3df   :  { %551 = vadd.xlane.f32.xlu1 %v550_v58 }
 0x3e3   :  { %v6183_v59 = vpop.eup %6182 }
 0x3e4   :  { %v553_v60 = vsel %vm522_vm2, %v6183_v59, 0.0 }
 0x3e5   :  { %554 = vadd.xlane.f32.xlu0 %v553_v60  ;;  %v6185_v0 = vpop.eup %6184 }
 0x3e6   :  { %v556_v1 = vsel %vm522_vm2, %v6185_v0, 0.0 }
 0x3f0   :  { %716 = vrot.lane.b32.xlu1 %v6790_v27, %s6537_s26 }
 0x3fb   :  { %663 = vrot.lane.b32.xlu0 %v6779_v14, %s6537_s26 }
 0x414   :  { %557 = vadd.xlane.f32.xlu1 %v556_v1 }
 0x425   :  { %660 = vrot.lane.b32.xlu1 %v6777_v12, %s6537_s26 }
 0x429   :  { %713 = vrot.lane.b32.xlu1 %v6788_v25, %s6537_s26 }
 0x46a   :  { %v549_v2 = vpop.xlane.xlu0 %548 }
 0x46b   :  { %6186 = vrcp.f32 %v549_v2 }
 0x46c   :  { %v552_v3 = vpop.xlane.xlu1 %551 }
 0x46d   :  { %6188 = vrcp.f32 %v552_v3 }
 0x470   :  { %v717_v15 = vpop.permute.xlu1 %716 }
 0x471   :  { %v722_v26 = vsel %vm423_vm1, %v717_v15, 0 }
 0x472   :  { %v555_v4 = vpop.xlane.xlu0 %554 }
 0x473   :  { %6190 = vrcp.f32 %v555_v4 }
 0x475   :  { %v6187_v5 = vpop.eup %6186 }
 0x476   :  { %v563_v7 = vmul.f32 %v6187_v5, %v6179_v55  ;;  %v664_v10 = vpop.permute.xlu0 %663 }
 0x477   :  { %v6189_v6 = vpop.eup %6188  ;;  %v669_v13 = vsel %vm423_vm1, %v664_v10, 0 }
 0x478   :  { %v564_v9 = vmul.f32 %v6189_v6, %v6181_v57 }
 0x47a   :  { %v567_v11 = vpack.c.bf16 %v564_v9, %v563_v7 }
 0x47c   :  { %5593 = vmatmul.mubr.msk.bf16.vlgmr.msra.gmra.mrb[8].mxu1 %vm522_vm2, %v567_v11 }
 0x47d   :  { %5603 = vmatpush3.bf16.xpose.msra.mxu1 %v669_v13  ;;  %5604 = vmatprep.mubr.msk.bf16.mxu1 %vm6536_vm0, %v6535_v8  ;;  %v6191_v18 = vpop.eup %6190 }
 0x47e   :  { %5614 = vmatprep.subr.bf16.mxu1 %v6535_v8  ;;  %v565_v22 = vmul.f32 %v6191_v18, %v6183_v59 }
 0x4a1   :  { %v558_v16 = vpop.xlane.xlu1 %557 }
 0x4a2   :  { %6192 = vrcp.f32 %v558_v16 }
 0x4a5   :  { %v661_v17 = vpop.permute.xlu1 %660 }
 0x4a6   :  { %5605 = vmatmul.mubr.msk.bf16.vlgmr.msra.gmra.mrb[12].mxu1 %vm423_vm1, %v661_v17 }
 0x4a7   :  { %5616 = vmatprep.mubr.msk.bf16.mxu1 %vm6536_vm0, %v6535_v8 }
 0x4a9   :  { %v714_v28 = vpop.permute.xlu1 %713 }
 0x4ac   :  { %v6193_v20 = vpop.eup %6192 }
 0x4ad   :  { %v566_v23 = vmul.f32 %v6193_v20, %v6185_v0 }
 0x4af   :  { %v568_v24 = vpack.c.bf16 %v566_v23, %v565_v22 }
 0x4b1   :  { %5599 = vmatmul.mubr.msk.bf16.vlgmr.msra.gmra.mrb[12].mxu0 %vm522_vm2, %v568_v24 }
 0x4b2   :  { %5609 = vmatpush3.bf16.xpose.msra.mxu0 %v722_v26  ;;  %5610 = vmatprep.mubr.msk.bf16.mxu0 %vm6536_vm0, %v6535_v8 }
 0x4b3   :  { %5620 = vmatprep.subr.bf16.mxu0 %v6535_v8 }
 0x4b9   :  { %5611 = vmatmul.mubr.msk.bf16.vlgmr.msra.gmra.mrb[16].mxu0 %vm423_vm1, %v714_v28 }
 0x4ba   :  { %5622 = vmatprep.mubr.msk.bf16.mxu0 %vm6536_vm0, %v6535_v8 }
 0x54f   :  { %v6839_v29 = vpop.f32.mrb[8].mxu1 }
 0x550   :  { %v5594_v30 = vpop.f32.mrb[9].mxu1 }
 0x551   :  { %v6841_v31 = vpop.f32.mrb[10].mxu1 }
 0x552   :  { %v5595_v32 = vpop.f32.mrb[11].mxu1 }
 0x579   :  { %v705_v33 = vpop.f32.mrb[12].mxu1 }
 0x57a   :  { %v765_v34 = vmul.f32 0.088388346, %v705_v33  ;;  %v5606_v35 = vpop.f32.mrb[13].mxu1 }
 0x57b   :  { %v708_v36 = vpop.f32.mrb[14].mxu1 }
 0x57c   :  { %v766_v37 = vmul.f32 0.088388346, %v708_v36  ;;  %v5607_v38 = vpop.f32.mrb[15].mxu1  ;;  %v769_v39 = vsel %vm522_vm2, %v765_v34, -inf }
 0x57d   :  { %770 = vmax.xlane.f32.xlu0 %v769_v39 }
 0x57e   :  { %v772_v40 = vsel %vm522_vm2, %v766_v37, -inf }
 0x57f   :  { %773 = vmax.xlane.f32.xlu1 %v772_v40 }
 0x584   :  { %v6845_v41 = vpop.f32.mrb[12].mxu0 }
 0x585   :  { %v5600_v43 = vpop.f32.mrb[13].mxu0 }
 0x586   :  { %v6847_v44 = vpop.f32.mrb[14].mxu0 }
 0x587   :  { %v5601_v45 = vpop.f32.mrb[15].mxu0 }
 0x58c   :  { %v758_v46 = vpop.f32.mrb[16].mxu0 }
 0x58d   :  { %v767_v47 = vmul.f32 0.088388346, %v758_v46  ;;  %v5612_v48 = vpop.f32.mrb[17].mxu0 }
 0x58e   :  { %v761_v49 = vpop.f32.mrb[18].mxu0 }
 0x58f   :  { %v768_v50 = vmul.f32 0.088388346, %v761_v49  ;;  %v5613_v51 = vpop.f32.mrb[19].mxu0  ;;  %v775_v52 = vsel %vm522_vm2, %v767_v47, -inf }
 0x590   :  { %776 = vmax.xlane.f32.xlu0 %v775_v52 }
 0x591   :  { %v778_v53 = vsel %vm522_vm2, %v768_v50, -inf }
 0x594   :  { %779 = vmax.xlane.f32.xlu0 %v778_v53 }
 0x60a   :  { %v771_v54 = vpop.xlane.xlu0 %770 }
 0x60b   :  { %v781_v55 = vsub.f32 %v765_v34, %v771_v54 }
 0x60c   :  { %v774_v56 = vpop.xlane.xlu1 %773 }
 0x60d   :  { %v785_v57 = vmul.f32 1.442695, %v781_v55  ;;  %v782_v58 = vsub.f32 %v766_v37, %v774_v56 }
 0x60f   :  { %6194 = vpow2.f32 %v785_v57  ;;  %v787_v59 = vmul.f32 1.442695, %v782_v58 }
 0x611   :  { %6196 = vpow2.f32 %v787_v59 }
 0x619   :  { %v6195_v60 = vpop.eup %6194 }
 0x61a   :  { %v793_v61 = vsel %vm522_vm2, %v6195_v60, 0.0 }
 0x61b   :  { %v6197_v62 = vpop.eup %6196  ;;  %794 = vadd.xlane.f32.xlu0 %v793_v61 }
 0x61c   :  { %v796_v63 = vsel %vm522_vm2, %v6197_v62, 0.0 }
 0x61d   :  { %797 = vadd.xlane.f32.xlu1 %v796_v63  ;;  %v777_v0 = vpop.xlane.xlu0 %776 }
 0x61e   :  { %v783_v1 = vsub.f32 %v767_v47, %v777_v0 }
 0x620   :  { %v789_v2 = vmul.f32 1.442695, %v783_v1 }
 0x621   :  { %v780_v5 = vpop.xlane.xlu0 %779 }
 0x622   :  { %6198 = vpow2.f32 %v789_v2  ;;  %v784_v6 = vsub.f32 %v768_v50, %v780_v5 }
 0x624   :  { %v791_v7 = vmul.f32 1.442695, %v784_v6 }
 0x626   :  { %6200 = vpow2.f32 %v791_v7 }
 0x62c   :  { %v6199_v3 = vpop.eup %6198 }
 0x62d   :  { %v799_v4 = vsel %vm522_vm2, %v6199_v3, 0.0 }
 0x62e   :  { %864 = vrot.lane.b32.xlu1 %v6783_v19, %s6537_s26  ;;  %800 = vadd.xlane.f32.xlu0 %v799_v4 }
 0x630   :  { %v6201_v9 = vpop.eup %6200 }
 0x631   :  { %v802_v10 = vsel %vm522_vm2, %v6201_v9, 0.0 }
 0x632   :  { %913 = vrot.lane.b32.xlu1 %v6779_v14, %s6528_s6 }
 0x644   :  { %816 = vrot.lane.b32.xlu0 %v6785_v21, %s6537_s26 }
 0x648   :  { %911 = vrot.lane.b32.xlu0 %v6777_v12, %s6528_s6 }
 0x656   :  { %803 = vadd.xlane.f32.xlu1 %v802_v10 }
 0x667   :  { %964 = vrot.lane.b32.xlu1 %v6790_v27, %s6528_s6 }
 0x66b   :  { %962 = vrot.lane.b32.xlu1 %v6788_v25, %s6528_s6 }
 0x6a8   :  { %v795_v15 = vpop.xlane.xlu0 %794 }
 0x6aa   :  { %v798_v11 = vpop.xlane.xlu1 %797 }
 0x6ab   :  { %6202 = vrcp.f32 %v798_v11 }
 0x6ac   :  { %6204 = vrcp.f32 %v795_v15 }
 0x6ae   :  { %v865_v13 = vpop.permute.xlu1 %864 }
 0x6af   :  { %5621 = vmatpush3.bf16.msra.mxu0 %v865_v13 }
 0x6b0   :  { %5632 = vmatprep.subr.bf16.mxu0 %v6535_v8 }
 0x6b2   :  { %v914_v26 = vpop.permute.xlu1 %913 }
 0x6b3   :  { %v919_v28 = vsel %vm423_vm1, %v914_v26, 0 }
 0x6b5   :  { %v6203_v16 = vpop.eup %6202 }
 0x6b6   :  { %v6205_v18 = vpop.eup %6204  ;;  %v810_v20 = vmul.f32 %v6203_v16, %v6197_v62 }
 0x6b7   :  { %v809_v22 = vmul.f32 %v6205_v18, %v6195_v60 }
 0x6b9   :  { %v813_v24 = vpack.c.bf16 %v810_v20, %v809_v22 }
 0x6bb   :  { %v801_v17 = vpop.xlane.xlu0 %800 }
 0x6bc   :  { %6206 = vrcp.f32 %v801_v17 }
 0x6bf   :  { %v817_v23 = vpop.permute.xlu0 %816 }
 0x6c0   :  { %5615 = vmatpush3.bf16.msra.mxu1 %v817_v23 }
 0x6c1   :  { %5626 = vmatprep.subr.bf16.mxu1 %v6535_v8 }
 0x6c3   :  { %5617 = vmatmul.mubr.msk.bf16.vlgmr.msra.gmra.mrb[16].mxu1 %vm522_vm2, %v813_v24  ;;  %v912_v30 = vpop.permute.xlu0 %911 }
 0x6c4   :  { %5628 = vmatprep.mubr.msk.bf16.mxu1 %vm6536_vm0, %v6535_v8 }
 0x6c6   :  { %v6207_v33 = vpop.eup %6206 }
 0x6c7   :  { %v811_v35 = vmul.f32 %v6207_v33, %v6199_v3 }
 0x6c9   :  { %5627 = vmatpush3.bf16.xpose.msra.mxu1 %v919_v28 }
 0x6ca   :  { %5638 = vmatprep.subr.bf16.mxu1 %v6535_v8 }
 0x6d0   :  { %5629 = vmatmul.mubr.msk.bf16.vlgmr.msra.gmra.mrb[20].mxu1 %vm423_vm1, %v912_v30 }
 0x6d1   :  { %5640 = vmatprep.mubr.msk.bf16.mxu1 %vm6536_vm0, %v6535_v8 }
 0x6e3   :  { %v804_v32 = vpop.xlane.xlu1 %803 }
 0x6e4   :  { %6208 = vrcp.f32 %v804_v32 }
 0x6e7   :  { %v965_v37 = vpop.permute.xlu1 %964 }
 0x6e8   :  { %v970_v39 = vsel %vm423_vm1, %v965_v37, 0 }
 0x6eb   :  { %v963_v40 = vpop.permute.xlu1 %962 }
 0x6ee   :  { %v6209_v34 = vpop.eup %6208 }
 0x6ef   :  { %v812_v36 = vmul.f32 %v6209_v34, %v6201_v9 }
 0x6f1   :  { %v814_v38 = vpack.c.bf16 %v812_v36, %v811_v35 }
 0x6f3   :  { %5623 = vmatmul.mubr.msk.bf16.vlgmr.msra.gmra.mrb[20].mxu0 %vm522_vm2, %v814_v38 }
 0x6f4   :  { %5633 = vmatpush3.bf16.xpose.msra.mxu0 %v970_v39  ;;  %5634 = vmatprep.mubr.msk.bf16.mxu0 %vm6536_vm0, %v6535_v8 }
 0x6f5   :  { %5644 = vmatprep.subr.bf16.mxu0 %v6535_v8 }
 0x6fb   :  { %5635 = vmatmul.mubr.msk.bf16.vlgmr.msra.gmra.mrb[24].mxu0 %vm423_vm1, %v963_v40 }
 0x6fc   :  { %5646 = vmatprep.mubr.msk.bf16.mxu0 %vm6536_vm0, %v6535_v8 }
 0x796   :  { %v6885_v43 = vpop.f32.mrb[16].mxu1 }
 0x797   :  { %v5618_v45 = vpop.f32.mrb[17].mxu1 }
 0x798   :  { %v6887_v46 = vpop.f32.mrb[18].mxu1 }
 0x799   :  { %v5846_v47 = vpack.i.bf16 %v6887_v46, %v6885_v43  ;;  %v5619_v48 = vpop.f32.mrb[19].mxu1 }
 0x7a3   :  { %v955_v49 = vpop.f32.mrb[20].mxu1 }
 0x7a4   :  { %v1013_v50 = vmul.f32 0.088388346, %v955_v49  ;;  %v5630_v51 = vpop.f32.mrb[21].mxu1 }
 0x7a5   :  { %v958_v52 = vpop.f32.mrb[22].mxu1 }
 0x7a6   :  { %v1014_v53 = vmul.f32 0.088388346, %v958_v52  ;;  %v5631_v54 = vpop.f32.mrb[23].mxu1  ;;  %v1017_v55 = vsel %vm522_vm2, %v1013_v50, -inf }
 0x7a7   :  { %1018 = vmax.xlane.f32.xlu0 %v1017_v55 }
 0x7a8   :  { %v1020_v56 = vsel %vm522_vm2, %v1014_v53, -inf }
 0x7a9   :  { %1021 = vmax.xlane.f32.xlu1 %v1020_v56 }
 0x7c6   :  { %v6893_v57 = vpop.f32.mrb[20].mxu0 }
 0x7c7   :  { %v5624_v58 = vpop.f32.mrb[21].mxu0 }
 0x7c8   :  { %v6895_v59 = vpop.f32.mrb[22].mxu0 }
 0x7c9   :  { %v5851_v60 = vpack.i.bf16 %v6895_v59, %v6893_v57  ;;  %v5625_v61 = vpop.f32.mrb[23].mxu0 }
 0x7ce   :  { %v1006_v62 = vpop.f32.mrb[24].mxu0 }
 0x7cf   :  { %v1015_v63 = vmul.f32 0.088388346, %v1006_v62  ;;  %v5636_v0 = vpop.f32.mrb[25].mxu0 }
 0x7d0   :  { %v1009_v1 = vpop.f32.mrb[26].mxu0 }
 0x7d1   :  { %v1016_v2 = vmul.f32 0.088388346, %v1009_v1  ;;  %v5637_v3 = vpop.f32.mrb[27].mxu0  ;;  %v1023_v4 = vsel %vm522_vm2, %v1015_v63, -inf }
 0x7d2   :  { %1024 = vmax.xlane.f32.xlu0 %v1023_v4 }
 0x7d3   :  { %v1026_v5 = vsel %vm522_vm2, %v1016_v2, -inf }
 0x7d6   :  { %1027 = vmax.xlane.f32.xlu0 %v1026_v5 }
 0x834   :  { %v1019_v6 = vpop.xlane.xlu0 %1018 }
 0x835   :  { %v1029_v7 = vsub.f32 %v1013_v50, %v1019_v6 }
 0x836   :  { %v1022_v9 = vpop.xlane.xlu1 %1021 }
 0x837   :  { %v1033_v10 = vmul.f32 1.442695, %v1029_v7  ;;  %v1030_v11 = vsub.f32 %v1014_v53, %v1022_v9 }
 0x839   :  { %6210 = vpow2.f32 %v1033_v10  ;;  %v1035_v13 = vmul.f32 1.442695, %v1030_v11 }
 0x83b   :  { %6212 = vpow2.f32 %v1035_v13 }
 0x843   :  { %v6211_v15 = vpop.eup %6210 }
 0x844   :  { %v1041_v16 = vsel %vm522_vm2, %v6211_v15, 0.0 }
 0x845   :  { %v6213_v17 = vpop.eup %6212  ;;  %1042 = vadd.xlane.f32.xlu0 %v1041_v16 }
 0x846   :  { %v1044_v18 = vsel %vm522_vm2, %v6213_v17, 0.0 }
 0x847   :  { %1045 = vadd.xlane.f32.xlu1 %v1044_v18 }
 0x858   :  { %1110 = vrot.lane.b32.xlu1 %v6783_v19, %s6528_s6 }
 0x85c   :  { %1159 = vrot.lane.b32.xlu1 %v6779_v14, %s6538_s16 }
 0x85f   :  { %v1025_v20 = vpop.xlane.xlu0 %1024 }
 0x860   :  { %v1031_v22 = vsub.f32 %v1015_v63, %v1025_v20 }
 0x862   :  { %v1037_v23 = vmul.f32 1.442695, %v1031_v22 }
 0x863   :  { %v1028_v24 = vpop.xlane.xlu0 %1027 }
 0x864   :  { %6214 = vpow2.f32 %v1037_v23  ;;  %v1032_v26 = vsub.f32 %v1016_v2, %v1028_v24 }
 0x866   :  { %v1039_v30 = vmul.f32 1.442695, %v1032_v26 }
 0x868   :  { %6216 = vpow2.f32 %v1039_v30 }
 0x86e   :  { %v6215_v28 = vpop.eup %6214 }
 0x86f   :  { %v1047_v32 = vsel %vm522_vm2, %v6215_v28, 0.0 }
 0x870   :  { %1048 = vadd.xlane.f32.xlu0 %v1047_v32 }
 0x872   :  { %v6217_v33 = vpop.eup %6216 }
 0x873   :  { %v1050_v34 = vsel %vm522_vm2, %v6217_v33, 0.0 }
 0x880   :  { %1051 = vadd.xlane.f32.xlu1 %v1050_v34 }
 0x886   :  { %1063 = vrot.lane.b32.xlu0 %v6785_v21, %s6528_s6 }
 0x88a   :  { %1157 = vrot.lane.b32.xlu0 %v6777_v12, %s6538_s16 }
 0x891   :  { %1210 = vrot.lane.b32.xlu1 %v6790_v27, %s6538_s16 }
 0x895   :  { %1208 = vrot.lane.b32.xlu1 %v6788_v25, %s6538_s16 }
 0x8d2   :  { %v1043_v36 = vpop.xlane.xlu0 %1042 }
 0x8d4   :  { %v1046_v14 = vpop.xlane.xlu1 %1045 }
 0x8d5   :  { %6218 = vrcp.f32 %v1046_v14 }
 0x8d6   :  { %6220 = vrcp.f32 %v1043_v36 }
 0x8d8   :  { %v1111_v35 = vpop.permute.xlu1 %1110 }
 0x8d9   :  { %5645 = vmatpush3.bf16.msra.mxu0 %v1111_v35 }
 0x8da   :  { %5656 = vmatprep.subr.bf16.mxu0 %v6535_v8 }
 0x8dc   :  { %v1160_v25 = vpop.permute.xlu1 %1159 }
 0x8dd   :  { %v1165_v27 = vsel %vm423_vm1, %v1160_v25, 0 }
 0x8df   :  { %v6219_v37 = vpop.eup %6218 }
 0x8e0   :  { %v6221_v39 = vpop.eup %6220  ;;  %v1058_v40 = vmul.f32 %v6219_v37, %v6213_v17 }
 0x8e1   :  { %v1057_v45 = vmul.f32 %v6221_v39, %v6211_v15 }
 0x8e3   :  { %v1061_v48 = vpack.c.bf16 %v1058_v40, %v1057_v45 }
 0x8fd   :  { %v1049_v38 = vpop.xlane.xlu0 %1048 }
 0x8fe   :  { %6222 = vrcp.f32 %v1049_v38 }
 0x901   :  { %v1064_v12 = vpop.permute.xlu0 %1063 }
 0x902   :  { %5639 = vmatpush3.bf16.msra.mxu1 %v1064_v12 }
 0x903   :  { %5650 = vmatprep.subr.bf16.mxu1 %v6535_v8 }
 0x905   :  { %5641 = vmatmul.mubr.msk.bf16.vlgmr.msra.gmra.mrb[24].mxu1 %vm522_vm2, %v1061_v48  ;;  %v1158_v50 = vpop.permute.xlu0 %1157 }
 0x906   :  { %5652 = vmatprep.mubr.msk.bf16.mxu1 %vm6536_vm0, %v6535_v8 }
 0x908   :  { %v6223_v51 = vpop.eup %6222 }
 0x909   :  { %v1059_v53 = vmul.f32 %v6223_v51, %v6215_v28 }
 0x90b   :  { %5651 = vmatpush3.bf16.xpose.msra.mxu1 %v1165_v27 }
 0x90c   :  { %5662 = vmatprep.subr.bf16.mxu1 %v6535_v8 }
 0x90d   :  { %v1052_v49 = vpop.xlane.xlu1 %1051 }
 0x90e   :  { %6224 = vrcp.f32 %v1052_v49 }
 0x911   :  { %v1211_v55 = vpop.permute.xlu1 %1210 }
 0x912   :  { %5653 = vmatmul.mubr.msk.bf16.vlgmr.msra.gmra.mrb[28].mxu1 %vm423_vm1, %v1158_v50  ;;  %v1216_v58 = vsel %vm423_vm1, %v1211_v55, 0 }
 0x913   :  { %5664 = vmatprep.mubr.msk.bf16.mxu1 %vm6536_vm0, %v6535_v8 }
 0x915   :  { %v1209_v61 = vpop.permute.xlu1 %1208 }
 0x918   :  { %v6225_v52 = vpop.eup %6224 }
 0x919   :  { %v1060_v54 = vmul.f32 %v6225_v52, %v6217_v33 }
 0x91b   :  { %v1062_v56 = vpack.c.bf16 %v1060_v54, %v1059_v53 }
 0x91d   :  { %5647 = vmatmul.mubr.msk.bf16.vlgmr.msra.gmra.mrb[28].mxu0 %vm522_vm2, %v1062_v56 }
 0x91e   :  { %5657 = vmatpush3.bf16.xpose.msra.mxu0 %v1216_v58  ;;  %5658 = vmatprep.mubr.msk.bf16.mxu0 %vm6536_vm0, %v6535_v8 }
 0x91f   :  { %5668 = vmatprep.subr.bf16.mxu0 %v6535_v8 }
 0x925   :  { %5659 = vmatmul.mubr.msk.bf16.vlgmr.msra.gmra.mrb[32].mxu0 %vm423_vm1, %v1209_v61 }
 0x926   :  { %5670 = vmatprep.mubr.msk.bf16.mxu0 %vm6536_vm0, %v6535_v8 }
 0x9d8   :  { %v1103_v62 = vpop.f32.mrb[24].mxu1 }
 0x9d9   :  { %v5642_v63 = vpop.f32.mrb[25].mxu1 }
 0x9da   :  { %v1106_v0 = vpop.f32.mrb[26].mxu1 }
 0x9db   :  { %v5856_v1 = vpack.i.bf16 %v1106_v0, %v1103_v62  ;;  %v5643_v2 = vpop.f32.mrb[27].mxu1 }
 0x9dc   :  { %v5938_v2 = vld [vmem:[#allocation2] sm:$0xff]  }
 0x9e5   :  { %v1201_v3 = vpop.f32.mrb[28].mxu1 }
 0x9e6   :  { %v1259_v4 = vmul.f32 0.088388346, %v1201_v3  ;;  %v5654_v5 = vpop.f32.mrb[29].mxu1  ;;  %v5939_v3 = vld [vmem:[#allocation2 + $0x8] sm:$0xff]  }
 0x9e7   :  { %v1204_v6 = vpop.f32.mrb[30].mxu1  ;;  %v5941_v5 = vld [vmem:[#allocation2 + $0x18] sm:$0xff]  }
 0x9e8   :  { %v1260_v7 = vmul.f32 0.088388346, %v1204_v6  ;;  %v5655_v9 = vpop.f32.mrb[31].mxu1  ;;  %v1263_v10 = vsel %vm522_vm2, %v1259_v4, -inf  ;;  %v5942_v6 = vld [vmem:[#allocation2 + $0x20] sm:$0xff]  }
 0x9e9   :  { %1264 = vmax.xlane.f32.xlu0 %v1263_v10  ;;  %v5944_v9 = vld [vmem:[#allocation2 + $0x30] sm:$0xff]  }
 0x9ea   :  { %v1266_v11 = vsel %vm522_vm2, %v1260_v7, -inf }
 0x9eb   :  { %1267 = vmax.xlane.f32.xlu1 %v1266_v11 }
 0x9f0   :  { %v1150_v13 = vpop.f32.mrb[28].mxu0 }
 0x9f1   :  { %v5648_v15 = vpop.f32.mrb[29].mxu0 }
 0x9f2   :  { %v1153_v16 = vpop.f32.mrb[30].mxu0 }
 0x9f3   :  { %v5861_v17 = vpack.i.bf16 %v1153_v16, %v1150_v13  ;;  %v5649_v18 = vpop.f32.mrb[31].mxu0 }
 0x9f8   :  { %v1252_v20 = vpop.f32.mrb[32].mxu0 }
 0x9f9   :  { %v1261_v22 = vmul.f32 0.088388346, %v1252_v20  ;;  %v5660_v23 = vpop.f32.mrb[33].mxu0 }
 0x9fa   :  { %v1255_v24 = vpop.f32.mrb[34].mxu0 }
 0x9fb   :  { %v1262_v26 = vmul.f32 0.088388346, %v1255_v24  ;;  %v5661_v28 = vpop.f32.mrb[35].mxu0  ;;  %v1269_v30 = vsel %vm522_vm2, %v1261_v22, -inf }
 0x9fc   :  { %1270 = vmax.xlane.f32.xlu0 %v1269_v30 }
 0x9fd   :  { %v1272_v32 = vsel %vm522_vm2, %v1262_v26, -inf }
 0xa00   :  { %1273 = vmax.xlane.f32.xlu0 %v1272_v32 }
 0xa76   :  { %v1265_v33 = vpop.xlane.xlu0 %1264 }
 0xa77   :  { %v1275_v34 = vsub.f32 %v1259_v4, %v1265_v33  ;;  %v5940_v4 = vld [vmem:[#allocation2 + $0x10] sm:$0xff]  }
 0xa78   :  { %v1268_v14 = vpop.xlane.xlu1 %1267 }
 0xa79   :  { %v1279_v35 = vmul.f32 1.442695, %v1275_v34  ;;  %v1276_v36 = vsub.f32 %v1260_v7, %v1268_v14  ;;  %v5943_v7 = vld [vmem:[#allocation2 + $0x28] sm:$0xff]  }
 0xa7b   :  { %6226 = vpow2.f32 %v1279_v35  ;;  %v1281_v37 = vmul.f32 1.442695, %v1276_v36 }
 0xa7d   :  { %6228 = vpow2.f32 %v1281_v37 }
 0xa85   :  { %v6227_v38 = vpop.eup %6226 }
 0xa86   :  { %v1287_v39 = vsel %vm522_vm2, %v6227_v38, 0.0 }
 0xa87   :  { %v6229_v40 = vpop.eup %6228  ;;  %1288 = vadd.xlane.f32.xlu0 %v1287_v39 }
 0xa88   :  { %v1290_v45 = vsel %vm522_vm2, %v6229_v40, 0.0 }
 0xa89   :  { %1291 = vadd.xlane.f32.xlu1 %v1290_v45  ;;  %v1271_v12 = vpop.xlane.xlu0 %1270 }
 0xa8a   :  { %v1277_v48 = vsub.f32 %v1261_v22, %v1271_v12 }
 0xa8c   :  { %v1283_v25 = vmul.f32 1.442695, %v1277_v48 }
 0xa8d   :  { %v1274_v27 = vpop.xlane.xlu0 %1273 }
 0xa8e   :  { %6230 = vpow2.f32 %v1283_v25  ;;  %v1278_v49 = vsub.f32 %v1262_v26, %v1274_v27 }
 0xa90   :  { %v1285_v50 = vmul.f32 1.442695, %v1278_v49 }
 0xa92   :  { %6232 = vpow2.f32 %v1285_v50 }
 0xa98   :  { %v6231_v51 = vpop.eup %6230 }
 0xa99   :  { %v1293_v52 = vsel %vm522_vm2, %v6231_v51, 0.0 }
 0xa9a   :  { %1294 = vadd.xlane.f32.xlu0 %v1293_v52 }
 0xa9c   :  { %v6233_v53 = vpop.eup %6232 }
 0xa9d   :  { %v1296_v54 = vsel %vm522_vm2, %v6233_v53, 0.0 }
 0xa9e   :  { %1297 = vadd.xlane.f32.xlu1 %v1296_v54 }
 0xaaf   :  { %1356 = vrot.lane.b32.xlu1 %v6783_v19, %s6538_s16 }
 0xab0   :  { %1309 = vrot.lane.b32.xlu0 %v6785_v21, %s6538_s16 }
 0xab3   :  { %5847 = vrot.lane.b32.xlu1 %v5846_v47, %s6538_s16 }
 0xab4   :  { %5857 = vrot.lane.b32.xlu0 %v5856_v1, %s6528_s6 }
 0xab7   :  { %5852 = vrot.lane.b32.xlu1 %v5851_v60, %s6538_s16 }
 0xabb   :  { %5862 = vrot.lane.b32.xlu1 %v5861_v17, %s6528_s6  ;;  %v5945_v17 = vld [vmem:[#allocation2 + $0x38] sm:$0xff]  }
 0xb14   :  { %v1289_v56 = vpop.xlane.xlu0 %1288 }
 0xb16   :  { %v1292_v55 = vpop.xlane.xlu1 %1291 }
 0xb17   :  { %6234 = vrcp.f32 %v1292_v55 }
 0xb18   :  { %6236 = vrcp.f32 %v1289_v56 }
 0xb21   :  { %v6235_v19 = vpop.eup %6234 }
 0xb22   :  { %v6237_v58 = vpop.eup %6236  ;;  %v1304_v61 = vmul.f32 %v6235_v19, %v6229_v40 }
 0xb23   :  { %v1303_v43 = vmul.f32 %v6237_v58, %v6227_v38 }
 0xb25   :  { %v1307_v62 = vpack.c.bf16 %v1304_v61, %v1303_v43 }
 0xb27   :  { %v1295_v21 = vpop.xlane.xlu0 %1294 }
 0xb28   :  { %6238 = vrcp.f32 %v1295_v21 }
 0xb2b   :  { %v1298_v46 = vpop.xlane.xlu1 %1297  ;;  %v1310_v47 = vpop.permute.xlu0 %1309 }
 0xb2c   :  { %6240 = vrcp.f32 %v1298_v46  ;;  %5663 = vmatpush3.bf16.msra.mxu1 %v1310_v47 }
 0xb2d   :  { %5674 = vmatprep.subr.bf16.mxu1 %v5938_v2 }
 0xb2f   :  { %v1357_v63 = vpop.permute.xlu1 %1356  ;;  %5665 = vmatmul.mubr.msk.bf16.vlgmr.msra.gmra.mrb[32].mxu1 %vm522_vm2, %v1307_v62  ;;  %v5858_v32 = vpop.permute.xlu0 %5857 }
 0xb30   :  { %5669 = vmatpush3.bf16.msra.mxu0 %v1357_v63  ;;  %5675 = vmatpush3.bf16.msra.mxu1 %v5938_v2  ;;  %v5860_v14 = vunpack.i.h.bf16 %v5858_v32  ;;  %v5859_v35 = vunpack.i.l.bf16 %v5858_v32  ;;  %v6404_v2 = vld [vmem:[%s7643_s0 + $0x10] sm:$0xff] }
 0xb31   :  { %5676 = vmatprep.subr.bf16.mxu1 %v5939_v3 }
 0xb32   :  { %v6239_v57 = vpop.eup %6238 }
 0xb33   :  { %v1305_v60 = vmul.f32 %v6239_v57, %v6231_v51  ;;  %v5848_v26 = vpop.permute.xlu1 %5847  ;;  %v6402_v57 = vld [vmem:[%s7643_s0] sm:$0xff] }
 0xb34   :  { %5677 = vmatpush3.bf16.msra.mxu1 %v5939_v3  ;;  %v5850_v28 = vunpack.i.h.bf16 %v5848_v26  ;;  %v5849_v30 = vunpack.i.l.bf16 %v5848_v26 }
 0xb35   :  { %5678 = vmatprep.subr.bf16.mxu1 %v5940_v4 }
 0xb36   :  { %v6241_v59 = vpop.eup %6240  ;;  %v1452_v33 = vsel %vm423_vm1, %v6841_v31, %v5850_v28  ;;  %v1451_v34 = vsel %vm423_vm1, %v6839_v29, %v5849_v30 }
 0xb37   :  { %v1306_v0 = vmul.f32 %v6241_v59, %v6233_v53  ;;  %v5853_v37 = vpop.permute.xlu1 %5852  ;;  %v1456_v40 = vsel %vm1455_vm3, %v1451_v34, %v5859_v35  ;;  %v1457_v45 = vsel %vm1455_vm3, %v1452_v33, %v5860_v14 }
 0xb38   :  { %5679 = vmatpush3.bf16.msra.mxu1 %v5940_v4  ;;  %v5855_v29 = vunpack.i.h.bf16 %v5853_v37  ;;  %v5854_v27 = vunpack.i.l.bf16 %v5853_v37 }
 0xb39   :  { %v1308_v1 = vpack.c.bf16 %v1306_v0, %v1305_v60  ;;  %5680 = vmatprep.subr.bf16.mxu1 %v5941_v5  ;;  %v6403_v0 = vld [vmem:[%s7643_s0 + $0x8] sm:$0xff] }
 0xb3a   :  { %v1454_v52 = vsel %vm423_vm1, %v6847_v44, %v5855_v29  ;;  %v1453_v53 = vsel %vm423_vm1, %v6845_v41, %v5854_v27  ;;  %v5100_v44 = vld [vmem:[%s7647_s4] ss:$0 sm:$0xff]  ;;  %v5967_v29 = vld [vmem:[#allocation5 + $0x68] ss:$16 sps:$4 sm:$0xff]   ;;  %v5972_v27 = vld [vmem:[#allocation5 + $0x84] ss:$16 sps:$4 sm:$0xff]  }
 0xb3b   :  { %5671 = vmatmul.mubr.msk.bf16.vlgmr.msra.gmra.mrb[36].mxu0 %vm522_vm2, %v1308_v1  ;;  %v5863_v25 = vpop.permute.xlu1 %5862 }
 0xb3c   :  { %1872 = vmatprep.mubr.bf16.mxu0 %v6534_v42  ;;  %5681 = vmatpush3.bf16.msra.mxu1 %v5941_v5  ;;  %v5865_v49 = vunpack.i.h.bf16 %v5863_v25  ;;  %v5864_v50 = vunpack.i.l.bf16 %v5863_v25  ;;  %v6405_v5 = vld [vmem:[%s7643_s0 + $0x18] sm:$0xff]  ;;  %v5964_v25 = vld [vmem:[#allocation5 + $0x60] ss:$16 sps:$4 sm:$0xff]  }
 0xb3d   :  { %5682 = vmatprep.subr.bf16.mxu1 %v5942_v6 }
 0xb3e   :  { %v1458_v56 = vsel %vm1455_vm3, %v1453_v53, %v5864_v50  ;;  %v1459_v19 = vsel %vm1455_vm3, %v1454_v52, %v5865_v49  ;;  %v5975_v49 = vld [vmem:[#allocation5 + $0x8c] ss:$16 sps:$4 sm:$0xff]   ;;  %v5970_v50 = vld [vmem:[#allocation5 + $0x80] ss:$16 sps:$4 sm:$0xff]   ;;  %v5978_v52 = vld [vmem:[#allocation5 + $0xa4] ss:$16 sps:$4 sm:$0xff]  }
 0xb3f   :  { %v5981_v53 = vld [vmem:[#allocation5 + $0xac] ss:$16 sps:$4 sm:$0xff]  }
 0xb40   :  { %5683 = vmatpush3.bf16.msra.mxu1 %v5942_v6 }
 0xb41   :  { %5684 = vmatprep.subr.bf16.mxu1 %v5943_v7 }
 0xb44   :  { %5685 = vmatpush3.bf16.msra.mxu1 %v5943_v7  ;;  %v5946_v7 = vld [vmem:[#allocation5] ss:$16 sps:$4 sm:$0xff]  }
 0xb45   :  { %5686 = vmatprep.subr.bf16.mxu1 %v5944_v9 }
 0xb48   :  { %5687 = vmatpush3.bf16.msra.mxu1 %v5944_v9  ;;  %v5948_v9 = vld [vmem:[#allocation5 + $0x4] ss:$16 sps:$4 sm:$0xff]  }
 0xb49   :  { %5688 = vmatprep.subr.bf16.mxu1 %v5945_v17  ;;  %1840 = vmatprep.subr.bf16.mxu0 %v5948_v9 }
 0xb4a   :  { %1841 = vmatpush1.bf16.msra.mxu0 %v5946_v7 }
 0xb4c   :  { %5689 = vmatpush3.bf16.msra.mxu1 %v5945_v17  ;;  %v5955_v17 = vld [vmem:[#allocation5 + $0x28] ss:$16 sps:$4 sm:$0xff]  }
 0xc02   :  { %v1349_v10 = vpop.f32.mrb[32].mxu1 }
 0xc03   :  { %v5666_v11 = vpop.f32.mrb[33].mxu1 }
 0xc04   :  { %v1352_v13 = vpop.f32.mrb[34].mxu1  ;;  %v5951_v11 = vld [vmem:[#allocation5 + $0xc] ss:$16 sps:$4 sm:$0xff]  }
 0xc05   :  { %v5866_v15 = vpack.i.bf16 %v1352_v13, %v1349_v10  ;;  %v5667_v16 = vpop.f32.mrb[35].mxu1  ;;  %v5949_v10 = vld [vmem:[#allocation5 + $0x8] ss:$16 sps:$4 sm:$0xff]   ;;  %v5954_v13 = vld [vmem:[#allocation5 + $0x24] ss:$16 sps:$4 sm:$0xff]   ;;  %1893 = vmatprep.subr.bf16.mxu1 %v5951_v11 }
 0xc06   :  { %v5952_v16 = vld [vmem:[#allocation5 + $0x20] ss:$16 sps:$4 sm:$0xff]   ;;  %1842 = vmatprep.subr.bf16.mxu0 %v5954_v13 }
 0xc07   :  { %5867 = vrot.lane.b32.xlu0 %v5866_v15, %s6537_s26  ;;  %v5957_v15 = vld [vmem:[#allocation5 + $0x2c] ss:$16 sps:$4 sm:$0xff]   ;;  %1843 = vmatpush1.bf16.msra.mxu0 %v5952_v16 }
 0xc0e   :  { %v1396_v18 = vpop.f32.mrb[36].mxu0 }
 0xc0f   :  { %v5672_v20 = vpop.f32.mrb[37].mxu0 }
 0xc10   :  { %v1399_v22 = vpop.f32.mrb[38].mxu0  ;;  %v5963_v20 = vld [vmem:[#allocation5 + $0x4c] ss:$16 sps:$4 sm:$0xff]  }
 0xc11   :  { %v5871_v23 = vpack.i.bf16 %v1399_v22, %v1396_v18  ;;  %v5673_v24 = vpop.f32.mrb[39].mxu0  ;;  %v5960_v18 = vld [vmem:[#allocation5 + $0x44] ss:$16 sps:$4 sm:$0xff]   ;;  %v5958_v22 = vld [vmem:[#allocation5 + $0x40] ss:$16 sps:$4 sm:$0xff]  }
 0xc12   :  { %1844 = vmatprep.subr.bf16.mxu0 %v5960_v18 }
 0xc13   :  { %5872 = vrot.lane.b32.xlu1 %v5871_v23, %s6537_s26  ;;  %v5961_v23 = vld [vmem:[#allocation5 + $0x48] ss:$16 sps:$4 sm:$0xff]   ;;  %1845 = vmatpush1.bf16.msra.mxu0 %v5958_v22 }
 0xc79   :  { %v5868_v36 = vpop.permute.xlu0 %5867 }
 0xc7a   :  { %v5870_v38 = vunpack.i.h.bf16 %v5868_v36  ;;  %v5869_v39 = vunpack.i.l.bf16 %v5868_v36 }
 0xc7c   :  { %v1461_v12 = vsel %vm1460_vm4, %v1456_v40, %v5869_v39  ;;  %v1462_v48 = vsel %vm1460_vm4, %v1457_v45, %v5870_v38 }
 0xc7d   :  { %v1465_v31 = vpack.c.bf16 %v1462_v48, %v1461_v12  ;;  %v5966_v48 = vld [vmem:[#allocation5 + $0x64] ss:$16 sps:$4 sm:$0xff]  }
 0xc7e   :  { %1846 = vmatprep.subr.bf16.mxu0 %v5966_v48  ;;  %v6005_v48 = vld [vmem:[#allocation7 + $0x90] sm:$0xff]  }
 0xc7f   :  { %5690 = vmatprep.mubr.bf16.mxu1 %v1465_v31  ;;  %v5969_v31 = vld [vmem:[#allocation5 + $0x6c] ss:$16 sps:$4 sm:$0xff]   ;;  %1847 = vmatpush1.bf16.msra.mxu0 %v5964_v25 }
 0xc80   :  { %1848 = vmatprep.subr.bf16.mxu0 %v5972_v27  ;;  %v6007_v25 = vld [vmem:[#allocation7 + $0xd8] sm:$0xff]  }
 0xc81   :  { %v6009_v27 = vld [vmem:[#allocation7 + $0x98] sm:$0xff]  }
 0xc83   :  { %1849 = vmatpush1.bf16.msra.mxu0 %v5970_v50  ;;  %v6011_v50 = vld [vmem:[#allocation7 + $0xe0] sm:$0xff]  }
 0xc84   :  { %1850 = vmatprep.subr.bf16.mxu0 %v5978_v52  ;;  %v6013_v52 = vld [vmem:[#allocation7 + $0xa0] sm:$0xff]  }
 0xc85   :  { %v5873_v51 = vpop.permute.xlu1 %5872 }
 0xc86   :  { %v5875_v54 = vunpack.i.h.bf16 %v5873_v51  ;;  %v5874_v55 = vunpack.i.l.bf16 %v5873_v51  ;;  %v5973_v51 = vld [vmem:[#allocation5 + $0x88] ss:$16 sps:$4 sm:$0xff]  }
 0xc88   :  { %v1464_v21 = vsel %vm1460_vm4, %v1459_v19, %v5875_v54  ;;  %v1463_v58 = vsel %vm1460_vm4, %v1458_v56, %v5874_v55  ;;  %v5976_v54 = vld [vmem:[#allocation5 + $0xa0] ss:$16 sps:$4 sm:$0xff]   ;;  %v5979_v55 = vld [vmem:[#allocation5 + $0xa8] ss:$16 sps:$4 sm:$0xff]   ;;  %v5984_v56 = vld [vmem:[#allocation5 + $0xc4] ss:$16 sps:$4 sm:$0xff]  }
 0xc89   :  { %v1466_v61 = vpack.c.bf16 %v1464_v21, %v1463_v58  ;;  %1851 = vmatpush1.bf16.msra.mxu0 %v5976_v54  ;;  %v5982_v19 = vld [vmem:[#allocation5 + $0xc0] ss:$16 sps:$4 sm:$0xff]   ;;  %v5985_v21 = vld [vmem:[#allocation5 + $0xc8] ss:$16 sps:$4 sm:$0xff]   ;;  %v5987_v58 = vld [vmem:[#allocation5 + $0xcc] ss:$16 sps:$4 sm:$0xff]  }
 0xc8a   :  { %1852 = vmatprep.subr.bf16.mxu0 %v5984_v56  ;;  %v6015_v54 = vld [vmem:[#allocation7 + $0xe8] sm:$0xff]  }
 0xc8b   :  { %5691 = vmatmul.mubr.bf16.vlgmr.msra.gmra.mrb[36].mxu1 %v1466_v61  ;;  %v5990_v61 = vld [vmem:[#allocation5 + $0xe4] ss:$16 sps:$4 sm:$0xff]   ;;  %v6017_v56 = vld [vmem:[#allocation7 + $0xa8] sm:$0xff]  }
 0xc8c   :  { %1925 = vmatprep.mubr.bf16.mxu1 %v6534_v42  ;;  %1894 = vmatpush1.bf16.msra.mxu1 %v5949_v10 }
 0xc8d   :  { %1895 = vmatprep.subr.bf16.mxu1 %v5957_v15  ;;  %1853 = vmatpush1.bf16.msra.mxu0 %v5982_v19  ;;  %v5109_v15 = vld [vmem:[%s7648_s5] ss:$0 sm:$0xff]  ;;  %v6018_v19 = vld [vmem:[#allocation7 + $0x70] sm:$0xff]  }
 0xc8e   :  { %1854 = vmatprep.subr.bf16.mxu0 %v5990_v61  ;;  %v6021_v61 = vld [vmem:[#allocation7 + $0xb0] sm:$0xff]  }
 0xc90   :  { %1896 = vmatpush1.bf16.msra.mxu1 %v5955_v17 }
 0xc91   :  { %1897 = vmatprep.subr.bf16.mxu1 %v5963_v20 }
 0xc94   :  { %1898 = vmatpush1.bf16.msra.mxu1 %v5961_v23 }
 0xc95   :  { %1899 = vmatprep.subr.bf16.mxu1 %v5969_v31  ;;  %v6006_v31 = vld [vmem:[#allocation7 + $0x58] sm:$0xff]  }
 0xc98   :  { %1900 = vmatpush1.bf16.msra.mxu1 %v5967_v29  ;;  %v6008_v29 = vld [vmem:[#allocation7 + $0x18] sm:$0xff]  }
 0xc99   :  { %1901 = vmatprep.subr.bf16.mxu1 %v5975_v49  ;;  %v6010_v49 = vld [vmem:[#allocation7 + $0x60] sm:$0xff]  }
 0xc9c   :  { %1902 = vmatpush1.bf16.msra.mxu1 %v5973_v51  ;;  %v6012_v51 = vld [vmem:[#allocation7 + $0x20] sm:$0xff]  }
 0xc9d   :  { %1903 = vmatprep.subr.bf16.mxu1 %v5981_v53  ;;  %v6014_v53 = vld [vmem:[#allocation7 + $0x68] sm:$0xff]  }
 0xca0   :  { %1904 = vmatpush1.bf16.msra.mxu1 %v5979_v55  ;;  %v6016_v55 = vld [vmem:[#allocation7 + $0x28] sm:$0xff]  }
 0xca1   :  { %1905 = vmatprep.subr.bf16.mxu1 %v5987_v58  ;;  %v6020_v58 = vld [vmem:[#allocation7 + $0x30] sm:$0xff]  }
 0xca4   :  { %1906 = vmatpush1.bf16.msra.mxu1 %v5985_v21  ;;  %v6019_v21 = vld [vmem:[#allocation7 + $0xf0] sm:$0xff]  }
 0xd5e   :  { %v5692_v43 = vpop.f32.mrb[36].mxu1 }
 0xd5f   :  { %v1572_v41 = vpop.f32.mrb[37].mxu1  ;;  %v1581_v63 = vadd.f32 %v5692_v43, %v5100_v44  ;;  %v5988_v43 = vld [vmem:[#allocation5 + $0xe0] ss:$16 sps:$4 sm:$0xff]  }
 0xd60   :  { %v1573_v46 = vadd.f32 %v5100_v44, %v1572_v41  ;;  %v5693_v47 = vpop.f32.mrb[38].mxu1  ;;  %v5991_v41 = vld [vmem:[#allocation5 + $0xe8] ss:$16 sps:$4 sm:$0xff]   ;;  %1855 = vmatpush1.bf16.msra.mxu0 %v5988_v43 }
 0xd61   :  { %v1575_v62 = vpop.f32.mrb[39].mxu1  ;;  %v6996_v3 = vadd.f32 %v6404_v2, %v1581_v63  ;;  %v1584_v4 = vadd.f32 %v5693_v47, %v5100_v44  ;;  %v6023_v43 = vld [vmem:[#allocation7 + $0xf8] sm:$0xff]  }
 0xd62   :  { %v6985_v59 = vadd.f32 %v6402_v57, %v1573_v46  ;;  %v1576_v60 = vadd.f32 %v5100_v44, %v1575_v62  ;;  %v5993_v44 = vld [vmem:[#allocation5 + $0xec] ss:$16 sps:$4 sm:$0xff]  }
 0xd63   :  { %v7003_v6 = vadd.f32 %v6405_v5, %v1584_v4  ;;  %1907 = vmatprep.subr.bf16.mxu1 %v5993_v44  ;;  %v6022_v44 = vld [vmem:[#allocation7 + $0x78] sm:$0xff]  }
 0xd64   :  { %v6990_v1 = vadd.f32 %v6403_v0, %v1576_v60  ;;  %1592 = vadd.xlane.f32.xlu0 %v6985_v59  ;;  %1908 = vmatpush1.bf16.msra.mxu1 %v5991_v41  ;;  %v6024_v41 = vld [vmem:[#allocation7 + $0x38] sm:$0xff]  }
 0xd66   :  { %1594 = vadd.xlane.f32.xlu1 %v6990_v1 }
 0xd68   :  { %1596 = vadd.xlane.f32.xlu0 %v6996_v3 }
 0xd6c   :  { %1598 = vadd.xlane.f32.xlu0 %v7003_v6 }
 0xdf1   :  { %v1593_v24 = vpop.xlane.xlu0 %1592 }
 0xdf2   :  { %v1600_v26 = vmul.f32 0.0078125, %v1593_v24 }
 0xdf3   :  { %v1595_v28 = vpop.xlane.xlu1 %1594 }
 0xdf4   :  { %v7007_v30 = vsub.f32 %v6985_v59, %v1600_v26  ;;  %v1601_v32 = vmul.f32 0.0078125, %v1595_v28 }
 0xdf5   :  { %v1597_v33 = vpop.xlane.xlu0 %1596 }
 0xdf6   :  { %v7010_v34 = vsub.f32 %v6990_v1, %v1601_v32  ;;  %v1602_v14 = vmul.f32 0.0078125, %v1597_v33  ;;  %v1608_v35 = vmul.f32 %v7007_v30, %v7007_v30  ;;  %v5994_v33 = vld [vmem:[#allocation7 + $0x40] sm:$0xff]  }
 0xdf7   :  { %5394 = vmatprep.subr.bf16.mxu0 %v5994_v33 }
 0xdf8   :  { %v7015_v36 = vsub.f32 %v6996_v3, %v1602_v14  ;;  %1612 = vadd.xlane.f32.xlu0 %v1608_v35  ;;  %v1609_v37 = vmul.f32 %v7010_v34, %v7010_v34  ;;  %v5996_v14 = vld [vmem:[#allocation7] sm:$0xff]  }
 0xdf9   :  { %v1599_v38 = vpop.xlane.xlu0 %1598  ;;  %v5997_v35 = vld [vmem:[#allocation7 + $0x80] sm:$0xff]  }
 0xdfa   :  { %v1603_v39 = vmul.f32 0.0078125, %v1599_v38  ;;  %1614 = vadd.xlane.f32.xlu1 %v1609_v37  ;;  %v1610_v40 = vmul.f32 %v7015_v36, %v7015_v36  ;;  %v5999_v37 = vld [vmem:[#allocation7 + $0xc8] sm:$0xff]  }
 0xdfb   :  { %v6000_v38 = vld [vmem:[#allocation7 + $0x8] sm:$0xff]  }
 0xdfc   :  { %v7022_v45 = vsub.f32 %v7003_v6, %v1603_v39  ;;  %1616 = vadd.xlane.f32.xlu0 %v1610_v40  ;;  %v6001_v39 = vld [vmem:[#allocation7 + $0x88] sm:$0xff]   ;;  %v6002_v40 = vld [vmem:[#allocation7 + $0x50] sm:$0xff]  }
 0xdfe   :  { %v1611_v12 = vmul.f32 %v7022_v45, %v7022_v45 }
 0xe00   :  { %1618 = vadd.xlane.f32.xlu1 %v1611_v12  ;;  %v6004_v12 = vld [vmem:[#allocation7 + $0x10] sm:$0xff]  }
 0xe85   :  { %v1613_v46 = vpop.xlane.xlu0 %1612 }
 0xe86   :  { %v1620_v47 = vmul.f32 0.0078125, %v1613_v46  ;;  %v6025_v46 = vld [vmem:[#allocation7 + $0xb8] sm:$0xff]  }
 0xe87   :  { %v1615_v62 = vpop.xlane.xlu1 %1614 }
 0xe88   :  { %v1624_v63 = vadd.f32 1e-05, %v1620_v47  ;;  %v1621_v57 = vmul.f32 0.0078125, %v1615_v62 }
 0xe89   :  { %v1617_v60 = vpop.xlane.xlu0 %1616 }
 0xe8a   :  { %6242 = vrsqrt.f32 %v1624_v63  ;;  %v1625_v0 = vadd.f32 1e-05, %v1621_v57  ;;  %v1622_v2 = vmul.f32 0.0078125, %v1617_v60 }
 0xe8c   :  { %6244 = vrsqrt.f32 %v1625_v0  ;;  %v1626_v4 = vadd.f32 1e-05, %v1622_v2 }
 0xe8d   :  { %v1619_v5 = vpop.xlane.xlu1 %1618 }
 0xe8e   :  { %v1623_v7 = vmul.f32 0.0078125, %v1619_v5  ;;  %6246 = vrsqrt.f32 %v1626_v4 }
 0xe90   :  { %v1627_v9 = vadd.f32 1e-05, %v1623_v7 }
 0xe92   :  { %6248 = vrsqrt.f32 %v1627_v9 }
 0xe94   :  { %v6243_v10 = vpop.eup %6242 }
 0xe95   :  { %v1632_v11 = vmul.f32 %v6243_v10, %v7007_v30 }
 0xe96   :  { %v6245_v13 = vpop.eup %6244 }
 0xe97   :  { %v1633_v16 = vmul.f32 %v6245_v13, %v7010_v34  ;;  %v1642_v17 = vmul.f32 %v5109_v15, %v1632_v11  ;;  %v5995_v34 = vld [vmem:[#allocation7 + $0xc0] sm:$0xff]  }
 0xe98   :  { %v6247_v20 = vpop.eup %6246  ;;  %5422 = vmatprep.subr.bf16.mxu1 %v5995_v34 }
 0xe99   :  { %v1643_v18 = vmul.f32 %v5109_v15, %v1633_v16  ;;  %v1634_v24 = vmul.f32 %v6247_v20, %v7015_v36  ;;  %v5998_v36 = vld [vmem:[#allocation7 + $0x48] sm:$0xff]  }
 0xe9b   :  { %v1646_v22 = vpack.c.bf16 %v1643_v18, %v1642_v17  ;;  %v1644_v30 = vmul.f32 %v5109_v15, %v1634_v24 }
 0xe9c   :  { %v6249_v23 = vpop.eup %6248 }
 0xe9d   :  { %1873 = vmatmul.mubr.bf16.vlgmr.msra.gmra.mrb[40].mxu0 %v1646_v22  ;;  %1926 = vmatmul.mubr.bf16.vlgmr.msra.gmra.mrb[40].mxu1 %v1646_v22  ;;  %v1635_v26 = vmul.f32 %v6249_v23, %v7022_v45  ;;  %v6003_v45 = vld [vmem:[#allocation7 + $0xd0] sm:$0xff]  }
 0xe9e   :  { %1882 = vmatprep.mubr.bf16.mxu0 %v6534_v42  ;;  %1935 = vmatprep.mubr.bf16.mxu1 %v6534_v42 }
 0xe9f   :  { %v1645_v28 = vmul.f32 %v5109_v15, %v1635_v26  ;;  %5395 = vmatpush3.bf16.msra.mxu0 %v5996_v14  ;;  %5423 = vmatpush3.bf16.msra.mxu1 %v5997_v35 }
 0xea0   :  { %5396 = vmatprep.subr.bf16.mxu0 %v5998_v36  ;;  %5424 = vmatprep.subr.bf16.mxu1 %v5999_v37 }
 0xea1   :  { %v1647_v32 = vpack.c.bf16 %v1645_v28, %v1644_v30 }
 0xea3   :  { %5397 = vmatpush3.bf16.msra.mxu0 %v6000_v38  ;;  %5425 = vmatpush3.bf16.msra.mxu1 %v6001_v39 }
 0xea4   :  { %5398 = vmatprep.subr.bf16.mxu0 %v6002_v40  ;;  %5426 = vmatprep.subr.bf16.mxu1 %v6003_v45 }
 0xea5   :  { %1883 = vmatmul.mubr.bf16.gmra.mrb[44].mxu0 %v1647_v32  ;;  %1936 = vmatmul.mubr.bf16.gmra.mrb[44].mxu1 %v1647_v32 }
 0xea7   :  { %5399 = vmatpush3.bf16.msra.mxu0 %v6004_v12  ;;  %5427 = vmatpush3.bf16.msra.mxu1 %v6005_v48 }
 0xea8   :  { %5400 = vmatprep.subr.bf16.mxu0 %v6006_v31  ;;  %5428 = vmatprep.subr.bf16.mxu1 %v6007_v25 }
 0xeab   :  { %5401 = vmatpush3.bf16.msra.mxu0 %v6008_v29  ;;  %5429 = vmatpush3.bf16.msra.mxu1 %v6009_v27 }
 0xeac   :  { %5402 = vmatprep.subr.bf16.mxu0 %v6010_v49  ;;  %5430 = vmatprep.subr.bf16.mxu1 %v6011_v50 }
 0xeaf   :  { %5403 = vmatpush3.bf16.msra.mxu0 %v6012_v51  ;;  %5431 = vmatpush3.bf16.msra.mxu1 %v6013_v52 }
 0xeb0   :  { %5404 = vmatprep.subr.bf16.mxu0 %v6014_v53  ;;  %5432 = vmatprep.subr.bf16.mxu1 %v6015_v54 }
 0xeb3   :  { %5405 = vmatpush3.bf16.msra.mxu0 %v6016_v55  ;;  %5433 = vmatpush3.bf16.msra.mxu1 %v6017_v56 }
 0xeb4   :  { %5406 = vmatprep.subr.bf16.mxu0 %v6018_v19  ;;  %5434 = vmatprep.subr.bf16.mxu1 %v6019_v21 }
 0xeb7   :  { %5407 = vmatpush3.bf16.msra.mxu0 %v6020_v58  ;;  %5435 = vmatpush3.bf16.msra.mxu1 %v6021_v61 }
 0xeb8   :  { %5408 = vmatprep.subr.bf16.mxu0 %v6022_v44  ;;  %5436 = vmatprep.subr.bf16.mxu1 %v6023_v43 }
 0xebb   :  { %5409 = vmatpush3.bf16.msra.mxu0 %v6024_v41  ;;  %5437 = vmatpush3.bf16.msra.mxu1 %v6025_v46 }
 0xf70   :  { %v1874_v47 = vpop.f32.mrb[40].mxu0  ;;  %v1927_v62 = vpop.f32.mrb[40].mxu1 }
 0xf71   :  { %v1962_v63 = vmul.f32 %v1874_v47, %v1874_v47  ;;  %v1964_v57 = vmul.f32 %v1927_v62, %v1927_v62  ;;  %v7035_v60 = vpop.f32.mrb[41].mxu0  ;;  %v7037_v0 = vpop.f32.mrb[41].mxu1  ;;  %v1946_v61 = vmul.f32 0.5, %v1874_v47  ;;  %v1948_v41 = vmul.f32 0.5, %v1927_v62 }
 0xf72   :  { %v1963_v2 = vmul.f32 %v7035_v60, %v7035_v60  ;;  %v1965_v4 = vmul.f32 %v7037_v0, %v7037_v0  ;;  %v7043_v5 = vpop.f32.mrb[42].mxu0  ;;  %v7045_v7 = vpop.f32.mrb[42].mxu1 }
 0xf73   :  { %v1978_v9 = vmul.f32 %v1962_v63, %v1874_v47  ;;  %v1980_v10 = vmul.f32 %v1964_v57, %v1927_v62  ;;  %v1966_v11 = vmul.f32 %v7043_v5, %v7043_v5  ;;  %v7049_v13 = vpop.f32.mrb[43].mxu0  ;;  %v7051_v15 = vpop.f32.mrb[43].mxu1  ;;  %v1968_v18 = vmul.f32 %v7045_v7, %v7045_v7 }
 0xf74   :  { %v1979_v16 = vmul.f32 %v1963_v2, %v7035_v60  ;;  %v1981_v17 = vmul.f32 %v1965_v4, %v7037_v0  ;;  %v1967_v30 = vmul.f32 %v7049_v13, %v7049_v13  ;;  %v1969_v48 = vmul.f32 %v7051_v15, %v7051_v15 }
 0xf75   :  { %v1994_v20 = vmul.f32 0.044715, %v1978_v9  ;;  %v1996_v22 = vmul.f32 0.044715, %v1980_v10  ;;  %v1982_v23 = vmul.f32 %v1966_v11, %v7043_v5  ;;  %v1984_v28 = vmul.f32 %v1968_v18, %v7045_v7 }
 0xf76   :  { %v1995_v24 = vmul.f32 0.044715, %v1979_v16  ;;  %v1997_v26 = vmul.f32 0.044715, %v1981_v17  ;;  %v1983_v37 = vmul.f32 %v1967_v30, %v7049_v13  ;;  %v1985_v52 = vmul.f32 %v1969_v48, %v7051_v15 }
 0xf77   :  { %v2010_v32 = vadd.f32 %v1994_v20, %v1874_v47  ;;  %v2012_v33 = vadd.f32 %v1996_v22, %v1927_v62  ;;  %v1998_v34 = vmul.f32 0.044715, %v1982_v23  ;;  %v2000_v36 = vmul.f32 0.044715, %v1984_v28 }
 0xf78   :  { %v2011_v14 = vadd.f32 %v1995_v24, %v7035_v60  ;;  %v2013_v35 = vadd.f32 %v1997_v26, %v7037_v0  ;;  %v7064_v38 = vpop.f32.mrb[44].mxu0  ;;  %v7066_v39 = vpop.f32.mrb[44].mxu1  ;;  %v1999_v50 = vmul.f32 0.044715, %v1983_v37  ;;  %v2001_v44 = vmul.f32 0.044715, %v1985_v52 }
 0xf79   :  { %v2026_v40 = vmul.f32 0.7978846, %v2010_v32  ;;  %v2028_v45 = vmul.f32 0.7978846, %v2012_v33  ;;  %v2014_v12 = vadd.f32 %v1998_v34, %v7043_v5  ;;  %v7071_v31 = vpop.f32.mrb[45].mxu0  ;;  %v7073_v25 = vpop.f32.mrb[45].mxu1  ;;  %v2016_v49 = vadd.f32 %v2000_v36, %v7045_v7 }
 0xf7a   :  { %v2027_v29 = vmul.f32 0.7978846, %v2011_v14  ;;  %v2029_v27 = vmul.f32 0.7978846, %v2013_v35  ;;  %v7077_v53 = vpop.f32.mrb[46].mxu0  ;;  %v7079_v54 = vpop.f32.mrb[46].mxu1  ;;  %v2015_v56 = vadd.f32 %v1999_v50, %v7049_v13  ;;  %v1970_v19 = vmul.f32 %v7064_v38, %v7064_v38 }
 0xf7b   :  { %6250 = vtanh.f32 %v2026_v40  ;;  %v2030_v51 = vmul.f32 0.7978846, %v2014_v12  ;;  %v2032_v55 = vmul.f32 0.7978846, %v2016_v49  ;;  %v7084_v21 = vpop.f32.mrb[47].mxu0  ;;  %v7086_v58 = vpop.f32.mrb[47].mxu1  ;;  %v1972_v43 = vmul.f32 %v7066_v39, %v7066_v39 }
 0xf7c   :  { %6252 = vtanh.f32 %v2028_v45  ;;  %v2031_v46 = vmul.f32 0.7978846, %v2015_v56  ;;  %v1986_v63 = vmul.f32 %v1970_v19, %v7064_v38  ;;  %v2017_v57 = vadd.f32 %v2001_v44, %v7051_v15 }
 0xf7d   :  { %6254 = vtanh.f32 %v2027_v29  ;;  %v1988_v2 = vmul.f32 %v1972_v43, %v7066_v39  ;;  %v1971_v4 = vmul.f32 %v7071_v31, %v7071_v31  ;;  %v7096_v47 = vmul.f32 0.5, %v7035_v60 }
 0xf7e   :  { %6256 = vtanh.f32 %v2029_v27  ;;  %v2002_v9 = vmul.f32 0.044715, %v1986_v63  ;;  %v1973_v62 = vmul.f32 %v7073_v25, %v7073_v25  ;;  %v2033_v10 = vmul.f32 0.7978846, %v2017_v57 }
 0xf7f   :  { %6258 = vtanh.f32 %v2030_v51  ;;  %v2004_v11 = vmul.f32 0.044715, %v1988_v2  ;;  %v1987_v16 = vmul.f32 %v1971_v4, %v7071_v31  ;;  %v7102_v17 = vmul.f32 0.5, %v7037_v0 }
 0xf80   :  { %6260 = vtanh.f32 %v2032_v55  ;;  %v2018_v18 = vadd.f32 %v2002_v9, %v7064_v38  ;;  %v1989_v20 = vmul.f32 %v1973_v62, %v7073_v25  ;;  %v1974_v60 = vmul.f32 %v7077_v53, %v7077_v53 }
 0xf81   :  { %6262 = vtanh.f32 %v2031_v46  ;;  %v1950_v22 = vmul.f32 0.5, %v7043_v5  ;;  %v2020_v23 = vadd.f32 %v2004_v11, %v7066_v39  ;;  %v2003_v24 = vmul.f32 0.044715, %v1987_v16 }
 0xf82   :  { %6264 = vtanh.f32 %v2033_v10  ;;  %v2034_v26 = vmul.f32 0.7978846, %v2018_v18  ;;  %v2005_v28 = vmul.f32 0.044715, %v1989_v20  ;;  %v1990_v30 = vmul.f32 %v1974_v60, %v7077_v53 }
 0xf83   :  { %v1976_v0 = vmul.f32 %v7079_v54, %v7079_v54  ;;  %v1952_v33 = vmul.f32 0.5, %v7045_v7  ;;  %v2036_v34 = vmul.f32 0.7978846, %v2020_v23  ;;  %v2019_v14 = vadd.f32 %v2003_v24, %v7071_v31 }
 0xf84   :  { %v1975_v5 = vmul.f32 %v7084_v21, %v7084_v21  ;;  %v1951_v37 = vmul.f32 0.5, %v7049_v13  ;;  %v2021_v40 = vadd.f32 %v2005_v28, %v7073_v25  ;;  %v2006_v45 = vmul.f32 0.044715, %v1990_v30 }
 0xf85   :  { %v6251_v32 = vpop.eup %6250  ;;  %6266 = vtanh.f32 %v2034_v26  ;;  %v2035_v29 = vmul.f32 0.7978846, %v2019_v14  ;;  %v1992_v27 = vmul.f32 %v1976_v0, %v7079_v54  ;;  %v1953_v49 = vmul.f32 0.5, %v7051_v15 }
 0xf86   :  { %v6253_v35 = vpop.eup %6252  ;;  %v2058_v36 = vadd.f32 1.0, %v6251_v32  ;;  %6268 = vtanh.f32 %v2036_v34  ;;  %v2022_v50 = vadd.f32 %v2006_v45, %v7077_v53  ;;  %v1991_v51 = vmul.f32 %v1975_v5, %v7084_v21 }
 0xf87   :  { %v6255_v12 = vpop.eup %6254  ;;  %v2060_v48 = vadd.f32 1.0, %v6253_v35  ;;  %v2037_v56 = vmul.f32 0.7978846, %v2021_v40  ;;  %v2008_v19 = vmul.f32 0.044715, %v1992_v27  ;;  %6270 = vtanh.f32 %v2035_v29 }
 0xf88   :  { %v6257_v7 = vpop.eup %6256  ;;  %v2074_v55 = vmul.f32 %v2058_v36, %v1946_v61  ;;  %v2038_v46 = vmul.f32 0.7978846, %v2022_v50  ;;  %v2007_v63 = vmul.f32 0.044715, %v1991_v51  ;;  %v1977_v15 = vmul.f32 %v7086_v58, %v7086_v58 }
 0xf89   :  { %v6259_v52 = vpop.eup %6258  ;;  %v2076_v13 = vmul.f32 %v2060_v48, %v1948_v41  ;;  %v2024_v4 = vadd.f32 %v2008_v19, %v7079_v54  ;;  %v2059_v9 = vadd.f32 1.0, %v6255_v12  ;;  %v2061_v26 = vadd.f32 1.0, %v6257_v7 }
 0xf8a   :  { %v6261_v44 = vpop.eup %6260  ;;  %v2062_v43 = vadd.f32 1.0, %v6259_v52  ;;  %6272 = vtanh.f32 %v2038_v46  ;;  %v2023_v61 = vadd.f32 %v2007_v63, %v7084_v21  ;;  %v1993_v18 = vmul.f32 %v1977_v15, %v7086_v58 }
 0xf8b   :  { %v6263_v57 = vpop.eup %6262  ;;  %v2064_v2 = vadd.f32 1.0, %v6261_v44  ;;  %v2040_v16 = vmul.f32 0.7978846, %v2024_v4  ;;  %v2075_v20 = vmul.f32 %v2059_v9, %v7096_v47  ;;  %v1954_v45 = vmul.f32 0.5, %v7064_v38 }
 0xf8c   :  { %v2078_v62 = vmul.f32 %v2062_v43, %v1950_v22  ;;  %v2063_v41 = vadd.f32 1.0, %v6263_v57  ;;  %v6265_v10 = vpop.eup %6264  ;;  %v2039_v23 = vmul.f32 0.7978846, %v2023_v61  ;;  %v2009_v30 = vmul.f32 0.044715, %v1993_v18 }
 0xf8d   :  { %v2080_v11 = vmul.f32 %v2064_v2, %v1952_v33  ;;  %6274 = vtanh.f32 %v2040_v16  ;;  %v2065_v0 = vadd.f32 1.0, %v6265_v10  ;;  %v2077_v33 = vmul.f32 %v2061_v26, %v7102_v17 }
 0xf8e   :  { %v2090_v60 = vpack.c.bf16 %v2078_v62, %v2074_v55  ;;  %v2079_v24 = vmul.f32 %v2063_v41, %v1951_v37  ;;  %6276 = vtanh.f32 %v2039_v23  ;;  %v2025_v34 = vadd.f32 %v2009_v30, %v7086_v58 }
 0xf8f   :  { %v2092_v28 = vpack.c.bf16 %v2080_v11, %v2076_v13  ;;  %v6267_v32 = vpop.eup %6266  ;;  %6278 = vtanh.f32 %v2037_v56  ;;  %v2081_v14 = vmul.f32 %v2065_v0, %v1953_v49  ;;  %v1958_v12 = vmul.f32 0.5, %v7077_v53 }
 0xf90   :  { %v2091_v22 = vpack.c.bf16 %v2079_v24, %v2075_v20  ;;  %v6269_v5 = vpop.eup %6268  ;;  %v2041_v47 = vmul.f32 0.7978846, %v2025_v34  ;;  %v2066_v37 = vadd.f32 1.0, %v6267_v32  ;;  %v1956_v51 = vmul.f32 0.5, %v7066_v39 }
 0xf91   :  { %v2093_v35 = vpack.c.bf16 %v2081_v14, %v2077_v33  ;;  %v6271_v36 = vpop.eup %6270  ;;  %v2068_v29 = vadd.f32 1.0, %v6269_v5  ;;  %v1960_v52 = vmul.f32 0.5, %v7079_v54  ;;  %v1955_v56 = vmul.f32 0.5, %v7071_v31 }
 0xf92   :  { %2386 = vmatprep.mubr.bf16.mxu0 %v2091_v22  ;;  %6280 = vtanh.f32 %v2041_v47  ;;  %v2067_v17 = vadd.f32 1.0, %v6271_v36  ;;  %v2082_v7 = vmul.f32 %v2066_v37, %v1954_v45  ;;  %v1959_v19 = vmul.f32 0.5, %v7084_v21 }
 0xf93   :  { %2387 = vmatmul.mubr.bf16.vlgmr.msra.gmra.mrb[48].mxu0 %v2090_v60  ;;  %2435 = vmatprep.mubr.bf16.mxu1 %v2093_v35  ;;  %v2084_v53 = vmul.f32 %v2068_v29, %v1956_v51  ;;  %v1957_v39 = vmul.f32 0.5, %v7073_v25  ;;  %v1961_v54 = vmul.f32 0.5, %v7086_v58  ;;  %v6026_v29 = vld [vmem:[%s7645_s2 + $0xc0] ss:$12 sps:$4 sm:$0xff]  }
 0xf94   :  { %v6273_v40 = vpop.eup %6272  ;;  %2436 = vmatmul.mubr.bf16.vlgmr.msra.gmra.mrb[48].mxu1 %v2092_v28  ;;  %v2083_v46 = vmul.f32 %v2067_v17, %v1955_v56  ;;  %v6029_v17 = vld [vmem:[%s7645_s2 + $0xd8] ss:$12 sps:$4 sm:$0xff]  }
 0xf95   :  { %v2070_v48 = vadd.f32 1.0, %v6273_v40 }
 0xf97   :  { %v6275_v27 = vpop.eup %6274  ;;  %v2086_v49 = vmul.f32 %v2070_v48, %v1958_v12 }
 0xf98   :  { %v6277_v50 = vpop.eup %6276  ;;  %v2072_v55 = vadd.f32 1.0, %v6275_v27  ;;  %v6028_v27 = vld [vmem:[%s7645_s2 + $0xc4] ss:$12 sps:$4 sm:$0xff]  }
 0xf99   :  { %v6279_v13 = vpop.eup %6278  ;;  %v2071_v38 = vadd.f32 1.0, %v6277_v50  ;;  %v2094_v44 = vpack.c.bf16 %v2086_v49, %v2082_v7  ;;  %2675 = vmatprep.subr.bf16.mxu0 %v6028_v27  ;;  %v6034_v7 = vld [vmem:[%s7645_s2 + $0xf4] ss:$12 sps:$4 sm:$0xff]   ;;  %v6032_v49 = vld [vmem:[%s7645_s2 + $0xf0] ss:$12 sps:$4 sm:$0xff]  }
 0xf9a   :  { %v2088_v43 = vmul.f32 %v2072_v55, %v1960_v52  ;;  %v2069_v57 = vadd.f32 1.0, %v6279_v13  ;;  %2676 = vmatpush1.bf16.msra.mxu0 %v6026_v29 }
 0xf9b   :  { %v2087_v63 = vmul.f32 %v2071_v38, %v1959_v19 }
 0xf9c   :  { %v2096_v2 = vpack.c.bf16 %v2088_v43, %v2084_v53  ;;  %v6281_v4 = vpop.eup %6280  ;;  %v2085_v62 = vmul.f32 %v2069_v57, %v1957_v39  ;;  %v6039_v39 = vld [vmem:[%s7645_s2 + $0xe0] ss:$12 sps:$4 sm:$0xff]  }
 0xf9d   :  { %v2095_v15 = vpack.c.bf16 %v2087_v63, %v2083_v46  ;;  %v2073_v9 = vadd.f32 1.0, %v6281_v4 }
 0xf9f   :  { %2394 = vmatprep.mubr.bf16.mxu0 %v2095_v15  ;;  %v2089_v31 = vmul.f32 %v2073_v9, %v1961_v54  ;;  %v6038_v15 = vld [vmem:[%s7645_s2 + $0x10c] ss:$12 sps:$4 sm:$0xff]   ;;  %v6036_v54 = vld [vmem:[%s7645_s2 + $0x108] ss:$12 sps:$4 sm:$0xff]   ;;  %v6042_v9 = vld [vmem:[%s7645_s2 + $0x124] ss:$12 sps:$4 sm:$0xff]  }
 0xfa0   :  { %2395 = vmatmul.mubr.bf16.gmra.mrb[52].mxu0 %v2094_v44 }
 0xfa1   :  { %2707 = vmatprep.mubr.bf16.mxu0 %v6534_v42  ;;  %v2097_v21 = vpack.c.bf16 %v2089_v31, %v2085_v62  ;;  %v6043_v62 = vld [vmem:[%s7645_s2 + $0xf8] ss:$12 sps:$4 sm:$0xff]   ;;  %v6040_v31 = vld [vmem:[%s7645_s2 + $0x120] ss:$12 sps:$4 sm:$0xff]  }
 0xfa3   :  { %2443 = vmatprep.mubr.bf16.mxu1 %v2097_v21  ;;  %v6046_v21 = vld [vmem:[%s7645_s2 + $0x13c] ss:$12 sps:$4 sm:$0xff]  }
 0xfa4   :  { %2444 = vmatmul.mubr.bf16.gmra.mrb[52].mxu1 %v2096_v2 }
0x1066   :  { %v5410_v61 = vpop.f32.mrb[48].mxu0 }
0x1067   :  { %v5411_v41 = vpop.f32.mrb[49].mxu0  ;;  %v5438_v16 = vpop.f32.mrb[48].mxu1 }
0x1068   :  { %v5412_v10 = vadd.f32 %v5411_v41, %v5410_v61  ;;  %v5413_v11 = vpop.f32.mrb[50].mxu0  ;;  %v5439_v20 = vpop.f32.mrb[49].mxu1  ;;  %v6047_v61 = vld [vmem:[%s7645_s2 + $0x110] ss:$12 sps:$4 sm:$0xff]   ;;  %v6044_v41 = vld [vmem:[%s7645_s2 + $0x138] ss:$12 sps:$4 sm:$0xff]  }
0x1069   :  { %v5414_v18 = vpop.f32.mrb[51].mxu0  ;;  %v5440_v60 = vadd.f32 %v5439_v20, %v5438_v16  ;;  %v5441_v58 = vpop.f32.mrb[50].mxu1  ;;  %v6048_v16 = vld [vmem:[%s7645_s2 + $0x150] ss:$12 sps:$4 sm:$0xff]   ;;  %v6055_v20 = vld [vmem:[%s7645_s2 + $0x140] ss:$12 sps:$4 sm:$0xff]  }
0x106a   :  { %v5415_v25 = vadd.f32 %v5414_v18, %v5413_v11  ;;  %v5442_v23 = vpop.f32.mrb[51].mxu1  ;;  %v6051_v11 = vld [vmem:[%s7645_s2 + $0x128] ss:$12 sps:$4 sm:$0xff]   ;;  %v6054_v18 = vld [vmem:[%s7645_s2 + $0x16c] ss:$12 sps:$4 sm:$0xff]  }
0x106b   :  { %v2438_v24 = vadd.f32 %v5440_v60, %v5412_v10  ;;  %v5443_v26 = vadd.f32 %v5442_v23, %v5441_v58  ;;  %v6050_v10 = vld [vmem:[%s7645_s2 + $0x154] ss:$12 sps:$4 sm:$0xff]   ;;  %v6056_v60 = vld [vmem:[%s7645_s2 + $0x158] ss:$12 sps:$4 sm:$0xff]   ;;  %v6057_v58 = vld [vmem:[%s7645_s2 + $0x170] ss:$12 sps:$4 sm:$0xff]  }
0x106d   :  { %v2441_v28 = vadd.f32 %v5443_v26, %v5415_v25  ;;  %v7141_v30 = vadd.f32 %v2438_v24, %v6985_v59  ;;  %v6052_v25 = vld [vmem:[%s7645_s2 + $0x168] ss:$12 sps:$4 sm:$0xff]  }
0x106f   :  { %2458 = vadd.xlane.f32.xlu0 %v7141_v30  ;;  %v7145_v0 = vadd.f32 %v2441_v28, %v6990_v1 }
0x1071   :  { %2460 = vadd.xlane.f32.xlu1 %v7145_v0 }
0x1073   :  { %v5416_v22 = vpop.f32.mrb[52].mxu0 }
0x1074   :  { %v5417_v32 = vpop.f32.mrb[53].mxu0 }
0x1075   :  { %v5418_v34 = vadd.f32 %v5417_v32, %v5416_v22  ;;  %v5419_v33 = vpop.f32.mrb[54].mxu0 }
0x1076   :  { %v5420_v14 = vpop.f32.mrb[55].mxu0 }
0x1077   :  { %v5421_v5 = vadd.f32 %v5420_v14, %v5419_v33  ;;  %v5444_v47 = vpop.f32.mrb[52].mxu1 }
0x1078   :  { %v5445_v35 = vpop.f32.mrb[53].mxu1 }
0x1079   :  { %v5446_v36 = vadd.f32 %v5445_v35, %v5444_v47  ;;  %v5447_v37 = vpop.f32.mrb[54].mxu1  ;;  %v5175_v47 = vld [vmem:[%s7644_s1 + $0x1] ss:$0 sm:$0xff] }
0x107a   :  { %v5448_v40 = vpop.f32.mrb[55].mxu1 }
0x107b   :  { %v2446_v59 = vadd.f32 %v5446_v36, %v5418_v34  ;;  %v5449_v45 = vadd.f32 %v5448_v40, %v5447_v37 }
0x107d   :  { %v2449_v12 = vadd.f32 %v5449_v45, %v5421_v5  ;;  %v7149_v48 = vadd.f32 %v2446_v59, %v6996_v3  ;;  %v6031_v3 = vld [vmem:[%s7645_s2 + $0xdc] ss:$12 sps:$4 sm:$0xff]  }
0x107e   :  { %2677 = vmatprep.subr.bf16.mxu0 %v6031_v3 }
0x107f   :  { %2462 = vadd.xlane.f32.xlu0 %v7149_v48  ;;  %v7153_v1 = vadd.f32 %v2449_v12, %v7003_v6  ;;  %v6035_v6 = vld [vmem:[%s7645_s2 + $0xc8] ss:$12 sps:$4 sm:$0xff]   ;;  %2678 = vmatpush1.bf16.msra.mxu0 %v6029_v17 }
0x1080   :  { %5694 = vmatprep.subr.bf16.mxu1 %v6035_v6  ;;  %2679 = vmatprep.subr.bf16.mxu0 %v6034_v7 }
0x1081   :  { %2464 = vadd.xlane.f32.xlu1 %v7153_v1  ;;  %5695 = vmatpush3.bf16.msra.mxu1 %v6035_v6 }
0x1082   :  { %5696 = vmatprep.subr.bf16.mxu1 %v6039_v39 }
0x1083   :  { %2680 = vmatpush1.bf16.msra.mxu0 %v6032_v49 }
0x1084   :  { %2681 = vmatprep.subr.bf16.mxu0 %v6038_v15 }
0x1085   :  { %5697 = vmatpush3.bf16.msra.mxu1 %v6039_v39 }
0x1086   :  { %5698 = vmatprep.subr.bf16.mxu1 %v6043_v62 }
0x1087   :  { %2682 = vmatpush1.bf16.msra.mxu0 %v6036_v54 }
0x1088   :  { %2683 = vmatprep.subr.bf16.mxu0 %v6042_v9 }
0x1089   :  { %5699 = vmatpush3.bf16.msra.mxu1 %v6043_v62 }
0x108a   :  { %5700 = vmatprep.subr.bf16.mxu1 %v6047_v61 }
0x108b   :  { %2684 = vmatpush1.bf16.msra.mxu0 %v6040_v31 }
0x108c   :  { %2685 = vmatprep.subr.bf16.mxu0 %v6046_v21 }
0x108d   :  { %5701 = vmatpush3.bf16.msra.mxu1 %v6047_v61 }
0x108e   :  { %5702 = vmatprep.subr.bf16.mxu1 %v6051_v11 }
0x108f   :  { %2686 = vmatpush1.bf16.msra.mxu0 %v6044_v41 }
0x1090   :  { %2687 = vmatprep.subr.bf16.mxu0 %v6050_v10 }
0x1091   :  { %5703 = vmatpush3.bf16.msra.mxu1 %v6051_v11 }
0x1092   :  { %5704 = vmatprep.subr.bf16.mxu1 %v6055_v20 }
0x1093   :  { %2688 = vmatpush1.bf16.msra.mxu0 %v6048_v16 }
0x1094   :  { %2689 = vmatprep.subr.bf16.mxu0 %v6054_v18 }
0x1095   :  { %5705 = vmatpush3.bf16.msra.mxu1 %v6055_v20 }
0x1096   :  { %5706 = vmatprep.subr.bf16.mxu1 %v6056_v60 }
0x1097   :  { %2690 = vmatpush1.bf16.msra.mxu0 %v6052_v25 }
0x1098   :  { %5714 = vmatprep.subr.bf16.mxu0 %v6535_v8 }
0x1099   :  { %5707 = vmatpush3.bf16.msra.mxu1 %v6056_v60 }
0x109a   :  { %5708 = vmatprep.subr.bf16.mxu1 %v6057_v58 }
0x109d   :  { %5709 = vmatpush3.bf16.msra.mxu1 %v6057_v58 }
0x109e   :  { %5732 = vmatprep.subr.bf16.mxu1 %v6535_v8 }
0x10fc   :  { %v2459_v50 = vpop.xlane.xlu0 %2458 }
0x10fd   :  { %v2466_v51 = vmul.f32 0.0078125, %v2459_v50 }
0x10fe   :  { %v2461_v52 = vpop.xlane.xlu1 %2460 }
0x10ff   :  { %v7178_v55 = vsub.f32 %v7141_v30, %v2466_v51  ;;  %v2467_v13 = vmul.f32 0.0078125, %v2461_v52 }
0x1101   :  { %v7181_v56 = vsub.f32 %v7145_v0, %v2467_v13  ;;  %v2474_v19 = vmul.f32 %v7178_v55, %v7178_v55 }
0x1103   :  { %2478 = vadd.xlane.f32.xlu0 %v2474_v19  ;;  %v2475_v38 = vmul.f32 %v7181_v56, %v7181_v56 }
0x1105   :  { %2480 = vadd.xlane.f32.xlu1 %v2475_v38 }
0x110c   :  { %v2463_v44 = vpop.xlane.xlu0 %2462 }
0x110d   :  { %v2468_v53 = vmul.f32 0.0078125, %v2463_v44 }
0x110e   :  { %v2465_v43 = vpop.xlane.xlu1 %2464 }
0x110f   :  { %v7188_v46 = vsub.f32 %v7149_v48, %v2468_v53  ;;  %v2469_v63 = vmul.f32 0.0078125, %v2465_v43 }
0x1111   :  { %v7191_v57 = vsub.f32 %v7153_v1, %v2469_v63  ;;  %v2476_v2 = vmul.f32 %v7188_v46, %v7188_v46 }
0x1113   :  { %2482 = vadd.xlane.f32.xlu0 %v2476_v2  ;;  %v2477_v4 = vmul.f32 %v7191_v57, %v7191_v57 }
0x1115   :  { %2484 = vadd.xlane.f32.xlu1 %v2477_v4 }
0x1190   :  { %v2479_v23 = vpop.xlane.xlu0 %2478 }
0x1191   :  { %v2486_v24 = vmul.f32 0.0078125, %v2479_v23 }
0x1192   :  { %v2481_v26 = vpop.xlane.xlu1 %2480 }
0x1193   :  { %v2490_v28 = vadd.f32 1e-05, %v2486_v24  ;;  %v2487_v22 = vmul.f32 0.0078125, %v2481_v26 }
0x1195   :  { %6282 = vrsqrt.f32 %v2490_v28  ;;  %v2491_v32 = vadd.f32 1e-05, %v2487_v22 }
0x1197   :  { %6284 = vrsqrt.f32 %v2491_v32 }
0x119f   :  { %v6283_v34 = vpop.eup %6282 }
0x11a0   :  { %v2498_v33 = vmul.f32 %v6283_v34, %v7178_v55  ;;  %v2483_v5 = vpop.xlane.xlu0 %2482 }
0x11a1   :  { %v6285_v14 = vpop.eup %6284  ;;  %v2488_v36 = vmul.f32 0.0078125, %v2483_v5 }
0x11a2   :  { %v2499_v35 = vmul.f32 %v6285_v14, %v7181_v56  ;;  %v2485_v37 = vpop.xlane.xlu1 %2484  ;;  %v2508_v45 = vmul.f32 %v5175_v47, %v2498_v33 }
0x11a3   :  { %v2492_v40 = vadd.f32 1e-05, %v2488_v36  ;;  %v2489_v59 = vmul.f32 0.0078125, %v2485_v37 }
0x11a4   :  { %v2509_v12 = vmul.f32 %v5175_v47, %v2499_v35 }
0x11a5   :  { %6286 = vrsqrt.f32 %v2492_v40  ;;  %v2493_v29 = vadd.f32 1e-05, %v2489_v59 }
0x11a6   :  { %v2512_v27 = vpack.c.bf16 %v2509_v12, %v2508_v45 }
0x11a7   :  { %6288 = vrsqrt.f32 %v2493_v29 }
0x11a8   :  { %2708 = vmatmul.mubr.bf16.vlgmr.msra.gmra.mrb[56].mxu0 %v2512_v27  ;;  %5710 = vmatprep.mubr.bf16.mxu1 %v2512_v27 }
0x11a9   :  { %2717 = vmatprep.mubr.bf16.mxu0 %v6534_v42 }
0x11af   :  { %v6287_v3 = vpop.eup %6286 }
0x11b0   :  { %v2500_v6 = vmul.f32 %v6287_v3, %v7188_v46 }
0x11b1   :  { %v6289_v17 = vpop.eup %6288 }
0x11b2   :  { %v2501_v7 = vmul.f32 %v6289_v17, %v7191_v57  ;;  %v2510_v49 = vmul.f32 %v5175_v47, %v2500_v6 }
0x11b4   :  { %v2511_v50 = vmul.f32 %v5175_v47, %v2501_v7 }
0x11b6   :  { %v2513_v51 = vpack.c.bf16 %v2511_v50, %v2510_v49 }
0x11b8   :  { %2718 = vmatmul.mubr.bf16.gmra.mrb[60].mxu0 %v2513_v51  ;;  %5711 = vmatmul.mubr.bf16.vlgmr.msra.gmra.mrb[56].mxu1 %v2513_v51 }
0x11b9   :  { %5716 = vmatprep.mubr.msk.bf16.mxu0 %vm6536_vm0, %v6535_v8  ;;  %5734 = vmatprep.mubr.msk.bf16.mxu1 %vm6536_vm0, %v6535_v8 }
0x127b   :  { %v2709_v52 = vpop.f32.mrb[56].mxu0 }
0x127c   :  { %v2711_v55 = vpop.f32.mrb[57].mxu0 }
0x127d   :  { %v2713_v13 = vpop.f32.mrb[58].mxu0 }
0x127e   :  { %v7262_v56 = vpack.c.bf16 %v2713_v13, %v2709_v52  ;;  %v2715_v19 = vpop.f32.mrb[59].mxu0 }
0x127f   :  { %v7264_v38 = vpack.c.bf16 %v2715_v19, %v2711_v55 }
0x1281   :  { %v2785_v44 = vsel %vm423_vm1, %v7264_v38, 0 }
0x1282   :  { %5715 = vmatpush3.bf16.xpose.msra.mxu0 %v2785_v44 }
0x1283   :  { %5720 = vmatprep.subr.bf16.mxu0 %v6535_v8 }
0x1289   :  { %5717 = vmatmul.mubr.msk.bf16.vlgmr.msra.gmra.mrb[64].mxu0 %vm423_vm1, %v7262_v56 }
0x128a   :  { %5722 = vmatprep.mubr.msk.bf16.mxu0 %vm6536_vm0, %v6535_v8 }
0x128b   :  { %v2719_v53 = vpop.f32.mrb[60].mxu0  ;;  %v5712_v43 = vpop.f32.mrb[56].mxu1 }
0x128c   :  { %v2721_v46 = vpop.f32.mrb[61].mxu0  ;;  %v2762_v63 = vpop.f32.mrb[57].mxu1 }
0x128d   :  { %v2723_v57 = vpop.f32.mrb[62].mxu0  ;;  %v5713_v2 = vpop.f32.mrb[58].mxu1 }
0x128e   :  { %v7273_v4 = vpack.c.bf16 %v2723_v57, %v2719_v53  ;;  %v7275_v15 = vpack.c.bf16 %v5713_v2, %v5712_v43  ;;  %v2725_v39 = vpop.f32.mrb[63].mxu0  ;;  %v2765_v54 = vpop.f32.mrb[59].mxu1 }
0x128f   :  { %v7277_v9 = vpack.c.bf16 %v2725_v39, %v2721_v46  ;;  %v7279_v62 = vpack.c.bf16 %v2765_v54, %v2762_v63 }
0x1290   :  { %5733 = vmatpush3.bf16.msra.mxu1 %v7275_v15 }
0x1291   :  { %v2832_v31 = vsel %vm423_vm1, %v7277_v9, 0  ;;  %5744 = vmatprep.subr.bf16.mxu1 %v6535_v8 }
0x1292   :  { %5721 = vmatpush3.bf16.xpose.msra.mxu0 %v2832_v31 }
0x1293   :  { %5726 = vmatprep.subr.bf16.mxu0 %v6535_v8 }
0x1299   :  { %5723 = vmatmul.mubr.msk.bf16.vlgmr.msra.gmra.mrb[68].mxu0 %vm423_vm1, %v7273_v4 }
0x129a   :  { %5727 = vmatpush3.bf16.msra.mxu0 %v7279_v62  ;;  %5728 = vmatprep.mubr.msk.bf16.mxu0 %vm6536_vm0, %v6535_v8 }
0x129b   :  { %5738 = vmatprep.subr.bf16.mxu0 %v6535_v8 }
0x135c   :  { %v2821_v21 = vpop.f32.mrb[64].mxu0 }
0x135d   :  { %v2875_v61 = vmul.f32 0.088388346, %v2821_v21  ;;  %v5718_v41 = vpop.f32.mrb[65].mxu0 }
0x135e   :  { %v2824_v10 = vpop.f32.mrb[66].mxu0 }
0x135f   :  { %v2876_v11 = vmul.f32 0.088388346, %v2824_v10  ;;  %v5719_v16 = vpop.f32.mrb[67].mxu0  ;;  %v2879_v18 = vsel %vm522_vm2, %v2875_v61, -inf }
0x1360   :  { %2880 = vmax.xlane.f32.xlu0 %v2879_v18 }
0x1361   :  { %v2882_v20 = vsel %vm522_vm2, %v2876_v11, -inf }
0x1362   :  { %2883 = vmax.xlane.f32.xlu1 %v2882_v20 }
0x136c   :  { %v2868_v25 = vpop.f32.mrb[68].mxu0 }
0x136d   :  { %v2877_v60 = vmul.f32 0.088388346, %v2868_v25  ;;  %v5724_v58 = vpop.f32.mrb[69].mxu0 }
0x136e   :  { %v2871_v23 = vpop.f32.mrb[70].mxu0 }
0x136f   :  { %v2878_v24 = vmul.f32 0.088388346, %v2871_v23  ;;  %v5725_v26 = vpop.f32.mrb[71].mxu0  ;;  %v2885_v28 = vsel %vm522_vm2, %v2877_v60, -inf }
0x1370   :  { %2886 = vmax.xlane.f32.xlu0 %v2885_v28 }
0x1371   :  { %v2888_v22 = vsel %vm522_vm2, %v2878_v24, -inf }
0x1372   :  { %2889 = vmax.xlane.f32.xlu1 %v2888_v22 }
0x13ed   :  { %v2881_v32 = vpop.xlane.xlu0 %2880 }
0x13ee   :  { %v2891_v34 = vsub.f32 %v2875_v61, %v2881_v32 }
0x13ef   :  { %v2884_v33 = vpop.xlane.xlu1 %2883 }
0x13f0   :  { %v2895_v14 = vmul.f32 1.442695, %v2891_v34  ;;  %v2892_v5 = vsub.f32 %v2876_v11, %v2884_v33 }
0x13f2   :  { %6290 = vpow2.f32 %v2895_v14  ;;  %v2897_v47 = vmul.f32 1.442695, %v2892_v5 }
0x13f4   :  { %6292 = vpow2.f32 %v2897_v47 }
0x13fc   :  { %v6291_v35 = vpop.eup %6290 }
0x13fd   :  { %v2903_v36 = vsel %vm522_vm2, %v6291_v35, 0.0  ;;  %v2887_v40 = vpop.xlane.xlu0 %2886 }
0x13fe   :  { %v6293_v37 = vpop.eup %6292  ;;  %2904 = vadd.xlane.f32.xlu0 %v2903_v36  ;;  %v2893_v59 = vsub.f32 %v2877_v60, %v2887_v40 }
0x13ff   :  { %v2906_v45 = vsel %vm522_vm2, %v6293_v37, 0.0  ;;  %v2890_v3 = vpop.xlane.xlu1 %2889 }
0x1400   :  { %2907 = vadd.xlane.f32.xlu1 %v2906_v45  ;;  %v2899_v12 = vmul.f32 1.442695, %v2893_v59  ;;  %v2894_v6 = vsub.f32 %v2878_v24, %v2890_v3 }
0x1402   :  { %6294 = vpow2.f32 %v2899_v12  ;;  %v2901_v17 = vmul.f32 1.442695, %v2894_v6 }
0x1404   :  { %6296 = vpow2.f32 %v2901_v17 }
0x140c   :  { %v6295_v29 = vpop.eup %6294 }
0x140d   :  { %v2909_v27 = vsel %vm522_vm2, %v6295_v29, 0.0 }
0x140e   :  { %2910 = vadd.xlane.f32.xlu0 %v2909_v27  ;;  %v6297_v7 = vpop.eup %6296 }
0x140f   :  { %v2912_v49 = vsel %vm522_vm2, %v6297_v7, 0.0 }
0x1411   :  { %3072 = vrot.lane.b32.xlu1 %v7277_v9, %s6537_s26 }
0x1424   :  { %3019 = vrot.lane.b32.xlu0 %v7264_v38, %s6537_s26 }
0x1435   :  { %2913 = vadd.xlane.f32.xlu1 %v2912_v49 }
0x1446   :  { %3016 = vrot.lane.b32.xlu1 %v7262_v56, %s6537_s26 }
0x144a   :  { %3069 = vrot.lane.b32.xlu1 %v7273_v4, %s6537_s26 }
0x148b   :  { %v2905_v50 = vpop.xlane.xlu0 %2904 }
0x148c   :  { %6298 = vrcp.f32 %v2905_v50 }
0x148d   :  { %v2908_v51 = vpop.xlane.xlu1 %2907 }
0x148e   :  { %6300 = vrcp.f32 %v2908_v51 }
0x1491   :  { %v3073_v63 = vpop.permute.xlu1 %3072 }
0x1492   :  { %v3078_v41 = vsel %vm423_vm1, %v3073_v63, 0 }
0x1496   :  { %v6299_v52 = vpop.eup %6298 }
0x1497   :  { %v2919_v13 = vmul.f32 %v6299_v52, %v6291_v35 }
0x1498   :  { %v6301_v55 = vpop.eup %6300 }
0x1499   :  { %v2920_v19 = vmul.f32 %v6301_v55, %v6293_v37 }
0x149b   :  { %v2923_v44 = vpack.c.bf16 %v2920_v19, %v2919_v13  ;;  %v2911_v53 = vpop.xlane.xlu0 %2910 }
0x149c   :  { %6302 = vrcp.f32 %v2911_v53 }
0x149d   :  { %5729 = vmatmul.mubr.msk.bf16.vlgmr.msra.gmra.mrb[72].mxu0 %vm522_vm2, %v2923_v44 }
0x149e   :  { %5740 = vmatprep.mubr.msk.bf16.mxu0 %vm6536_vm0, %v6535_v8 }
0x149f   :  { %v3020_v43 = vpop.permute.xlu0 %3019 }
0x14a0   :  { %v3025_v46 = vsel %vm423_vm1, %v3020_v43, 0 }
0x14a1   :  { %5739 = vmatpush3.bf16.xpose.msra.mxu0 %v3025_v46 }
0x14a2   :  { %5750 = vmatprep.subr.bf16.mxu0 %v6535_v8 }
0x14a6   :  { %v6303_v39 = vpop.eup %6302 }
0x14a7   :  { %v2921_v31 = vmul.f32 %v6303_v39, %v6295_v29 }
0x14c2   :  { %v2914_v57 = vpop.xlane.xlu1 %2913 }
0x14c3   :  { %6304 = vrcp.f32 %v2914_v57 }
0x14c6   :  { %v3017_v2 = vpop.permute.xlu1 %3016 }
0x14c7   :  { %5741 = vmatmul.mubr.msk.bf16.vlgmr.msra.gmra.mrb[76].mxu0 %vm423_vm1, %v3017_v2 }
0x14c8   :  { %5752 = vmatprep.mubr.msk.bf16.mxu0 %vm6536_vm0, %v6535_v8 }
0x14ca   :  { %v3070_v10 = vpop.permute.xlu1 %3069 }
0x14cd   :  { %v6305_v54 = vpop.eup %6304 }
0x14ce   :  { %v2922_v21 = vmul.f32 %v6305_v54, %v6297_v7 }
0x14d0   :  { %v2924_v61 = vpack.c.bf16 %v2922_v21, %v2921_v31 }
0x14d2   :  { %5735 = vmatmul.mubr.msk.bf16.vlgmr.msra.gmra.mrb[60].mxu1 %vm522_vm2, %v2924_v61 }
0x14d3   :  { %5745 = vmatpush3.bf16.xpose.msra.mxu1 %v3078_v41  ;;  %5746 = vmatprep.mubr.msk.bf16.mxu1 %vm6536_vm0, %v6535_v8 }
0x14d4   :  { %5756 = vmatprep.subr.bf16.mxu1 %v6535_v8 }
0x14da   :  { %5747 = vmatmul.mubr.msk.bf16.vlgmr.msra.gmra.mrb[64].mxu1 %vm423_vm1, %v3070_v10 }
0x14db   :  { %5758 = vmatprep.mubr.msk.bf16.mxu1 %vm6536_vm0, %v6535_v8 }
0x1570   :  { %v7324_v11 = vpop.f32.mrb[72].mxu0 }
0x1571   :  { %v5730_v16 = vpop.f32.mrb[73].mxu0 }
0x1572   :  { %v7326_v18 = vpop.f32.mrb[74].mxu0 }
0x1573   :  { %v5731_v20 = vpop.f32.mrb[75].mxu0 }
0x159a   :  { %v3061_v25 = vpop.f32.mrb[76].mxu0 }
0x159b   :  { %v3121_v60 = vmul.f32 0.088388346, %v3061_v25  ;;  %v5742_v58 = vpop.f32.mrb[77].mxu0 }
0x159c   :  { %v3064_v23 = vpop.f32.mrb[78].mxu0 }
0x159d   :  { %v3122_v24 = vmul.f32 0.088388346, %v3064_v23  ;;  %v5743_v26 = vpop.f32.mrb[79].mxu0  ;;  %v3125_v28 = vsel %vm522_vm2, %v3121_v60, -inf }
0x159e   :  { %3126 = vmax.xlane.f32.xlu0 %v3125_v28 }
0x159f   :  { %v3128_v22 = vsel %vm522_vm2, %v3122_v24, -inf }
0x15a0   :  { %3129 = vmax.xlane.f32.xlu1 %v3128_v22 }
0x15a5   :  { %v7330_v32 = vpop.f32.mrb[60].mxu1 }
0x15a6   :  { %v5736_v34 = vpop.f32.mrb[61].mxu1 }
0x15a7   :  { %v7332_v33 = vpop.f32.mrb[62].mxu1 }
0x15a8   :  { %v5737_v14 = vpop.f32.mrb[63].mxu1 }
0x15ad   :  { %v3114_v5 = vpop.f32.mrb[64].mxu1 }
0x15ae   :  { %v3123_v47 = vmul.f32 0.088388346, %v3114_v5  ;;  %v5748_v35 = vpop.f32.mrb[65].mxu1 }
0x15af   :  { %v3117_v36 = vpop.f32.mrb[66].mxu1 }
0x15b0   :  { %v3124_v37 = vmul.f32 0.088388346, %v3117_v36  ;;  %v5749_v40 = vpop.f32.mrb[67].mxu1  ;;  %v3131_v59 = vsel %vm522_vm2, %v3123_v47, -inf }
0x15b1   :  { %3132 = vmax.xlane.f32.xlu0 %v3131_v59 }
0x15b2   :  { %v3134_v45 = vsel %vm522_vm2, %v3124_v37, -inf }
0x15b5   :  { %3135 = vmax.xlane.f32.xlu0 %v3134_v45 }
0x162b   :  { %v3127_v12 = vpop.xlane.xlu0 %3126 }
0x162c   :  { %v3137_v29 = vsub.f32 %v3121_v60, %v3127_v12 }
0x162d   :  { %v3130_v27 = vpop.xlane.xlu1 %3129 }
0x162e   :  { %v3141_v3 = vmul.f32 1.442695, %v3137_v29  ;;  %v3138_v6 = vsub.f32 %v3122_v24, %v3130_v27 }
0x1630   :  { %6306 = vpow2.f32 %v3141_v3  ;;  %v3143_v17 = vmul.f32 1.442695, %v3138_v6 }
0x1632   :  { %6308 = vpow2.f32 %v3143_v17 }
0x163a   :  { %v6307_v7 = vpop.eup %6306 }
0x163b   :  { %v3149_v49 = vsel %vm522_vm2, %v6307_v7, 0.0 }
0x163c   :  { %v6309_v50 = vpop.eup %6308  ;;  %3150 = vadd.xlane.f32.xlu0 %v3149_v49 }
0x163d   :  { %v3152_v51 = vsel %vm522_vm2, %v6309_v50, 0.0 }
0x163e   :  { %v3133_v52 = vpop.xlane.xlu0 %3132  ;;  %3153 = vadd.xlane.f32.xlu1 %v3152_v51 }
0x163f   :  { %v3139_v55 = vsub.f32 %v3123_v47, %v3133_v52 }
0x1641   :  { %v3145_v13 = vmul.f32 1.442695, %v3139_v55 }
0x1642   :  { %v3136_v53 = vpop.xlane.xlu0 %3135 }
0x1643   :  { %6310 = vpow2.f32 %v3145_v13  ;;  %v3140_v43 = vsub.f32 %v3124_v37, %v3136_v53 }
0x1645   :  { %v3147_v46 = vmul.f32 1.442695, %v3140_v43 }
0x1647   :  { %6312 = vpow2.f32 %v3147_v46 }
0x164d   :  { %v6311_v19 = vpop.eup %6310 }
0x164e   :  { %v3155_v44 = vsel %vm522_vm2, %v6311_v19, 0.0 }
0x164f   :  { %3156 = vadd.xlane.f32.xlu0 %v3155_v44  ;;  %3220 = vrot.lane.b32.xlu1 %v7275_v15, %s6537_s26 }
0x1651   :  { %v6313_v63 = vpop.eup %6312 }
0x1652   :  { %v3158_v57 = vsel %vm522_vm2, %v6313_v63, 0.0 }
0x1653   :  { %3269 = vrot.lane.b32.xlu1 %v7264_v38, %s6528_s6 }
0x1665   :  { %3172 = vrot.lane.b32.xlu0 %v7279_v62, %s6537_s26 }
0x1669   :  { %3267 = vrot.lane.b32.xlu0 %v7262_v56, %s6528_s6 }
0x1677   :  { %3159 = vadd.xlane.f32.xlu1 %v3158_v57 }
0x1688   :  { %3320 = vrot.lane.b32.xlu1 %v7277_v9, %s6528_s6 }
0x168c   :  { %3318 = vrot.lane.b32.xlu1 %v7273_v4, %s6528_s6 }
0x16c9   :  { %v3151_v54 = vpop.xlane.xlu0 %3150 }
0x16cb   :  { %v3154_v2 = vpop.xlane.xlu1 %3153 }
0x16cc   :  { %6314 = vrcp.f32 %v3154_v2 }
0x16cd   :  { %6316 = vrcp.f32 %v3151_v54 }
0x16cf   :  { %v3221_v39 = vpop.permute.xlu1 %3220 }
0x16d0   :  { %5757 = vmatpush3.bf16.msra.mxu1 %v3221_v39 }
0x16d1   :  { %5768 = vmatprep.subr.bf16.mxu1 %v6535_v8 }
0x16d3   :  { %v3270_v25 = vpop.permute.xlu1 %3269 }
0x16d4   :  { %v3275_v60 = vsel %vm423_vm1, %v3270_v25, 0 }
0x16d6   :  { %v6315_v31 = vpop.eup %6314 }
0x16d7   :  { %v6317_v61 = vpop.eup %6316  ;;  %v3166_v41 = vmul.f32 %v6315_v31, %v6309_v50 }
0x16d8   :  { %v3165_v10 = vmul.f32 %v6317_v61, %v6307_v7 }
0x16da   :  { %v3169_v20 = vpack.c.bf16 %v3166_v41, %v3165_v10 }
0x16dc   :  { %v3157_v21 = vpop.xlane.xlu0 %3156 }
0x16dd   :  { %6318 = vrcp.f32 %v3157_v21 }
0x16e0   :  { %v3173_v16 = vpop.permute.xlu0 %3172 }
0x16e1   :  { %5751 = vmatpush3.bf16.msra.mxu0 %v3173_v16 }
0x16e2   :  { %5762 = vmatprep.subr.bf16.mxu0 %v6535_v8 }
0x16e4   :  { %5753 = vmatmul.mubr.msk.bf16.vlgmr.msra.gmra.mrb[80].mxu0 %vm522_vm2, %v3169_v20  ;;  %v3268_v58 = vpop.permute.xlu0 %3267 }
0x16e5   :  { %5764 = vmatprep.mubr.msk.bf16.mxu0 %vm6536_vm0, %v6535_v8 }
0x16e7   :  { %v6319_v24 = vpop.eup %6318 }
0x16e8   :  { %v3167_v28 = vmul.f32 %v6319_v24, %v6311_v19 }
0x16ea   :  { %5763 = vmatpush3.bf16.xpose.msra.mxu0 %v3275_v60 }
0x16eb   :  { %5774 = vmatprep.subr.bf16.mxu0 %v6535_v8 }
0x16f1   :  { %5765 = vmatmul.mubr.msk.bf16.vlgmr.msra.gmra.mrb[84].mxu0 %vm423_vm1, %v3268_v58 }
0x16f2   :  { %5776 = vmatprep.mubr.msk.bf16.mxu0 %vm6536_vm0, %v6535_v8 }
0x1704   :  { %v3160_v23 = vpop.xlane.xlu1 %3159 }
0x1705   :  { %6320 = vrcp.f32 %v3160_v23 }
0x1708   :  { %v3321_v34 = vpop.permute.xlu1 %3320 }
0x1709   :  { %v3326_v5 = vsel %vm423_vm1, %v3321_v34, 0 }
0x170c   :  { %v3319_v47 = vpop.permute.xlu1 %3318 }
0x170f   :  { %v6321_v26 = vpop.eup %6320 }
0x1710   :  { %v3168_v22 = vmul.f32 %v6321_v26, %v6313_v63 }
0x1712   :  { %v3170_v14 = vpack.c.bf16 %v3168_v22, %v3167_v28 }
0x1714   :  { %5759 = vmatmul.mubr.msk.bf16.vlgmr.msra.gmra.mrb[68].mxu1 %vm522_vm2, %v3170_v14 }
0x1715   :  { %5769 = vmatpush3.bf16.xpose.msra.mxu1 %v3326_v5  ;;  %5770 = vmatprep.mubr.msk.bf16.mxu1 %vm6536_vm0, %v6535_v8 }
0x1716   :  { %5780 = vmatprep.subr.bf16.mxu1 %v6535_v8 }
0x171c   :  { %5771 = vmatmul.mubr.msk.bf16.vlgmr.msra.gmra.mrb[72].mxu1 %vm423_vm1, %v3319_v47 }
0x171d   :  { %5782 = vmatprep.mubr.msk.bf16.mxu1 %vm6536_vm0, %v6535_v8 }
0x17b7   :  { %v7370_v35 = vpop.f32.mrb[80].mxu0 }
0x17b8   :  { %v5754_v36 = vpop.f32.mrb[81].mxu0 }
0x17b9   :  { %v7372_v37 = vpop.f32.mrb[82].mxu0 }
0x17ba   :  { %v5876_v40 = vpack.i.bf16 %v7372_v37, %v7370_v35  ;;  %v5755_v59 = vpop.f32.mrb[83].mxu0 }
0x17c4   :  { %v3311_v45 = vpop.f32.mrb[84].mxu0 }
0x17c5   :  { %v3369_v12 = vmul.f32 0.088388346, %v3311_v45  ;;  %v5766_v29 = vpop.f32.mrb[85].mxu0 }
0x17c6   :  { %v3314_v27 = vpop.f32.mrb[86].mxu0 }
0x17c7   :  { %v3370_v3 = vmul.f32 0.088388346, %v3314_v27  ;;  %v5767_v6 = vpop.f32.mrb[87].mxu0  ;;  %v3373_v17 = vsel %vm522_vm2, %v3369_v12, -inf }
0x17c8   :  { %3374 = vmax.xlane.f32.xlu0 %v3373_v17 }
0x17c9   :  { %v3376_v7 = vsel %vm522_vm2, %v3370_v3, -inf }
0x17ca   :  { %3377 = vmax.xlane.f32.xlu1 %v3376_v7 }
0x17e7   :  { %v7378_v49 = vpop.f32.mrb[68].mxu1 }
0x17e8   :  { %v5760_v50 = vpop.f32.mrb[69].mxu1 }
0x17e9   :  { %v7380_v51 = vpop.f32.mrb[70].mxu1 }
0x17ea   :  { %v5881_v52 = vpack.i.bf16 %v7380_v51, %v7378_v49  ;;  %v5761_v55 = vpop.f32.mrb[71].mxu1 }
0x17ef   :  { %v3362_v13 = vpop.f32.mrb[72].mxu1 }
0x17f0   :  { %v3371_v19 = vmul.f32 0.088388346, %v3362_v13  ;;  %v5772_v44 = vpop.f32.mrb[73].mxu1 }
0x17f1   :  { %v3365_v53 = vpop.f32.mrb[74].mxu1 }
0x17f2   :  { %v3372_v43 = vmul.f32 0.088388346, %v3365_v53  ;;  %v5773_v46 = vpop.f32.mrb[75].mxu1  ;;  %v3379_v63 = vsel %vm522_vm2, %v3371_v19, -inf }
0x17f3   :  { %3380 = vmax.xlane.f32.xlu0 %v3379_v63 }
0x17f4   :  { %v3382_v57 = vsel %vm522_vm2, %v3372_v43, -inf }
0x17f7   :  { %3383 = vmax.xlane.f32.xlu0 %v3382_v57 }
0x1855   :  { %v3375_v2 = vpop.xlane.xlu0 %3374 }
0x1856   :  { %v3385_v39 = vsub.f32 %v3369_v12, %v3375_v2 }
0x1857   :  { %v3378_v54 = vpop.xlane.xlu1 %3377 }
0x1858   :  { %v3389_v31 = vmul.f32 1.442695, %v3385_v39  ;;  %v3386_v21 = vsub.f32 %v3370_v3, %v3378_v54 }
0x185a   :  { %6322 = vpow2.f32 %v3389_v31  ;;  %v3391_v61 = vmul.f32 1.442695, %v3386_v21 }
0x185c   :  { %6324 = vpow2.f32 %v3391_v61 }
0x1864   :  { %v6323_v41 = vpop.eup %6322 }
0x1865   :  { %v3397_v10 = vsel %vm522_vm2, %v6323_v41, 0.0 }
0x1866   :  { %v6325_v16 = vpop.eup %6324  ;;  %3398 = vadd.xlane.f32.xlu0 %v3397_v10 }
0x1867   :  { %v3400_v20 = vsel %vm522_vm2, %v6325_v16, 0.0 }
0x1868   :  { %3401 = vadd.xlane.f32.xlu1 %v3400_v20 }
0x1879   :  { %3466 = vrot.lane.b32.xlu1 %v7275_v15, %s6528_s6 }
0x187d   :  { %3515 = vrot.lane.b32.xlu1 %v7264_v38, %s6538_s16 }
0x1880   :  { %v3381_v25 = vpop.xlane.xlu0 %3380 }
0x1881   :  { %v3387_v60 = vsub.f32 %v3371_v19, %v3381_v25 }
0x1883   :  { %v3393_v58 = vmul.f32 1.442695, %v3387_v60 }
0x1884   :  { %v3384_v23 = vpop.xlane.xlu0 %3383 }
0x1885   :  { %6326 = vpow2.f32 %v3393_v58  ;;  %v3388_v24 = vsub.f32 %v3372_v43, %v3384_v23 }
0x1887   :  { %v3395_v28 = vmul.f32 1.442695, %v3388_v24 }
0x1889   :  { %6328 = vpow2.f32 %v3395_v28 }
0x188f   :  { %v6327_v26 = vpop.eup %6326 }
0x1890   :  { %v3403_v22 = vsel %vm522_vm2, %v6327_v26, 0.0 }
0x1891   :  { %3404 = vadd.xlane.f32.xlu0 %v3403_v22 }
0x1893   :  { %v6329_v34 = vpop.eup %6328 }
0x1894   :  { %v3406_v14 = vsel %vm522_vm2, %v6329_v34, 0.0 }
0x18a1   :  { %3407 = vadd.xlane.f32.xlu1 %v3406_v14 }
0x18a7   :  { %3419 = vrot.lane.b32.xlu0 %v7279_v62, %s6528_s6 }
0x18ab   :  { %3513 = vrot.lane.b32.xlu0 %v7262_v56, %s6538_s16 }
0x18b2   :  { %3566 = vrot.lane.b32.xlu1 %v7277_v9, %s6538_s16 }
0x18b6   :  { %3564 = vrot.lane.b32.xlu1 %v7273_v4, %s6538_s16 }
0x18f3   :  { %v3399_v47 = vpop.xlane.xlu0 %3398 }
0x18f5   :  { %v3402_v38 = vpop.xlane.xlu1 %3401 }
0x18f6   :  { %6330 = vrcp.f32 %v3402_v38 }
0x18f7   :  { %6332 = vrcp.f32 %v3399_v47 }
0x18f9   :  { %v3467_v5 = vpop.permute.xlu1 %3466 }
0x18fa   :  { %5781 = vmatpush3.bf16.msra.mxu1 %v3467_v5 }
0x18fb   :  { %5792 = vmatprep.subr.bf16.mxu1 %v6535_v8 }
0x18fd   :  { %v3516_v4 = vpop.permute.xlu1 %3515 }
0x18fe   :  { %v3521_v9 = vsel %vm423_vm1, %v3516_v4, 0 }
0x1900   :  { %v6331_v36 = vpop.eup %6330 }
0x1901   :  { %v6333_v45 = vpop.eup %6332  ;;  %v3414_v12 = vmul.f32 %v6331_v36, %v6325_v16 }
0x1902   :  { %v3413_v29 = vmul.f32 %v6333_v45, %v6323_v41 }
0x1904   :  { %v3417_v27 = vpack.c.bf16 %v3414_v12, %v3413_v29 }
0x191e   :  { %v3405_v59 = vpop.xlane.xlu0 %3404 }
0x191f   :  { %6334 = vrcp.f32 %v3405_v59 }
0x1922   :  { %v3420_v56 = vpop.permute.xlu0 %3419 }
0x1923   :  { %5775 = vmatpush3.bf16.msra.mxu0 %v3420_v56 }
0x1924   :  { %5786 = vmatprep.subr.bf16.mxu0 %v6535_v8 }
0x1926   :  { %5777 = vmatmul.mubr.msk.bf16.vlgmr.msra.gmra.mrb[88].mxu0 %vm522_vm2, %v3417_v27  ;;  %v3514_v6 = vpop.permute.xlu0 %3513 }
0x1927   :  { %5788 = vmatprep.mubr.msk.bf16.mxu0 %vm6536_vm0, %v6535_v8 }
0x1929   :  { %v6335_v17 = vpop.eup %6334 }
0x192a   :  { %v3415_v50 = vmul.f32 %v6335_v17, %v6327_v26 }
0x192c   :  { %5787 = vmatpush3.bf16.xpose.msra.mxu0 %v3521_v9 }
0x192d   :  { %5798 = vmatprep.subr.bf16.mxu0 %v6535_v8 }
0x192e   :  { %v3408_v3 = vpop.xlane.xlu1 %3407 }
0x192f   :  { %6336 = vrcp.f32 %v3408_v3 }
0x1932   :  { %v3567_v13 = vpop.permute.xlu1 %3566 }
0x1933   :  { %5789 = vmatmul.mubr.msk.bf16.vlgmr.msra.gmra.mrb[92].mxu0 %vm423_vm1, %v3514_v6  ;;  %v3572_v44 = vsel %vm423_vm1, %v3567_v13, 0 }
0x1934   :  { %5800 = vmatprep.mubr.msk.bf16.mxu0 %vm6536_vm0, %v6535_v8 }
0x1936   :  { %v3565_v53 = vpop.permute.xlu1 %3564 }
0x1939   :  { %v6337_v7 = vpop.eup %6336 }
0x193a   :  { %v3416_v55 = vmul.f32 %v6337_v7, %v6329_v34 }
0x193c   :  { %v3418_v19 = vpack.c.bf16 %v3416_v55, %v3415_v50 }
0x193e   :  { %5783 = vmatmul.mubr.msk.bf16.vlgmr.msra.gmra.mrb[76].mxu1 %vm522_vm2, %v3418_v19 }
0x193f   :  { %5793 = vmatpush3.bf16.xpose.msra.mxu1 %v3572_v44  ;;  %5794 = vmatprep.mubr.msk.bf16.mxu1 %vm6536_vm0, %v6535_v8 }
0x1940   :  { %5804 = vmatprep.subr.bf16.mxu1 %v6535_v8 }
0x1946   :  { %5795 = vmatmul.mubr.msk.bf16.vlgmr.msra.gmra.mrb[80].mxu1 %vm423_vm1, %v3565_v53 }
0x1947   :  { %5806 = vmatprep.mubr.msk.bf16.mxu1 %vm6536_vm0, %v6535_v8 }
0x19f9   :  { %v3459_v43 = vpop.f32.mrb[88].mxu0 }
0x19fa   :  { %v5778_v46 = vpop.f32.mrb[89].mxu0 }
0x19fb   :  { %v3462_v63 = vpop.f32.mrb[90].mxu0 }
0x19fc   :  { %v5886_v57 = vpack.i.bf16 %v3462_v63, %v3459_v43  ;;  %v5779_v2 = vpop.f32.mrb[91].mxu0 }
0x1a06   :  { %v3557_v39 = vpop.f32.mrb[92].mxu0 }
0x1a07   :  { %v3615_v54 = vmul.f32 0.088388346, %v3557_v39  ;;  %v5790_v31 = vpop.f32.mrb[93].mxu0 }
0x1a08   :  { %v3560_v21 = vpop.f32.mrb[94].mxu0  ;;  %v6058_v31 = vld [vmem:[#allocation2 + $0x40] sm:$0xff]  }
0x1a09   :  { %v3616_v61 = vmul.f32 0.088388346, %v3560_v21  ;;  %v5791_v41 = vpop.f32.mrb[95].mxu0  ;;  %v3619_v10 = vsel %vm522_vm2, %v3615_v54, -inf  ;;  %v6059_v21 = vld [vmem:[#allocation2 + $0x48] sm:$0xff]  }
0x1a0a   :  { %3620 = vmax.xlane.f32.xlu0 %v3619_v10  ;;  %v6061_v41 = vld [vmem:[#allocation2 + $0x58] sm:$0xff]   ;;  %v6062_v10 = vld [vmem:[#allocation2 + $0x60] sm:$0xff]  }
0x1a0b   :  { %v3622_v16 = vsel %vm522_vm2, %v3616_v61, -inf }
0x1a0c   :  { %3623 = vmax.xlane.f32.xlu1 %v3622_v16  ;;  %v6063_v16 = vld [vmem:[#allocation2 + $0x68] sm:$0xff]  }
0x1a11   :  { %v3506_v20 = vpop.f32.mrb[76].mxu1 }
0x1a12   :  { %v5784_v25 = vpop.f32.mrb[77].mxu1 }
0x1a13   :  { %v3509_v8 = vpop.f32.mrb[78].mxu1 }
0x1a14   :  { %v5891_v60 = vpack.i.bf16 %v3509_v8, %v3506_v20  ;;  %v5785_v58 = vpop.f32.mrb[79].mxu1  ;;  %v6064_v20 = vld [vmem:[#allocation2 + $0x70] sm:$0xff]  }
0x1a19   :  { %v3608_v23 = vpop.f32.mrb[80].mxu1 }
0x1a1a   :  { %v3617_v24 = vmul.f32 0.088388346, %v3608_v23  ;;  %v5796_v26 = vpop.f32.mrb[81].mxu1 }
0x1a1b   :  { %v3611_v28 = vpop.f32.mrb[82].mxu1 }
0x1a1c   :  { %v3618_v22 = vmul.f32 0.088388346, %v3611_v28  ;;  %v5797_v34 = vpop.f32.mrb[83].mxu1  ;;  %v3625_v14 = vsel %vm522_vm2, %v3617_v24, -inf }
0x1a1d   :  { %3626 = vmax.xlane.f32.xlu0 %v3625_v14 }
0x1a1e   :  { %v3628_v38 = vsel %vm522_vm2, %v3618_v22, -inf }
0x1a21   :  { %3629 = vmax.xlane.f32.xlu0 %v3628_v38 }
0x1a97   :  { %v3621_v5 = vpop.xlane.xlu0 %3620 }
0x1a98   :  { %v3631_v47 = vsub.f32 %v3615_v54, %v3621_v5 }
0x1a99   :  { %v3624_v36 = vpop.xlane.xlu1 %3623 }
0x1a9a   :  { %v3635_v59 = vmul.f32 1.442695, %v3631_v47  ;;  %v3632_v45 = vsub.f32 %v3616_v61, %v3624_v36  ;;  %v6060_v61 = vld [vmem:[#allocation2 + $0x50] sm:$0xff]  }
0x1a9c   :  { %6338 = vpow2.f32 %v3635_v59  ;;  %v3637_v12 = vmul.f32 1.442695, %v3632_v45 }
0x1a9e   :  { %6340 = vpow2.f32 %v3637_v12 }
0x1aa6   :  { %v6339_v29 = vpop.eup %6338 }
0x1aa7   :  { %v3643_v56 = vsel %vm522_vm2, %v6339_v29, 0.0 }
0x1aa8   :  { %v6341_v27 = vpop.eup %6340  ;;  %3644 = vadd.xlane.f32.xlu0 %v3643_v56 }
0x1aa9   :  { %v3646_v4 = vsel %vm522_vm2, %v6341_v27, 0.0 }
0x1aaa   :  { %v3627_v9 = vpop.xlane.xlu0 %3626  ;;  %3647 = vadd.xlane.f32.xlu1 %v3646_v4 }
0x1aab   :  { %v3633_v3 = vsub.f32 %v3617_v24, %v3627_v9  ;;  %v6065_v24 = vld [vmem:[#allocation2 + $0x78] sm:$0xff]  }
0x1aad   :  { %v3639_v6 = vmul.f32 1.442695, %v3633_v3 }
0x1aae   :  { %v3630_v17 = vpop.xlane.xlu0 %3629 }
0x1aaf   :  { %6342 = vpow2.f32 %v3639_v6  ;;  %v3634_v7 = vsub.f32 %v3618_v22, %v3630_v17 }
0x1ab1   :  { %v3641_v50 = vmul.f32 1.442695, %v3634_v7 }
0x1ab3   :  { %6344 = vpow2.f32 %v3641_v50 }
0x1ab9   :  { %v6343_v55 = vpop.eup %6342 }
0x1aba   :  { %v3649_v13 = vsel %vm522_vm2, %v6343_v55, 0.0 }
0x1abb   :  { %3650 = vadd.xlane.f32.xlu0 %v3649_v13 }
0x1abd   :  { %v6345_v19 = vpop.eup %6344 }
0x1abe   :  { %v3652_v44 = vsel %vm522_vm2, %v6345_v19, 0.0 }
0x1abf   :  { %3653 = vadd.xlane.f32.xlu1 %v3652_v44 }
0x1ad0   :  { %3712 = vrot.lane.b32.xlu1 %v7275_v15, %s6538_s16 }
0x1ad1   :  { %3665 = vrot.lane.b32.xlu0 %v7279_v62, %s6538_s16 }
0x1ad4   :  { %5877 = vrot.lane.b32.xlu1 %v5876_v40, %s6538_s16 }
0x1ad5   :  { %5887 = vrot.lane.b32.xlu0 %v5886_v57, %s6528_s6 }
0x1ad8   :  { %5882 = vrot.lane.b32.xlu1 %v5881_v52, %s6538_s16 }
0x1adc   :  { %5892 = vrot.lane.b32.xlu1 %v5891_v60, %s6528_s6 }
0x1b35   :  { %v3645_v43 = vpop.xlane.xlu0 %3644 }
0x1b37   :  { %v3648_v53 = vpop.xlane.xlu1 %3647 }
0x1b38   :  { %6346 = vrcp.f32 %v3648_v53 }
0x1b39   :  { %6348 = vrcp.f32 %v3645_v43 }
0x1b42   :  { %v6347_v15 = vpop.eup %6346 }
0x1b43   :  { %v6349_v46 = vpop.eup %6348  ;;  %v3660_v63 = vmul.f32 %v6347_v15, %v6341_v27 }
0x1b44   :  { %v3659_v35 = vmul.f32 %v6349_v46, %v6339_v29 }
0x1b46   :  { %v3663_v57 = vpack.c.bf16 %v3660_v63, %v3659_v35 }
0x1b48   :  { %v3651_v62 = vpop.xlane.xlu0 %3650 }
0x1b49   :  { %6350 = vrcp.f32 %v3651_v62 }
0x1b4c   :  { %v3666_v37 = vpop.permute.xlu0 %3665  ;;  %v3654_v40 = vpop.xlane.xlu1 %3653 }
0x1b4d   :  { %6352 = vrcp.f32 %v3654_v40  ;;  %5799 = vmatpush3.bf16.msra.mxu0 %v3666_v37 }
0x1b4e   :  { %5810 = vmatprep.subr.bf16.mxu0 %v6058_v31 }
0x1b50   :  { %5801 = vmatmul.mubr.msk.bf16.vlgmr.msra.gmra.mrb[96].mxu0 %vm522_vm2, %v3663_v57  ;;  %v3713_v49 = vpop.permute.xlu1 %3712  ;;  %v5888_v36 = vpop.permute.xlu0 %5887 }
0x1b51   :  { %5805 = vmatpush3.bf16.msra.mxu1 %v3713_v49  ;;  %5811 = vmatpush3.bf16.msra.mxu0 %v6058_v31  ;;  %v5890_v12 = vunpack.i.h.bf16 %v5888_v36  ;;  %v5889_v29 = vunpack.i.l.bf16 %v5888_v36 }
0x1b52   :  { %5812 = vmatprep.subr.bf16.mxu0 %v6059_v21 }
0x1b53   :  { %v6351_v51 = vpop.eup %6350 }
0x1b54   :  { %v3661_v2 = vmul.f32 %v6351_v51, %v6343_v55  ;;  %v5878_v38 = vpop.permute.xlu1 %5877 }
0x1b55   :  { %5813 = vmatpush3.bf16.msra.mxu0 %v6059_v21  ;;  %v5880_v5 = vunpack.i.h.bf16 %v5878_v38  ;;  %v5879_v47 = vunpack.i.l.bf16 %v5878_v38 }
0x1b56   :  { %5814 = vmatprep.subr.bf16.mxu0 %v6060_v61 }
0x1b57   :  { %v6353_v52 = vpop.eup %6352  ;;  %v3808_v59 = vsel %vm423_vm1, %v7326_v18, %v5880_v5  ;;  %v3807_v45 = vsel %vm423_vm1, %v7324_v11, %v5879_v47 }
0x1b58   :  { %v3662_v39 = vmul.f32 %v6353_v52, %v6345_v19  ;;  %v5883_v27 = vpop.permute.xlu1 %5882  ;;  %v3811_v3 = vsel %vm1455_vm3, %v3807_v45, %v5889_v29  ;;  %v3812_v6 = vsel %vm1455_vm3, %v3808_v59, %v5890_v12 }
0x1b59   :  { %5815 = vmatpush3.bf16.msra.mxu0 %v6060_v61  ;;  %v5885_v55 = vunpack.i.h.bf16 %v5883_v27  ;;  %v5884_v13 = vunpack.i.l.bf16 %v5883_v27 }
0x1b5a   :  { %v3664_v54 = vpack.c.bf16 %v3662_v39, %v3661_v2  ;;  %5816 = vmatprep.subr.bf16.mxu0 %v6061_v41 }
0x1b5b   :  { %v3810_v53 = vsel %vm423_vm1, %v7332_v33, %v5885_v55  ;;  %v3809_v43 = vsel %vm423_vm1, %v7330_v32, %v5884_v13  ;;  %v5249_v33 = vld [vmem:[%s7647_s4 + $0x1] ss:$0 sm:$0xff]  ;;  %v6098_v55 = vld [vmem:[#allocation5 + $0x1a4] ss:$16 sps:$4 sm:$0xff]  }
0x1b5c   :  { %5807 = vmatmul.mubr.msk.bf16.vlgmr.msra.gmra.mrb[84].mxu1 %vm522_vm2, %v3664_v54  ;;  %v5893_v18 = vpop.permute.xlu1 %5892  ;;  %v6096_v13 = vld [vmem:[#allocation5 + $0x1a0] ss:$16 sps:$4 sm:$0xff]  }
0x1b5d   :  { %4230 = vmatprep.mubr.bf16.mxu1 %v6534_v42  ;;  %5817 = vmatpush3.bf16.msra.mxu0 %v6061_v41  ;;  %v5895_v11 = vunpack.i.h.bf16 %v5893_v18  ;;  %v5894_v19 = vunpack.i.l.bf16 %v5893_v18  ;;  %v6093_v18 = vld [vmem:[#allocation5 + $0x188] ss:$16 sps:$4 sm:$0xff]  }
0x1b5e   :  { %5818 = vmatprep.subr.bf16.mxu0 %v6062_v10 }
0x1b5f   :  { %v3813_v46 = vsel %vm1455_vm3, %v3809_v43, %v5894_v19  ;;  %v3814_v63 = vsel %vm1455_vm3, %v3810_v53, %v5895_v11  ;;  %v6101_v11 = vld [vmem:[#allocation5 + $0x1ac] ss:$16 sps:$4 sm:$0xff]   ;;  %v6099_v19 = vld [vmem:[#allocation5 + $0x1a8] ss:$16 sps:$4 sm:$0xff]   ;;  %v6102_v43 = vld [vmem:[#allocation5 + $0x1c0] ss:$16 sps:$4 sm:$0xff]  }
0x1b60   :  { %v6107_v53 = vld [vmem:[#allocation5 + $0x1cc] ss:$16 sps:$4 sm:$0xff]  }
0x1b61   :  { %5819 = vmatpush3.bf16.msra.mxu0 %v6062_v10  ;;  %v6068_v10 = vld [vmem:[#allocation5 + $0x104] ss:$16 sps:$4 sm:$0xff]  }
0x1b62   :  { %5820 = vmatprep.subr.bf16.mxu0 %v6063_v16  ;;  %4198 = vmatprep.subr.bf16.mxu1 %v6068_v10 }
0x1b65   :  { %5821 = vmatpush3.bf16.msra.mxu0 %v6063_v16  ;;  %v6069_v16 = vld [vmem:[#allocation5 + $0x108] ss:$16 sps:$4 sm:$0xff]  }
0x1b66   :  { %5822 = vmatprep.subr.bf16.mxu0 %v6064_v20 }
0x1b69   :  { %5823 = vmatpush3.bf16.msra.mxu0 %v6064_v20  ;;  %v6074_v20 = vld [vmem:[#allocation5 + $0x124] ss:$16 sps:$4 sm:$0xff]  }
0x1b6a   :  { %5824 = vmatprep.subr.bf16.mxu0 %v6065_v24 }
0x1b6d   :  { %5825 = vmatpush3.bf16.msra.mxu0 %v6065_v24 }
0x1c23   :  { %v3705_v25 = vpop.f32.mrb[96].mxu0 }
0x1c24   :  { %v5802_v8 = vpop.f32.mrb[97].mxu0 }
0x1c25   :  { %v3708_v60 = vpop.f32.mrb[98].mxu0  ;;  %v6075_v8 = vld [vmem:[#allocation5 + $0x128] ss:$16 sps:$4 sm:$0xff]  }
0x1c26   :  { %v5896_v58 = vpack.i.bf16 %v3708_v60, %v3705_v25  ;;  %v5803_v23 = vpop.f32.mrb[99].mxu0  ;;  %v6077_v25 = vld [vmem:[#allocation5 + $0x12c] ss:$16 sps:$4 sm:$0xff]   ;;  %v6080_v60 = vld [vmem:[#allocation5 + $0x144] ss:$16 sps:$4 sm:$0xff]  }
0x1c27   :  { %v6081_v23 = vld [vmem:[#allocation5 + $0x148] ss:$16 sps:$4 sm:$0xff]  }
0x1c28   :  { %5897 = vrot.lane.b32.xlu0 %v5896_v58, %s6537_s26  ;;  %v6083_v58 = vld [vmem:[#allocation5 + $0x14c] ss:$16 sps:$4 sm:$0xff]  }
0x1c2f   :  { %v3752_v26 = vpop.f32.mrb[84].mxu1 }
0x1c30   :  { %v5808_v28 = vpop.f32.mrb[85].mxu1 }
0x1c31   :  { %v3755_v22 = vpop.f32.mrb[86].mxu1 }
0x1c32   :  { %v5901_v34 = vpack.i.bf16 %v3755_v22, %v3752_v26  ;;  %v5809_v14 = vpop.f32.mrb[87].mxu1 }
0x1c34   :  { %5902 = vrot.lane.b32.xlu1 %v5901_v34, %s6537_s26 }
0x1c9a   :  { %v5898_v56 = vpop.permute.xlu0 %5897 }
0x1c9b   :  { %v5900_v4 = vunpack.i.h.bf16 %v5898_v56  ;;  %v5899_v9 = vunpack.i.l.bf16 %v5898_v56 }
0x1c9d   :  { %v3815_v17 = vsel %vm1460_vm4, %v3811_v3, %v5899_v9  ;;  %v3816_v7 = vsel %vm1460_vm4, %v3812_v6, %v5900_v4  ;;  %v6084_v4 = vld [vmem:[#allocation5 + $0x160] ss:$16 sps:$4 sm:$0xff]   ;;  %v6086_v9 = vld [vmem:[#allocation5 + $0x164] ss:$16 sps:$4 sm:$0xff]   ;;  %v6087_v3 = vld [vmem:[#allocation5 + $0x168] ss:$16 sps:$4 sm:$0xff]  }
0x1c9e   :  { %v3819_v50 = vpack.c.bf16 %v3816_v7, %v3815_v17  ;;  %v6089_v6 = vld [vmem:[#allocation5 + $0x16c] ss:$16 sps:$4 sm:$0xff]   ;;  %v6092_v17 = vld [vmem:[#allocation5 + $0x184] ss:$16 sps:$4 sm:$0xff]   ;;  %v6090_v7 = vld [vmem:[#allocation5 + $0x180] ss:$16 sps:$4 sm:$0xff]  }
0x1ca0   :  { %5826 = vmatprep.mubr.bf16.mxu0 %v3819_v50  ;;  %v6095_v50 = vld [vmem:[#allocation5 + $0x18c] ss:$16 sps:$4 sm:$0xff]  }
0x1ca6   :  { %v5903_v44 = vpop.permute.xlu1 %5902 }
0x1ca7   :  { %v5905_v15 = vunpack.i.h.bf16 %v5903_v44  ;;  %v5904_v62 = vunpack.i.l.bf16 %v5903_v44  ;;  %v6104_v44 = vld [vmem:[#allocation5 + $0x1c4] ss:$16 sps:$4 sm:$0xff]  }
0x1ca9   :  { %v3817_v35 = vsel %vm1460_vm4, %v3813_v46, %v5904_v62  ;;  %v3818_v37 = vsel %vm1460_vm4, %v3814_v63, %v5905_v15  ;;  %v6105_v15 = vld [vmem:[#allocation5 + $0x1c8] ss:$16 sps:$4 sm:$0xff]   ;;  %v6110_v62 = vld [vmem:[#allocation5 + $0x1e4] ss:$16 sps:$4 sm:$0xff]   ;;  %v6113_v46 = vld [vmem:[#allocation5 + $0x1ec] ss:$16 sps:$4 sm:$0xff]  }
0x1caa   :  { %v3820_v40 = vpack.c.bf16 %v3818_v37, %v3817_v35  ;;  %v6108_v63 = vld [vmem:[#allocation5 + $0x1e0] ss:$16 sps:$4 sm:$0xff]   ;;  %v6111_v35 = vld [vmem:[#allocation5 + $0x1e8] ss:$16 sps:$4 sm:$0xff]  }
0x1cac   :  { %5827 = vmatmul.mubr.bf16.vlgmr.msra.gmra.mrb[100].mxu0 %v3820_v40 }
0x1cad   :  { %4283 = vmatprep.mubr.bf16.mxu0 %v6534_v42 }
0x1d7f   :  { %v5828_v57 = vpop.f32.mrb[100].mxu0 }
0x1d80   :  { %v3928_v32 = vpop.f32.mrb[101].mxu0  ;;  %v3937_v2 = vadd.f32 %v5828_v57, %v5249_v33 }
0x1d81   :  { %v3929_v49 = vadd.f32 %v5249_v33, %v3928_v32  ;;  %v5829_v51 = vpop.f32.mrb[102].mxu0 }
0x1d82   :  { %v3931_v52 = vpop.f32.mrb[103].mxu0  ;;  %v7475_v21 = vadd.f32 %v3937_v2, %v7149_v48  ;;  %v3940_v61 = vadd.f32 %v5829_v51, %v5249_v33  ;;  %v6072_v48 = vld [vmem:[#allocation5 + $0x120] ss:$16 sps:$4 sm:$0xff]  }
0x1d83   :  { %v7468_v39 = vadd.f32 %v3929_v49, %v7141_v30  ;;  %v3932_v54 = vadd.f32 %v5249_v33, %v3931_v52  ;;  %v6066_v30 = vld [vmem:[#allocation5 + $0x100] ss:$16 sps:$4 sm:$0xff]  }
0x1d84   :  { %v7480_v41 = vadd.f32 %v3940_v61, %v7153_v1  ;;  %4199 = vmatpush1.bf16.msra.mxu1 %v6066_v30  ;;  %v6078_v1 = vld [vmem:[#allocation5 + $0x140] ss:$16 sps:$4 sm:$0xff]  }
0x1d85   :  { %v7471_v31 = vadd.f32 %v3932_v54, %v7145_v0  ;;  %3949 = vadd.xlane.f32.xlu0 %v7468_v39  ;;  %v6071_v0 = vld [vmem:[#allocation5 + $0x10c] ss:$16 sps:$4 sm:$0xff]   ;;  %4200 = vmatprep.subr.bf16.mxu1 %v6074_v20  ;;  %v5259_v20 = vld [vmem:[%s7648_s5 + $0x1] ss:$0 sm:$0xff] }
0x1d86   :  { %4251 = vmatprep.subr.bf16.mxu0 %v6071_v0 }
0x1d87   :  { %3951 = vadd.xlane.f32.xlu1 %v7471_v31  ;;  %4252 = vmatpush1.bf16.msra.mxu0 %v6069_v16 }
0x1d88   :  { %4253 = vmatprep.subr.bf16.mxu0 %v6077_v25  ;;  %4201 = vmatpush1.bf16.msra.mxu1 %v6072_v48 }
0x1d89   :  { %3953 = vadd.xlane.f32.xlu0 %v7475_v21  ;;  %4202 = vmatprep.subr.bf16.mxu1 %v6080_v60 }
0x1d8b   :  { %4254 = vmatpush1.bf16.msra.mxu0 %v6075_v8 }
0x1d8c   :  { %4255 = vmatprep.subr.bf16.mxu0 %v6083_v58  ;;  %4203 = vmatpush1.bf16.msra.mxu1 %v6078_v1 }
0x1d8d   :  { %3955 = vadd.xlane.f32.xlu0 %v7480_v41  ;;  %4204 = vmatprep.subr.bf16.mxu1 %v6086_v9  ;;  %v6127_v9 = vld [vmem:[#allocation7 + $0x1d8] sm:$0xff]  }
0x1d8f   :  { %4256 = vmatpush1.bf16.msra.mxu0 %v6081_v23 }
0x1d90   :  { %4257 = vmatprep.subr.bf16.mxu0 %v6089_v6  ;;  %4205 = vmatpush1.bf16.msra.mxu1 %v6084_v4  ;;  %v6126_v4 = vld [vmem:[#allocation7 + $0x158] sm:$0xff]  }
0x1d91   :  { %4206 = vmatprep.subr.bf16.mxu1 %v6092_v17  ;;  %v6129_v6 = vld [vmem:[#allocation7 + $0x198] sm:$0xff]   ;;  %v6130_v17 = vld [vmem:[#allocation7 + $0x160] sm:$0xff]  }
0x1d93   :  { %4258 = vmatpush1.bf16.msra.mxu0 %v6087_v3  ;;  %v6128_v3 = vld [vmem:[#allocation7 + $0x118] sm:$0xff]  }
0x1d94   :  { %4259 = vmatprep.subr.bf16.mxu0 %v6095_v50  ;;  %4207 = vmatpush1.bf16.msra.mxu1 %v6090_v7  ;;  %v6131_v7 = vld [vmem:[#allocation7 + $0x1e0] sm:$0xff]  }
0x1d95   :  { %4208 = vmatprep.subr.bf16.mxu1 %v6098_v55  ;;  %v6132_v50 = vld [vmem:[#allocation7 + $0x120] sm:$0xff]   ;;  %v6134_v55 = vld [vmem:[#allocation7 + $0x168] sm:$0xff]  }
0x1d97   :  { %4260 = vmatpush1.bf16.msra.mxu0 %v6093_v18  ;;  %v6133_v18 = vld [vmem:[#allocation7 + $0x1a0] sm:$0xff]  }
0x1d98   :  { %4261 = vmatprep.subr.bf16.mxu0 %v6101_v11  ;;  %4209 = vmatpush1.bf16.msra.mxu1 %v6096_v13  ;;  %v6135_v13 = vld [vmem:[#allocation7 + $0x1e8] sm:$0xff]  }
0x1d99   :  { %4210 = vmatprep.subr.bf16.mxu1 %v6104_v44  ;;  %v6136_v11 = vld [vmem:[#allocation7 + $0x128] sm:$0xff]   ;;  %v6138_v44 = vld [vmem:[#allocation7 + $0x170] sm:$0xff]  }
0x1d9b   :  { %4262 = vmatpush1.bf16.msra.mxu0 %v6099_v19  ;;  %v6137_v19 = vld [vmem:[#allocation7 + $0x1a8] sm:$0xff]  }
0x1d9c   :  { %4263 = vmatprep.subr.bf16.mxu0 %v6107_v53  ;;  %4211 = vmatpush1.bf16.msra.mxu1 %v6102_v43  ;;  %v6139_v53 = vld [vmem:[#allocation7 + $0x1f0] sm:$0xff]  }
0x1d9d   :  { %4212 = vmatprep.subr.bf16.mxu1 %v6110_v62  ;;  %v6140_v43 = vld [vmem:[#allocation7 + $0x130] sm:$0xff]   ;;  %v6142_v62 = vld [vmem:[#allocation7 + $0x178] sm:$0xff]  }
0x1d9f   :  { %4264 = vmatpush1.bf16.msra.mxu0 %v6105_v15  ;;  %v6141_v15 = vld [vmem:[#allocation7 + $0x1b0] sm:$0xff]  }
0x1da0   :  { %4265 = vmatprep.subr.bf16.mxu0 %v6113_v46  ;;  %4213 = vmatpush1.bf16.msra.mxu1 %v6108_v63  ;;  %v6143_v46 = vld [vmem:[#allocation7 + $0x1f8] sm:$0xff]  }
0x1da1   :  { %v6144_v63 = vld [vmem:[#allocation7 + $0x138] sm:$0xff]  }
0x1da3   :  { %4266 = vmatpush1.bf16.msra.mxu0 %v6111_v35  ;;  %v6145_v35 = vld [vmem:[#allocation7 + $0x1b8] sm:$0xff]  }
0x1e12   :  { %v3950_v24 = vpop.xlane.xlu0 %3949 }
0x1e13   :  { %v3957_v26 = vmul.f32 0.0078125, %v3950_v24 }
0x1e14   :  { %v3952_v28 = vpop.xlane.xlu1 %3951 }
0x1e15   :  { %v7484_v22 = vsub.f32 %v7468_v39, %v3957_v26  ;;  %v3958_v34 = vmul.f32 0.0078125, %v3952_v28 }
0x1e16   :  { %v3954_v14 = vpop.xlane.xlu0 %3953 }
0x1e17   :  { %v7487_v38 = vsub.f32 %v7471_v31, %v3958_v34  ;;  %v3959_v5 = vmul.f32 0.0078125, %v3954_v14  ;;  %v3965_v47 = vmul.f32 %v7484_v22, %v7484_v22  ;;  %v6114_v34 = vld [vmem:[#allocation7 + $0x140] sm:$0xff]  }
0x1e18   :  { %v6115_v14 = vld [vmem:[#allocation7 + $0x1c0] sm:$0xff]   ;;  %5502 = vmatprep.subr.bf16.mxu1 %v6114_v34 }
0x1e19   :  { %v7492_v36 = vsub.f32 %v7475_v21, %v3959_v5  ;;  %3969 = vadd.xlane.f32.xlu0 %v3965_v47  ;;  %v3966_v59 = vmul.f32 %v7487_v38, %v7487_v38  ;;  %v6117_v5 = vld [vmem:[#allocation7 + $0x180] sm:$0xff]   ;;  %5530 = vmatprep.subr.bf16.mxu0 %v6115_v14  ;;  %v6118_v47 = vld [vmem:[#allocation7 + $0x148] sm:$0xff]  }
0x1e1a   :  { %v3956_v45 = vpop.xlane.xlu0 %3955 }
0x1e1b   :  { %v3960_v12 = vmul.f32 0.0078125, %v3956_v45  ;;  %3971 = vadd.xlane.f32.xlu1 %v3966_v59  ;;  %v3967_v29 = vmul.f32 %v7492_v36, %v7492_v36  ;;  %v6120_v59 = vld [vmem:[#allocation7 + $0x108] sm:$0xff]  }
0x1e1c   :  { %v6121_v45 = vld [vmem:[#allocation7 + $0x188] sm:$0xff]  }
0x1e1d   :  { %v7499_v56 = vsub.f32 %v7480_v41, %v3960_v12  ;;  %3973 = vadd.xlane.f32.xlu0 %v3967_v29  ;;  %v6122_v12 = vld [vmem:[#allocation7 + $0x150] sm:$0xff]  }
0x1e1e   :  { %v6123_v29 = vld [vmem:[#allocation7 + $0x1d0] sm:$0xff]  }
0x1e1f   :  { %v3968_v27 = vmul.f32 %v7499_v56, %v7499_v56 }
0x1e21   :  { %3975 = vadd.xlane.f32.xlu1 %v3968_v27  ;;  %v6125_v27 = vld [vmem:[#allocation7 + $0x190] sm:$0xff]  }
0x1ea6   :  { %v3970_v37 = vpop.xlane.xlu0 %3969 }
0x1ea7   :  { %v3977_v40 = vmul.f32 0.0078125, %v3970_v37 }
0x1ea8   :  { %v3972_v33 = vpop.xlane.xlu1 %3971 }
0x1ea9   :  { %v3981_v57 = vadd.f32 1e-05, %v3977_v40  ;;  %v3978_v32 = vmul.f32 0.0078125, %v3972_v33 }
0x1eaa   :  { %v3974_v49 = vpop.xlane.xlu0 %3973 }
0x1eab   :  { %6354 = vrsqrt.f32 %v3981_v57  ;;  %v3982_v51 = vadd.f32 1e-05, %v3978_v32  ;;  %v3979_v52 = vmul.f32 0.0078125, %v3974_v49 }
0x1ead   :  { %6356 = vrsqrt.f32 %v3982_v51  ;;  %v3983_v2 = vadd.f32 1e-05, %v3979_v52 }
0x1eae   :  { %v3976_v54 = vpop.xlane.xlu1 %3975 }
0x1eaf   :  { %v3980_v61 = vmul.f32 0.0078125, %v3976_v54  ;;  %6358 = vrsqrt.f32 %v3983_v2 }
0x1eb1   :  { %v3984_v30 = vadd.f32 1e-05, %v3980_v61 }
0x1eb3   :  { %6360 = vrsqrt.f32 %v3984_v30 }
0x1eb5   :  { %v6355_v10 = vpop.eup %6354 }
0x1eb6   :  { %v3989_v16 = vmul.f32 %v6355_v10, %v7484_v22 }
0x1eb7   :  { %v6357_v0 = vpop.eup %6356 }
0x1eb8   :  { %v3990_v25 = vmul.f32 %v6357_v0, %v7487_v38  ;;  %v3999_v48 = vmul.f32 %v5259_v20, %v3989_v16  ;;  %v6116_v38 = vld [vmem:[#allocation7 + $0x100] sm:$0xff]  }
0x1eb9   :  { %v6359_v60 = vpop.eup %6358 }
0x1eba   :  { %v4000_v8 = vmul.f32 %v5259_v20, %v3990_v25  ;;  %v3991_v23 = vmul.f32 %v6359_v60, %v7492_v36  ;;  %v6119_v36 = vld [vmem:[#allocation7 + $0x1c8] sm:$0xff]  }
0x1ebc   :  { %v4003_v58 = vpack.c.bf16 %v4000_v8, %v3999_v48  ;;  %v4001_v28 = vmul.f32 %v5259_v20, %v3991_v23 }
0x1ebd   :  { %v6361_v1 = vpop.eup %6360 }
0x1ebe   :  { %4231 = vmatmul.mubr.bf16.vlgmr.msra.gmra.mrb[88].mxu1 %v4003_v58  ;;  %4284 = vmatmul.mubr.bf16.vlgmr.msra.gmra.mrb[104].mxu0 %v4003_v58  ;;  %v3992_v24 = vmul.f32 %v6361_v1, %v7499_v56  ;;  %v6124_v56 = vld [vmem:[#allocation7 + $0x110] sm:$0xff]  }
0x1ebf   :  { %4240 = vmatprep.mubr.bf16.mxu1 %v6534_v42  ;;  %4293 = vmatprep.mubr.bf16.mxu0 %v6534_v42 }
0x1ec0   :  { %v4002_v26 = vmul.f32 %v5259_v20, %v3992_v24  ;;  %5503 = vmatpush3.bf16.msra.mxu1 %v6116_v38  ;;  %5531 = vmatpush3.bf16.msra.mxu0 %v6117_v5 }
0x1ec1   :  { %5504 = vmatprep.subr.bf16.mxu1 %v6118_v47  ;;  %5532 = vmatprep.subr.bf16.mxu0 %v6119_v36 }
0x1ec2   :  { %v4004_v22 = vpack.c.bf16 %v4002_v26, %v4001_v28 }
0x1ec4   :  { %5505 = vmatpush3.bf16.msra.mxu1 %v6120_v59  ;;  %5533 = vmatpush3.bf16.msra.mxu0 %v6121_v45 }
0x1ec5   :  { %5506 = vmatprep.subr.bf16.mxu1 %v6122_v12  ;;  %5534 = vmatprep.subr.bf16.mxu0 %v6123_v29 }
0x1ec6   :  { %4241 = vmatmul.mubr.bf16.gmra.mrb[92].mxu1 %v4004_v22  ;;  %4294 = vmatmul.mubr.bf16.gmra.mrb[108].mxu0 %v4004_v22 }
0x1ec8   :  { %5507 = vmatpush3.bf16.msra.mxu1 %v6124_v56  ;;  %5535 = vmatpush3.bf16.msra.mxu0 %v6125_v27 }
0x1ec9   :  { %5508 = vmatprep.subr.bf16.mxu1 %v6126_v4  ;;  %5536 = vmatprep.subr.bf16.mxu0 %v6127_v9 }
0x1ecc   :  { %5509 = vmatpush3.bf16.msra.mxu1 %v6128_v3  ;;  %5537 = vmatpush3.bf16.msra.mxu0 %v6129_v6 }
0x1ecd   :  { %5510 = vmatprep.subr.bf16.mxu1 %v6130_v17  ;;  %5538 = vmatprep.subr.bf16.mxu0 %v6131_v7 }
0x1ed0   :  { %5511 = vmatpush3.bf16.msra.mxu1 %v6132_v50  ;;  %5539 = vmatpush3.bf16.msra.mxu0 %v6133_v18 }
0x1ed1   :  { %5512 = vmatprep.subr.bf16.mxu1 %v6134_v55  ;;  %5540 = vmatprep.subr.bf16.mxu0 %v6135_v13 }
0x1ed4   :  { %5513 = vmatpush3.bf16.msra.mxu1 %v6136_v11  ;;  %5541 = vmatpush3.bf16.msra.mxu0 %v6137_v19 }
0x1ed5   :  { %5514 = vmatprep.subr.bf16.mxu1 %v6138_v44  ;;  %5542 = vmatprep.subr.bf16.mxu0 %v6139_v53 }
0x1ed8   :  { %5515 = vmatpush3.bf16.msra.mxu1 %v6140_v43  ;;  %5543 = vmatpush3.bf16.msra.mxu0 %v6141_v15 }
0x1ed9   :  { %5516 = vmatprep.subr.bf16.mxu1 %v6142_v62  ;;  %5544 = vmatprep.subr.bf16.mxu0 %v6143_v46 }
0x1edc   :  { %5517 = vmatpush3.bf16.msra.mxu1 %v6144_v63  ;;  %5545 = vmatpush3.bf16.msra.mxu0 %v6145_v35 }
0x1f91   :  { %v4232_v37 = vpop.f32.mrb[88].mxu1  ;;  %v4285_v40 = vpop.f32.mrb[104].mxu0 }
0x1f92   :  { %v4320_v33 = vmul.f32 %v4232_v37, %v4232_v37  ;;  %v4322_v57 = vmul.f32 %v4285_v40, %v4285_v40  ;;  %v7512_v32 = vpop.f32.mrb[89].mxu1  ;;  %v7514_v49 = vpop.f32.mrb[105].mxu0  ;;  %v4304_v43 = vmul.f32 0.5, %v4232_v37  ;;  %v4306_v46 = vmul.f32 0.5, %v4285_v40 }
0x1f93   :  { %v4321_v51 = vmul.f32 %v7512_v32, %v7512_v32  ;;  %v4323_v52 = vmul.f32 %v7514_v49, %v7514_v49  ;;  %v7520_v2 = vpop.f32.mrb[90].mxu1  ;;  %v7522_v54 = vpop.f32.mrb[106].mxu0 }
0x1f94   :  { %v4336_v61 = vmul.f32 %v4320_v33, %v4232_v37  ;;  %v4338_v30 = vmul.f32 %v4322_v57, %v4285_v40  ;;  %v4324_v10 = vmul.f32 %v7520_v2, %v7520_v2  ;;  %v7526_v16 = vpop.f32.mrb[91].mxu1  ;;  %v7528_v0 = vpop.f32.mrb[107].mxu0  ;;  %v4326_v48 = vmul.f32 %v7522_v54, %v7522_v54 }
0x1f95   :  { %v4337_v20 = vmul.f32 %v4321_v51, %v7512_v32  ;;  %v4339_v25 = vmul.f32 %v4323_v52, %v7514_v49  ;;  %v4325_v26 = vmul.f32 %v7526_v16, %v7526_v16  ;;  %v4327_v56 = vmul.f32 %v7528_v0, %v7528_v0 }
0x1f96   :  { %v4352_v8 = vmul.f32 0.044715, %v4336_v61  ;;  %v4354_v60 = vmul.f32 0.044715, %v4338_v30  ;;  %v4340_v58 = vmul.f32 %v4324_v10, %v7520_v2  ;;  %v4342_v24 = vmul.f32 %v4326_v48, %v7522_v54 }
0x1f97   :  { %v4353_v1 = vmul.f32 0.044715, %v4337_v20  ;;  %v4355_v23 = vmul.f32 0.044715, %v4339_v25  ;;  %v4341_v47 = vmul.f32 %v4325_v26, %v7526_v16  ;;  %v4343_v50 = vmul.f32 %v4327_v56, %v7528_v0 }
0x1f98   :  { %v4368_v28 = vadd.f32 %v4352_v8, %v4232_v37  ;;  %v4370_v22 = vadd.f32 %v4354_v60, %v4285_v40  ;;  %v4356_v34 = vmul.f32 0.044715, %v4340_v58  ;;  %v4358_v5 = vmul.f32 0.044715, %v4342_v24 }
0x1f99   :  { %v4369_v14 = vadd.f32 %v4353_v1, %v7512_v32  ;;  %v4371_v38 = vadd.f32 %v4355_v23, %v7514_v49  ;;  %v7541_v36 = vpop.f32.mrb[92].mxu1  ;;  %v7543_v59 = vpop.f32.mrb[108].mxu0  ;;  %v4357_v17 = vmul.f32 0.044715, %v4341_v47  ;;  %v4359_v15 = vmul.f32 0.044715, %v4343_v50 }
0x1f9a   :  { %v4384_v45 = vmul.f32 0.7978846, %v4368_v28  ;;  %v4386_v12 = vmul.f32 0.7978846, %v4370_v22  ;;  %v4372_v29 = vadd.f32 %v4356_v34, %v7520_v2  ;;  %v7548_v27 = vpop.f32.mrb[93].mxu1  ;;  %v7550_v4 = vpop.f32.mrb[109].mxu0  ;;  %v4374_v6 = vadd.f32 %v4358_v5, %v7522_v54 }
0x1f9b   :  { %v4385_v9 = vmul.f32 0.7978846, %v4369_v14  ;;  %v4387_v3 = vmul.f32 0.7978846, %v4371_v38  ;;  %v7554_v18 = vpop.f32.mrb[94].mxu1  ;;  %v7556_v55 = vpop.f32.mrb[110].mxu0  ;;  %v4373_v11 = vadd.f32 %v4357_v17, %v7526_v16  ;;  %v4328_v19 = vmul.f32 %v7541_v36, %v7541_v36 }
0x1f9c   :  { %6362 = vtanh.f32 %v4384_v45  ;;  %v4388_v7 = vmul.f32 0.7978846, %v4372_v29  ;;  %v4390_v13 = vmul.f32 0.7978846, %v4374_v6  ;;  %v7561_v44 = vpop.f32.mrb[95].mxu1  ;;  %v7563_v53 = vpop.f32.mrb[111].mxu0  ;;  %v4330_v62 = vmul.f32 %v7543_v59, %v7543_v59 }
0x1f9d   :  { %6364 = vtanh.f32 %v4386_v12  ;;  %v4389_v63 = vmul.f32 0.7978846, %v4373_v11  ;;  %v4344_v35 = vmul.f32 %v4328_v19, %v7541_v36  ;;  %v4375_v33 = vadd.f32 %v4359_v15, %v7528_v0 }
0x1f9e   :  { %6366 = vtanh.f32 %v4385_v9  ;;  %v4346_v57 = vmul.f32 %v4330_v62, %v7543_v59  ;;  %v4329_v51 = vmul.f32 %v7548_v27, %v7548_v27  ;;  %v7573_v37 = vmul.f32 0.5, %v7512_v32 }
0x1f9f   :  { %6368 = vtanh.f32 %v4387_v3  ;;  %v4360_v52 = vmul.f32 0.044715, %v4344_v35  ;;  %v4331_v40 = vmul.f32 %v7550_v4, %v7550_v4  ;;  %v4391_v61 = vmul.f32 0.7978846, %v4375_v33 }
0x1fa0   :  { %6370 = vtanh.f32 %v4388_v7  ;;  %v4362_v30 = vmul.f32 0.044715, %v4346_v57  ;;  %v4345_v10 = vmul.f32 %v4329_v51, %v7548_v27  ;;  %v7579_v20 = vmul.f32 0.5, %v7514_v49 }
0x1fa1   :  { %6372 = vtanh.f32 %v4390_v13  ;;  %v4376_v25 = vadd.f32 %v4360_v52, %v7541_v36  ;;  %v4347_v48 = vmul.f32 %v4331_v40, %v7550_v4  ;;  %v4332_v32 = vmul.f32 %v7554_v18, %v7554_v18 }
0x1fa2   :  { %6374 = vtanh.f32 %v4389_v63  ;;  %v4308_v8 = vmul.f32 0.5, %v7520_v2  ;;  %v4378_v60 = vadd.f32 %v4362_v30, %v7543_v59  ;;  %v4361_v58 = vmul.f32 0.044715, %v4345_v10 }
0x1fa3   :  { %6376 = vtanh.f32 %v4391_v61  ;;  %v4392_v1 = vmul.f32 0.7978846, %v4376_v25  ;;  %v4363_v23 = vmul.f32 0.044715, %v4347_v48  ;;  %v4348_v24 = vmul.f32 %v4332_v32, %v7554_v18 }
0x1fa4   :  { %v4334_v49 = vmul.f32 %v7556_v55, %v7556_v55  ;;  %v4310_v28 = vmul.f32 0.5, %v7522_v54  ;;  %v4394_v22 = vmul.f32 0.7978846, %v4378_v60  ;;  %v4377_v34 = vadd.f32 %v4361_v58, %v7548_v27 }
0x1fa5   :  { %v4333_v2 = vmul.f32 %v7561_v44, %v7561_v44  ;;  %v4309_v5 = vmul.f32 0.5, %v7526_v16  ;;  %v4379_v47 = vadd.f32 %v4363_v23, %v7550_v4  ;;  %v4364_v45 = vmul.f32 0.044715, %v4348_v24 }
0x1fa6   :  { %v6363_v26 = vpop.eup %6362  ;;  %6378 = vtanh.f32 %v4392_v1  ;;  %v4393_v56 = vmul.f32 0.7978846, %v4377_v34  ;;  %v4350_v9 = vmul.f32 %v4334_v49, %v7556_v55  ;;  %v4311_v3 = vmul.f32 0.5, %v7528_v0 }
0x1fa7   :  { %v6365_v14 = vpop.eup %6364  ;;  %v4416_v38 = vadd.f32 1.0, %v6363_v26  ;;  %6380 = vtanh.f32 %v4394_v22  ;;  %v4380_v6 = vadd.f32 %v4364_v45, %v7554_v18  ;;  %v4349_v17 = vmul.f32 %v4333_v2, %v7561_v44 }
0x1fa8   :  { %v6367_v12 = vpop.eup %6366  ;;  %v4418_v29 = vadd.f32 1.0, %v6365_v14  ;;  %v4395_v13 = vmul.f32 0.7978846, %v4379_v47  ;;  %v4366_v11 = vmul.f32 0.044715, %v4350_v9  ;;  %6382 = vtanh.f32 %v4393_v56 }
0x1fa9   :  { %v6369_v54 = vpop.eup %6368  ;;  %v4432_v50 = vmul.f32 %v4416_v38, %v4304_v43  ;;  %v4396_v62 = vmul.f32 0.7978846, %v4380_v6  ;;  %v4365_v63 = vmul.f32 0.044715, %v4349_v17  ;;  %v4335_v0 = vmul.f32 %v7563_v53, %v7563_v53 }
0x1faa   :  { %v6371_v7 = vpop.eup %6370  ;;  %v4434_v16 = vmul.f32 %v4418_v29, %v4306_v46  ;;  %v4382_v57 = vadd.f32 %v4366_v11, %v7556_v55  ;;  %v4417_v51 = vadd.f32 1.0, %v6367_v12  ;;  %v4419_v58 = vadd.f32 1.0, %v6369_v54 }
0x1fab   :  { %v6373_v19 = vpop.eup %6372  ;;  %v4420_v15 = vadd.f32 1.0, %v6371_v7  ;;  %6384 = vtanh.f32 %v4396_v62  ;;  %v4381_v43 = vadd.f32 %v4365_v63, %v7561_v44  ;;  %v4351_v10 = vmul.f32 %v4335_v0, %v7563_v53 }
0x1fac   :  { %v6375_v35 = vpop.eup %6374  ;;  %v4422_v33 = vadd.f32 1.0, %v6373_v19  ;;  %v4398_v30 = vmul.f32 0.7978846, %v4382_v57  ;;  %v4433_v25 = vmul.f32 %v4417_v51, %v7573_v37  ;;  %v4312_v47 = vmul.f32 0.5, %v7541_v36 }
0x1fad   :  { %v4436_v52 = vmul.f32 %v4420_v15, %v4308_v8  ;;  %v4421_v46 = vadd.f32 1.0, %v6375_v35  ;;  %v6377_v40 = vpop.eup %6376  ;;  %v4397_v32 = vmul.f32 0.7978846, %v4381_v43  ;;  %v4367_v23 = vmul.f32 0.044715, %v4351_v10 }
0x1fae   :  { %v4438_v61 = vmul.f32 %v4422_v33, %v4310_v28  ;;  %6386 = vtanh.f32 %v4398_v30  ;;  %v4423_v24 = vadd.f32 1.0, %v6377_v40  ;;  %v4435_v28 = vmul.f32 %v4419_v58, %v7579_v20 }
0x1faf   :  { %v4448_v48 = vpack.c.bf16 %v4436_v52, %v4432_v50  ;;  %v4437_v60 = vmul.f32 %v4421_v46, %v4309_v5  ;;  %6388 = vtanh.f32 %v4397_v32  ;;  %v4383_v26 = vadd.f32 %v4367_v23, %v7563_v53 }
0x1fb0   :  { %v4450_v1 = vpack.c.bf16 %v4438_v61, %v4434_v16  ;;  %v6379_v49 = vpop.eup %6378  ;;  %6390 = vtanh.f32 %v4395_v13  ;;  %v4439_v22 = vmul.f32 %v4423_v24, %v4311_v3  ;;  %v4316_v45 = vmul.f32 0.5, %v7554_v18 }
0x1fb1   :  { %v4449_v8 = vpack.c.bf16 %v4437_v60, %v4433_v25  ;;  %v6381_v34 = vpop.eup %6380  ;;  %v4399_v37 = vmul.f32 0.7978846, %v4383_v26  ;;  %v4424_v38 = vadd.f32 1.0, %v6379_v49  ;;  %v4314_v6 = vmul.f32 0.5, %v7543_v59 }
0x1fb2   :  { %v4451_v2 = vpack.c.bf16 %v4439_v22, %v4435_v28  ;;  %v6383_v14 = vpop.eup %6382  ;;  %v4426_v29 = vadd.f32 1.0, %v6381_v34  ;;  %v4318_v17 = vmul.f32 0.5, %v7556_v55  ;;  %v4313_v16 = vmul.f32 0.5, %v7548_v27 }
0x1fb3   :  { %4745 = vmatprep.mubr.bf16.mxu1 %v4449_v8  ;;  %6392 = vtanh.f32 %v4399_v37  ;;  %v4425_v20 = vadd.f32 1.0, %v6383_v14  ;;  %v4440_v9 = vmul.f32 %v4424_v38, %v4312_v47  ;;  %v4317_v13 = vmul.f32 0.5, %v7561_v44 }
0x1fb4   :  { %4746 = vmatmul.mubr.bf16.vlgmr.msra.gmra.mrb[96].mxu1 %v4448_v48  ;;  %4794 = vmatprep.mubr.bf16.mxu0 %v4451_v2  ;;  %v4442_v18 = vmul.f32 %v4426_v29, %v4314_v6  ;;  %v4315_v59 = vmul.f32 0.5, %v7550_v4  ;;  %v4319_v55 = vmul.f32 0.5, %v7563_v53  ;;  %v6148_v29 = vld [vmem:[#allocation8 + $0x4] ss:$8 sps:$4 sm:$0xff]  }
0x1fb5   :  { %v6385_v5 = vpop.eup %6384  ;;  %4795 = vmatmul.mubr.bf16.vlgmr.msra.gmra.mrb[112].mxu0 %v4450_v1  ;;  %v4441_v15 = vmul.f32 %v4425_v20, %v4313_v16  ;;  %4979 = vmatprep.subr.bf16.mxu1 %v6148_v29  ;;  %v6149_v20 = vld [vmem:[#allocation8 + $0x10] ss:$8 sps:$4 sm:$0xff]  }
0x1fb6   :  { %v4428_v12 = vadd.f32 1.0, %v6385_v5 }
0x1fb8   :  { %v6387_v56 = vpop.eup %6386  ;;  %v4444_v54 = vmul.f32 %v4428_v12, %v4316_v45  ;;  %v6146_v12 = vld [vmem:[#allocation8] ss:$8 sps:$4 sm:$0xff]  }
0x1fb9   :  { %v6389_v3 = vpop.eup %6388  ;;  %v4430_v7 = vadd.f32 1.0, %v6387_v56  ;;  %v6151_v56 = vld [vmem:[#allocation8 + $0x14] ss:$8 sps:$4 sm:$0xff]   ;;  %4980 = vmatpush1.bf16.msra.mxu1 %v6146_v12 }
0x1fba   :  { %v6391_v50 = vpop.eup %6390  ;;  %v4429_v36 = vadd.f32 1.0, %v6389_v3  ;;  %v4452_v11 = vpack.c.bf16 %v4444_v54, %v4440_v9  ;;  %4981 = vmatprep.subr.bf16.mxu1 %v6151_v56 }
0x1fbb   :  { %v4446_v19 = vmul.f32 %v4430_v7, %v4318_v17  ;;  %v4427_v63 = vadd.f32 1.0, %v6391_v50 }
0x1fbc   :  { %v4445_v62 = vmul.f32 %v4429_v36, %v4317_v13 }
0x1fbd   :  { %v4454_v35 = vpack.c.bf16 %v4446_v19, %v4442_v18  ;;  %v6393_v33 = vpop.eup %6392  ;;  %v4443_v51 = vmul.f32 %v4427_v63, %v4315_v59  ;;  %4982 = vmatpush1.bf16.msra.mxu1 %v6149_v20  ;;  %v6152_v63 = vld [vmem:[#allocation8 + $0x20] ss:$8 sps:$4 sm:$0xff]  }
0x1fbe   :  { %v4453_v57 = vpack.c.bf16 %v4445_v62, %v4441_v15  ;;  %v4431_v0 = vadd.f32 1.0, %v6393_v33  ;;  %v6154_v62 = vld [vmem:[#allocation8 + $0x24] ss:$8 sps:$4 sm:$0xff]   ;;  %v6155_v33 = vld [vmem:[#allocation8 + $0x30] ss:$8 sps:$4 sm:$0xff]  }
0x1fbf   :  { %4983 = vmatprep.subr.bf16.mxu1 %v6154_v62  ;;  %v6158_v59 = vld [vmem:[#allocation8 + $0x40] ss:$8 sps:$4 sm:$0xff]  }
0x1fc0   :  { %4753 = vmatprep.mubr.bf16.mxu1 %v4453_v57  ;;  %v4447_v27 = vmul.f32 %v4431_v0, %v4319_v55  ;;  %v6160_v57 = vld [vmem:[#allocation8 + $0x44] ss:$8 sps:$4 sm:$0xff]   ;;  %v6163_v55 = vld [vmem:[#allocation8 + $0x54] ss:$8 sps:$4 sm:$0xff]   ;;  %v6161_v0 = vld [vmem:[#allocation8 + $0x50] ss:$8 sps:$4 sm:$0xff]  }
0x1fc1   :  { %4754 = vmatmul.mubr.bf16.gmra.mrb[100].mxu1 %v4452_v11 }
0x1fc2   :  { %5011 = vmatprep.mubr.bf16.mxu1 %v6534_v42  ;;  %v4455_v44 = vpack.c.bf16 %v4447_v27, %v4443_v51  ;;  %4984 = vmatpush1.bf16.msra.mxu1 %v6152_v63  ;;  %v6164_v51 = vld [vmem:[#allocation8 + $0x60] ss:$8 sps:$4 sm:$0xff]   ;;  %v6166_v27 = vld [vmem:[#allocation8 + $0x64] ss:$8 sps:$4 sm:$0xff]  }
0x1fc4   :  { %4802 = vmatprep.mubr.bf16.mxu0 %v4455_v44  ;;  %v6169_v44 = vld [vmem:[#allocation8 + $0x74] ss:$8 sps:$4 sm:$0xff]  }
0x1fc5   :  { %4803 = vmatmul.mubr.bf16.gmra.mrb[116].mxu0 %v4454_v35  ;;  %v6157_v35 = vld [vmem:[#allocation8 + $0x34] ss:$8 sps:$4 sm:$0xff]  }
0x1fc6   :  { %4985 = vmatprep.subr.bf16.mxu1 %v6157_v35 }
0x1fc7   :  { %4986 = vmatpush1.bf16.msra.mxu1 %v6155_v33 }
0x1fc8   :  { %4987 = vmatprep.subr.bf16.mxu1 %v6160_v57 }
0x1fcb   :  { %4988 = vmatpush1.bf16.msra.mxu1 %v6158_v59 }
0x1fcc   :  { %4989 = vmatprep.subr.bf16.mxu1 %v6163_v55 }
0x1fcf   :  { %4990 = vmatpush1.bf16.msra.mxu1 %v6161_v0 }
0x1fd0   :  { %4991 = vmatprep.subr.bf16.mxu1 %v6166_v27 }
0x1fd3   :  { %4992 = vmatpush1.bf16.msra.mxu1 %v6164_v51 }
0x1fd4   :  { %4993 = vmatprep.subr.bf16.mxu1 %v6169_v44 }
0x2087   :  { %v5518_v52 = vpop.f32.mrb[96].mxu1 }
0x2088   :  { %v5519_v43 = vpop.f32.mrb[97].mxu1  ;;  %v5546_v61 = vpop.f32.mrb[112].mxu0 }
0x2089   :  { %v5520_v46 = vadd.f32 %v5519_v43, %v5518_v52  ;;  %v5521_v40 = vpop.f32.mrb[98].mxu1  ;;  %v5547_v10 = vpop.f32.mrb[113].mxu0  ;;  %v6167_v52 = vld [vmem:[#allocation8 + $0x70] ss:$8 sps:$4 sm:$0xff]  }
0x208a   :  { %v5522_v30 = vpop.f32.mrb[99].mxu1  ;;  %v5548_v25 = vadd.f32 %v5547_v10, %v5546_v61  ;;  %v5549_v53 = vpop.f32.mrb[114].mxu0  ;;  %4994 = vmatpush1.bf16.msra.mxu1 %v6167_v52 }
0x208b   :  { %v5523_v4 = vadd.f32 %v5522_v30, %v5521_v40  ;;  %v5550_v48 = vpop.f32.mrb[115].mxu0 }
0x208c   :  { %v4797_v32 = vadd.f32 %v5548_v25, %v5520_v46  ;;  %v5551_v60 = vadd.f32 %v5550_v48, %v5549_v53  ;;  %v5324_v25 = vld [vmem:[%s7651_s8] ss:$0 sm:$0xff]  ;;  %s6539_s8 = smov [#allocation10]  }
0x208e   :  { %v4800_v58 = vadd.f32 %v5551_v60, %v5523_v4  ;;  %v4811_v1 = vadd.f32 %v4797_v32, %v7468_v39 }
0x2090   :  { %4817 = vadd.xlane.f32.xlu0 %v4811_v1  ;;  %v4812_v23 = vadd.f32 %v4800_v58, %v7471_v31 }
0x2092   :  { %4819 = vadd.xlane.f32.xlu1 %v4812_v23 }
0x2094   :  { %v5524_v24 = vpop.f32.mrb[100].mxu1 }
0x2095   :  { %v5525_v8 = vpop.f32.mrb[101].mxu1 }
0x2096   :  { %v5526_v49 = vadd.f32 %v5525_v8, %v5524_v24  ;;  %v5527_v26 = vpop.f32.mrb[102].mxu1  ;;  %v5325_v24 = vld [vmem:[%s7652_s9] ss:$0 sm:$0xff]  ;;  %s5045_s9 = sshll.u32 %s6539_s8, 4  ;;  %s5046_s9 = int_to_ptr.vmem [resolvable:$true] %s5045_s9 }
0x2097   :  { %v5528_v28 = vpop.f32.mrb[103].mxu1  ;;  %s6494_s10 = scalar_lea.vmem %s5046_s9, 1024  ;;  %p6499_p5 = scmp.lt.s32.totalorder %s5046_s9, %s5046_s9 }
0x2098   :  { %v5529_v22 = vadd.f32 %v5528_v28, %v5527_v26  ;;  %v5552_v34 = vpop.f32.mrb[116].mxu0  ;;  %p6495_p4 = scmp.ne.s32.totalorder %s5046_s9, %s6494_s10  ;;  %p6500_p6 = scmp.lt.s32.totalorder %s6494_s10, %s6494_s10 }
0x2099   :  { %v5553_v37 = vpop.f32.mrb[117].mxu0 }
0x209a   :  { %v5554_v2 = vadd.f32 %v5553_v37, %v5552_v34  ;;  %v5555_v14 = vpop.f32.mrb[118].mxu0  ;;  %p6501_p7 = por %p6500_p6, %p6499_p5 }
0x209b   :  { %v5556_v38 = vpop.f32.mrb[119].mxu0 }
0x209c   :  { %v4805_v5 = vadd.f32 %v5554_v2, %v5526_v49  ;;  %v5557_v47 = vadd.f32 %v5556_v38, %v5555_v14  ;;  %p6502_p8 = pnand %p6501_p7, %p6495_p4 }
0x209e   :  { %v4808_v45 = vadd.f32 %v5557_v47, %v5529_v22  ;;  %v4813_v39 = vadd.f32 %v4805_v5, %v7475_v21 }
0x20a0   :  { %4821 = vadd.xlane.f32.xlu0 %v4813_v39  ;;  %v4814_v31 = vadd.f32 %v4808_v45, %v7480_v41 }
0x20a2   :  { %4823 = vadd.xlane.f32.xlu1 %v4814_v31 }
0x211d   :  { %v4818_v9 = vpop.xlane.xlu0 %4817 }
0x211e   :  { %v4825_v54 = vmul.f32 0.0078125, %v4818_v9 }
0x211f   :  { %v4820_v3 = vpop.xlane.xlu1 %4819 }
0x2120   :  { %v4829_v6 = vsub.f32 %v4811_v1, %v4825_v54  ;;  %v4826_v17 = vmul.f32 0.0078125, %v4820_v3 }
0x2122   :  { %v4830_v7 = vsub.f32 %v4812_v23, %v4826_v17  ;;  %v4833_v50 = vmul.f32 %v4829_v6, %v4829_v6 }
0x2124   :  { %4837 = vadd.xlane.f32.xlu0 %v4833_v50  ;;  %v4834_v21 = vmul.f32 %v4830_v7, %v4830_v7 }
0x2126   :  { %4839 = vadd.xlane.f32.xlu1 %v4834_v21 }
0x212d   :  { %v4822_v41 = vpop.xlane.xlu0 %4821 }
0x212e   :  { %v4827_v16 = vmul.f32 0.0078125, %v4822_v41 }
0x212f   :  { %v4824_v13 = vpop.xlane.xlu1 %4823 }
0x2130   :  { %v4831_v36 = vsub.f32 %v4813_v39, %v4827_v16  ;;  %v4828_v11 = vmul.f32 0.0078125, %v4824_v13 }
0x2132   :  { %v4832_v18 = vsub.f32 %v4814_v31, %v4828_v11  ;;  %v4835_v19 = vmul.f32 %v4831_v36, %v4831_v36 }
0x2134   :  { %4841 = vadd.xlane.f32.xlu0 %v4835_v19  ;;  %v4836_v15 = vmul.f32 %v4832_v18, %v4832_v18 }
0x2136   :  { %4843 = vadd.xlane.f32.xlu1 %v4836_v15 }
0x21b1   :  { %v4838_v43 = vpop.xlane.xlu0 %4837 }
0x21b2   :  { %v4845_v46 = vmul.f32 0.0078125, %v4838_v43 }
0x21b3   :  { %v4840_v40 = vpop.xlane.xlu1 %4839 }
0x21b4   :  { %v4849_v61 = vadd.f32 1e-05, %v4845_v46  ;;  %v4846_v30 = vmul.f32 0.0078125, %v4840_v40 }
0x21b6   :  { %6394 = vrsqrt.f32 %v4849_v61  ;;  %v4850_v10 = vadd.f32 1e-05, %v4846_v30 }
0x21b8   :  { %6396 = vrsqrt.f32 %v4850_v10 }
0x21c0   :  { %v6395_v4 = vpop.eup %6394 }
0x21c1   :  { %v4857_v53 = vmul.f32 %v6395_v4, %v4829_v6  ;;  %v4842_v32 = vpop.xlane.xlu0 %4841 }
0x21c2   :  { %v6397_v48 = vpop.eup %6396  ;;  %v4847_v1 = vmul.f32 0.0078125, %v4842_v32 }
0x21c3   :  { %v4867_v60 = vmul.f32 %v5324_v25, %v4857_v53  ;;  %v4858_v58 = vmul.f32 %v6397_v48, %v4830_v7  ;;  %v4844_v23 = vpop.xlane.xlu1 %4843 }
0x21c4   :  { %v4851_v49 = vadd.f32 1e-05, %v4847_v1  ;;  %v4848_v26 = vmul.f32 0.0078125, %v4844_v23 }
0x21c5   :  { %v4868_v8 = vmul.f32 %v5324_v25, %v4858_v58  ;;  %v4877_v22 = vadd.f32 %v5325_v24, %v4867_v60 }
0x21c6   :  { %6398 = vrsqrt.f32 %v4851_v49  ;;  %v4852_v28 = vadd.f32 1e-05, %v4848_v26 }
0x21c7   :  { %v4878_v34 = vadd.f32 %v5325_v24, %v4868_v8 }
0x21c8   :  { %6400 = vrsqrt.f32 %v4852_v28 }
0x21c9   :  { %v4881_v37 = vpack.c.bf16 %v4878_v34, %v4877_v22 }
0x21cb   :  { %5012 = vmatmul.mubr.bf16.vlgmr.msra.gmra.mrb[104].mxu1 %v4881_v37 }
0x21cc   :  { %5021 = vmatprep.mubr.bf16.mxu1 %v6534_v42 }
0x21d0   :  { %v6399_v2 = vpop.eup %6398 }
0x21d1   :  { %v4859_v14 = vmul.f32 %v6399_v2, %v4831_v36 }
0x21d2   :  { %v6401_v38 = vpop.eup %6400 }
0x21d3   :  { %v4860_v5 = vmul.f32 %v6401_v38, %v4832_v18  ;;  %v4869_v47 = vmul.f32 %v5324_v25, %v4859_v14 }
0x21d5   :  { %v4870_v45 = vmul.f32 %v5324_v25, %v4860_v5  ;;  %v4879_v39 = vadd.f32 %v5325_v24, %v4869_v47 }
0x21d7   :  { %v4880_v31 = vadd.f32 %v5325_v24, %v4870_v45 }
0x21d9   :  { %v4882_v12 = vpack.c.bf16 %v4880_v31, %v4879_v39 }
0x21db   :  { %5022 = vmatmul.mubr.bf16.gmra.mrb[108].mxu1 %v4882_v12 }
0x229e   :  { %v5013_v29 = vpop.f32.mrb[104].mxu1 }
0x229f   :  { %5032 = vst [vmem:[#allocation10] sm:$0xff] %v5013_v29  ;;  %v5015_v56 = vpop.f32.mrb[105].mxu1 }
0x22a0   :  { %5033 = vst [vmem:[#allocation10 + $0x8] sm:$0xff] %v5015_v56  ;;  %v5017_v20 = vpop.f32.mrb[106].mxu1 }
0x22a1   :  { %5034 = vst [vmem:[#allocation10 + $0x10] sm:$0xff] %v5017_v20  ;;  %v5019_v9 = vpop.f32.mrb[107].mxu1 }
0x22a2   :  { %5035 = vst [vmem:[#allocation10 + $0x18] sm:$0xff] %v5019_v9 }
0x22ae   :  { %v5023_v42 = vpop.f32.mrb[108].mxu1 }
0x22af   :  { %5036 = vst [vmem:[#allocation10 + $0x20] sm:$0xff] %v5023_v42  ;;  %v5025_v54 = vpop.f32.mrb[109].mxu1 }
0x22b0   :  { %5037 = vst [vmem:[#allocation10 + $0x28] sm:$0xff] %v5025_v54  ;;  %v5027_v3 = vpop.f32.mrb[110].mxu1 }
0x22b1   :  { %5038 = vst [vmem:[#allocation10 + $0x30] sm:$0xff] %v5027_v3  ;;  %v5029_v6 = vpop.f32.mrb[111].mxu1 }
0x22b2   :  { %5039 = vst [vmem:[#allocation10 + $0x38] sm:$0xff] %v5029_v6 }
0x22b3   :  { %6505 = shalt.err (!%p6502_p8)
}
0x22b4   :  { %s6506_s23 = scalar_lea.hbm %s7654_s11, 1024 }
0x22b5   :  { %p6507_p9 = scmp.ne.s32.totalorder %s7654_s11, %s6506_s23  ;;  %p6510_p10 = scmp.lt.u32.totalorder %s6506_s23, %s7654_s11 }
0x22b7   :  { %p6512_p11 = pnand %p6510_p10, %p6507_p9 }
0x22b9   :  { %6515 = shalt.err (!%p6512_p11)
}
0x22ba   :  { %5051 = dma.vmem_to_hbm [thread:$0]  %s5046_s9, 1024, %s7654_s11, [#allocation4], %s6525_s27, %s6525_s27, %s6526_s28  }
0x22bb   :  { %6522 = dma.done.wait [#allocation4], 1024  }
0x22bc   :  { %6523 = vsyncadd [#allocation4], 4294966272 }
0x22bd   :  { %5055 = vsyncpa [#allocation3], 1 }
0x22be   :  { %5056 = vsyncpa [#allocation6], 1 }
0x22bf   :  { %5057 = vsyncpa [#allocation9], 1 }
0x22c0   :  { %5058 = vsyncpa [#allocation4], 1 }

</bundles_post_ra>
